<compile_context>
chip_gen: v6e
topology: v6e:2x2x1
jax: 0.10.0
libtpu: 0.0.40
codegen_flags: <defaults>
</compile_context>

<pallas_src>
import math

import jax
import jax.numpy as jnp
from jax.experimental import pallas as pl
from jax.experimental.pallas import tpu as pltpu

# ---------------- config (small shapes consistent with the module) ----------------
B = 2                       # batch
IN_CH = 3                   # in_channels
IMG = 32                    # img_size
PATCH = 16                  # patches
GRID = IMG // PATCH         # 2
N_PATCH = GRID * GRID       # 4
SEQ = N_PATCH + 1           # (img_size // patches)**2 + 1 = 5
BS = B * SEQ                # 10 token rows, processed together in one tile
EMB = 32                    # emb_size
HEADS = 4                   # num_head
DHEAD = EMB // HEADS        # 8
DEPTH = 2                   # depth
EXP = 4                     # MLP expansion
HID = EMB * EXP             # 128
RES_OUT = 8                 # args.resnet_out_channels
N_CLASSES = 2               # n_classes
PFLAT = IN_CH * PATCH * PATCH  # 768

# rows of the packed (N_SMALL, EMB) small-parameter array
ROW_CLS = 0                 # cls token
ROW_POS = 1                 # rows 1 .. SEQ : positional embedding
ROW_B_EMB = 1 + SEQ         # 6  : patch-embed bias
ROW_LN1A = ROW_B_EMB + 1    # 7  : encoder LN1 gain
ROW_LN1B = ROW_LN1A + 1     # 8  : encoder LN1 bias
ROW_LN2A = ROW_LN1B + 1     # 9  : encoder LN2 gain
ROW_LN2B = ROW_LN2A + 1     # 10 : encoder LN2 bias
ROW_BO = ROW_LN2B + 1       # 11 : attention output-projection bias
ROW_B2 = ROW_BO + 1         # 12 : MLP second-linear bias
ROW_HG = ROW_B2 + 1         # 13 : head LayerNorm gamma
ROW_HB = ROW_HG + 1         # 14 : head LayerNorm beta
N_SMALL = ROW_HB + 1        # 15


# ------------------------------ Pallas kernel --------------------------------------
def _custom_layernorm(x, a, b, eps=1e-6):
    """LayerNorm from the PyTorch module: unbiased std (N-1), eps added to the std."""
    mean = jnp.mean(x, axis=-1, keepdims=True)
    d = x - mean
    var = jnp.sum(d * d, axis=-1, keepdims=True) * (1.0 / (x.shape[-1] - 1))
    return a * d / (jnp.sqrt(var) + eps) + b


def _vit_fused_kernel(xp_ref, w_stem_ref, b_stem_ref, w_emb_ref, small_ref,
                      mask_ref, wqkv_ref, bqkv_ref, woh_ref, w1_ref, b1_ref,
                      w2_ref, wcls_ref, bcls_ref, o_ref, seq_ref):
    f32 = jnp.float32

    # ---- Res34 stem (strided conv as matmul + ReLU) fused with 1x1 patch embed ----
    y = jnp.dot(xp_ref[...], w_stem_ref[...], preferred_element_type=f32)
    y = jnp.maximum(y + b_stem_ref[...], 0.0)                        # (B*N, RES_OUT)
    tok = jnp.dot(y, w_emb_ref[...], preferred_element_type=f32)
    tok = tok + small_ref[ROW_B_EMB:ROW_B_EMB + 1, :]                # (B*N, EMB)

    # ---- prepend cls token + positional embedding, flattened to (B*SEQ, EMB) ----
    cls_row = small_ref[ROW_CLS:ROW_CLS + 1, :] + small_ref[ROW_POS:ROW_POS + 1, :]
    pos_rest = small_ref[ROW_POS + 1:ROW_POS + SEQ, :]               # (N_PATCH, EMB)
    for b in range(B):                                               # static, B=2
        base = b * SEQ
        seq_ref[base:base + 1, :] = cls_row
        seq_ref[base + 1:base + SEQ, :] = (
            tok[b * N_PATCH:(b + 1) * N_PATCH, :] + pos_rest)
    x = seq_ref[...]                                                 # (BS, EMB)

    # ---- shared (clones()) encoder parameters: loaded once, reused every layer ----
    mask = mask_ref[...]                                             # (BS, BS) block-diag
    ln1a = small_ref[ROW_LN1A:ROW_LN1A + 1, :]
    ln1b = small_ref[ROW_LN1B:ROW_LN1B + 1, :]
    ln2a = small_ref[ROW_LN2A:ROW_LN2A + 1, :]
    ln2b = small_ref[ROW_LN2B:ROW_LN2B + 1, :]
    bo = small_ref[ROW_BO:ROW_BO + 1, :]
    b2 = small_ref[ROW_B2:ROW_B2 + 1, :]
    w1 = w1_ref[...]
    b1 = b1_ref[...]
    w2 = w2_ref[...]
    wq = [wqkv_ref[0 * HEADS + h] for h in range(HEADS)]             # (EMB, DHEAD) each
    wk = [wqkv_ref[1 * HEADS + h] for h in range(HEADS)]
    wv = [wqkv_ref[2 * HEADS + h] for h in range(HEADS)]
    bq = [bqkv_ref[0 * HEADS + h] for h in range(HEADS)]             # (1, DHEAD) each
    bk = [bqkv_ref[1 * HEADS + h] for h in range(HEADS)]
    bv = [bqkv_ref[2 * HEADS + h] for h in range(HEADS)]
    wo = [woh_ref[h] for h in range(HEADS)]                          # (DHEAD, EMB) each

    scale = 1.0 / math.sqrt(DHEAD)
    nt_dims = (((1,), (1,)), ((), ()))                               # contract feature dims

    for _ in range(DEPTH):                                           # clones(): shared weights
        # ---- sublayer 0: x + MHA(LayerNorm(x)) ----
        hn = _custom_layernorm(x, ln1a, ln1b)
        attn = jnp.zeros((BS, EMB), f32)
        for h in range(HEADS):                                       # static unroll
            qh = jnp.dot(hn, wq[h], preferred_element_type=f32) + bq[h]
            kh = jnp.dot(hn, wk[h], preferred_element_type=f32) + bk[h]
            vh = jnp.dot(hn, wv[h], preferred_element_type=f32) + bv[h]
            s = jax.lax.dot_general(qh, kh, nt_dims, preferred_element_type=f32)
            s = s * scale + mask                                     # keep attention per-image
            s = s - jnp.max(s, axis=-1, keepdims=True)               # stable softmax
            p = jnp.exp(s)
            p = p / jnp.sum(p, axis=-1, keepdims=True)
            hout = jnp.dot(p, vh, preferred_element_type=f32)        # (BS, DHEAD)
            # fold the output projection into the head loop (no concat of heads)
            attn = attn + jnp.dot(hout, wo[h], preferred_element_type=f32)
        x = x + attn + bo                                            # residual add

        # ---- sublayer 1: x + MLP(LayerNorm(x)) ----
        hn = _custom_layernorm(x, ln2a, ln2b)
        h1 = jnp.dot(hn, w1, preferred_element_type=f32) + b1
        h1 = 0.5 * h1 * (1.0 + jax.lax.erf(h1 * (1.0 / math.sqrt(2.0))))  # exact GELU
        x = x + jnp.dot(h1, w2, preferred_element_type=f32) + b2

    # ---- classification head: nn.LayerNorm (biased var, eps=1e-5) + Linear ----
    g = small_ref[ROW_HG:ROW_HG + 1, :]
    beta = small_ref[ROW_HB:ROW_HB + 1, :]
    mean = jnp.mean(x, axis=-1, keepdims=True)
    var = jnp.mean((x - mean) ** 2, axis=-1, keepdims=True)
    xn = (x - mean) / jnp.sqrt(var + 1e-5) * g + beta
    logits = jnp.dot(xn, wcls_ref[...], preferred_element_type=f32) + bcls_ref[...]
    for b in range(B):                                               # pick the cls-token rows
        o_ref[b:b + 1, :] = logits[b * SEQ:b * SEQ + 1, :]


# ------------------------------ wrapper ---------------------------------------------
def vit_fused(xp, mask, p):
    inputs = (xp, p["w_stem"], p["b_stem"], p["w_emb"], p["small"], mask,
              p["w_qkv_h"], p["b_qkv_h"], p["wo_h"], p["w1"], p["b1"], p["w2"],
              p["w_cls"], p["b_cls"])
    vmem_spec = lambda: pl.BlockSpec(memory_space=pltpu.MemorySpace.VMEM)
    return pl.pallas_call(
        _vit_fused_kernel,
        out_shape=jax.ShapeDtypeStruct((B, N_CLASSES), jnp.float32),
        in_specs=[vmem_spec() for _ in inputs],
        out_specs=vmem_spec(),
        scratch_shapes=[pltpu.VMEM((BS, EMB), jnp.float32)],         # residual-stream buffer
    )(*inputs)


# ------------------------------ host-side glue ---------------------------------------
def patchify(x):
    # x: (B, C, H, W) NCHW -> (B*N, C*p*p), flatten order (C, ph, pw)
    xb = x.reshape(B, IN_CH, GRID, PATCH, GRID, PATCH)
    xb = xb.transpose(0, 2, 4, 1, 3, 5)
    return xb.reshape(B * N_PATCH, PFLAT)


def build_attn_mask():
    # block-diagonal additive mask so flattened (B*S) rows only attend within their image
    tok_batch = jnp.arange(BS, dtype=jnp.int32) // SEQ
    same = tok_batch[:, None] == tok_batch[None, :]
    return jnp.where(same, 0.0, -1e30).astype(jnp.float32)


def vit_hybrid_forward(x, params):
    xp = patchify(x)                      # (B*N, C*p*p)
    mask = build_attn_mask()              # constant-folded under jit
    return vit_fused(xp, mask, params)    # (B, n_classes)


def init_params(key):
    ks = jax.random.split(key, 9)

    def w(k, shape):
        return (0.02 * jax.random.normal(k, shape)).astype(jnp.float32)

    zeros = lambda shape: jnp.zeros(shape, jnp.float32)
    ones = lambda shape: jnp.ones(shape, jnp.float32)

    # pack every (1, EMB)-sized parameter into one (N_SMALL, EMB) array
    small = jnp.concatenate([
        w(ks[0], (1, EMB)),               # cls token
        w(ks[1], (SEQ, EMB)),             # positional embedding
        zeros((1, EMB)),                  # b_emb
        ones((1, EMB)), zeros((1, EMB)),  # encoder LN1 a, b
        ones((1, EMB)), zeros((1, EMB)),  # encoder LN2 a, b
        zeros((1, EMB)),                  # attention out-proj bias
        zeros((1, EMB)),                  # MLP w_2 bias
        ones((1, EMB)), zeros((1, EMB)),  # head LayerNorm gamma, beta
    ], axis=0)
    assert small.shape == (N_SMALL, EMB)

    return {
        "w_stem": w(ks[2], (PFLAT, RES_OUT)), "b_stem": zeros((1, RES_OUT)),
        "w_emb": w(ks[3], (RES_OUT, EMB)),
        "small": small,
        # per-head layouts (split on host so the kernel never lane-slices activations):
        #   w_qkv_h[kind*HEADS + h] = W_kind[:, h*DHEAD:(h+1)*DHEAD]   (EMB, DHEAD)
        #   wo_h[h]                 = W_o[h*DHEAD:(h+1)*DHEAD, :]      (DHEAD, EMB)
        "w_qkv_h": w(ks[4], (3 * HEADS, EMB, DHEAD)),
        "b_qkv_h": zeros((3 * HEADS, 1, DHEAD)),
        "wo_h": w(ks[5], (HEADS, DHEAD, EMB)),
        "w1": w(ks[6], (EMB, HID)), "b1": zeros((1, HID)),
        "w2": w(ks[7], (HID, EMB)),
        "w_cls": w(ks[8], (EMB, N_CLASSES)), "b_cls": zeros((1, N_CLASSES)),
    }


if __name__ == "__main__":
    key = jax.random.PRNGKey(0)
    kx, kp = jax.random.split(key)
    x = jax.random.normal(kx, (B, IN_CH, IMG, IMG), dtype=jnp.float32)
    params = init_params(kp)

    out = jax.jit(vit_hybrid_forward)(x, params)
    out = jax.block_until_ready(out)
    assert out.shape == (B, N_CLASSES)
    assert bool(jnp.all(jnp.isfinite(out)))
    print("KERNEL_OK")
</pallas_src>

<mosaic_0001>
module attributes {stable_mosaic.version = 11 : i64} {
  func.func @_vit_fused_kernel(%arg0: memref<8x768xf32, #tpu.memory_space<vmem>>, %arg1: memref<768x8xf32, #tpu.memory_space<vmem>>, %arg2: memref<1x8xf32, #tpu.memory_space<vmem>>, %arg3: memref<8x32xf32, #tpu.memory_space<vmem>>, %arg4: memref<15x32xf32, #tpu.memory_space<vmem>>, %arg5: memref<10x10xf32, #tpu.memory_space<vmem>>, %arg6: memref<12x32x8xf32, #tpu.memory_space<vmem>>, %arg7: memref<12x1x8xf32, #tpu.memory_space<vmem>>, %arg8: memref<4x8x32xf32, #tpu.memory_space<vmem>>, %arg9: memref<32x128xf32, #tpu.memory_space<vmem>>, %arg10: memref<1x128xf32, #tpu.memory_space<vmem>>, %arg11: memref<128x32xf32, #tpu.memory_space<vmem>>, %arg12: memref<32x2xf32, #tpu.memory_space<vmem>>, %arg13: memref<1x2xf32, #tpu.memory_space<vmem>>, %arg14: memref<2x2xf32, #tpu.memory_space<vmem>>, %arg15: memref<10x32xf32, #tpu.memory_space<vmem>>) attributes {dimension_semantics = [], scalar_prefetch = 0 : i64, scratch_operands = 1 : i64, tpu.core_type = #tpu.core_type<tc>} {
    %c0 = arith.constant 0 : index
    %c0_0 = arith.constant 0 : index
    %0 = vector.load %arg0[%c0, %c0_0] : memref<8x768xf32, #tpu.memory_space<vmem>>, vector<8x768xf32>
    %c0_1 = arith.constant 0 : index
    %c0_2 = arith.constant 0 : index
    %1 = vector.load %arg1[%c0_1, %c0_2] : memref<768x8xf32, #tpu.memory_space<vmem>>, vector<768x8xf32>
    %cst = arith.constant dense<0.000000e+00> : vector<8x8xf32>
    %2 = tpu.matmul %0, %1, %cst {dimension_numbers = #tpu.dot_dimension_numbers<[1], [0], [0], [1], [0, 0, 1, 1], [], []>} : vector<8x768xf32>, vector<768x8xf32>, vector<8x8xf32> -> vector<8x8xf32>
    %c0_3 = arith.constant 0 : index
    %c0_4 = arith.constant 0 : index
    %3 = vector.load %arg2[%c0_3, %c0_4] : memref<1x8xf32, #tpu.memory_space<vmem>>, vector<1x8xf32>
    %4 = vector.broadcast %3 : vector<1x8xf32> to vector<8x8xf32>
    %5 = arith.addf %2, %4 : vector<8x8xf32>
    %cst_5 = arith.constant 0.000000e+00 : f32
    %6 = vector.broadcast %cst_5 : f32 to vector<8x8xf32>
    %7 = arith.maximumf %5, %6 : vector<8x8xf32>
    %c0_6 = arith.constant 0 : index
    %c0_7 = arith.constant 0 : index
    %8 = vector.load %arg3[%c0_6, %c0_7] : memref<8x32xf32, #tpu.memory_space<vmem>>, vector<8x32xf32>
    %cst_8 = arith.constant dense<0.000000e+00> : vector<8x32xf32>
    %9 = tpu.matmul %7, %8, %cst_8 {dimension_numbers = #tpu.dot_dimension_numbers<[1], [0], [0], [1], [0, 0, 1, 1], [], []>} : vector<8x8xf32>, vector<8x32xf32>, vector<8x32xf32> -> vector<8x32xf32>
    %c6 = arith.constant 6 : index
    %c0_9 = arith.constant 0 : index
    %10 = vector.load %arg4[%c6, %c0_9] : memref<15x32xf32, #tpu.memory_space<vmem>>, vector<1x32xf32>
    %11 = vector.broadcast %10 : vector<1x32xf32> to vector<8x32xf32>
    %12 = arith.addf %9, %11 : vector<8x32xf32>
    %c0_10 = arith.constant 0 : index
    %c0_11 = arith.constant 0 : index
    %13 = vector.load %arg4[%c0_10, %c0_11] : memref<15x32xf32, #tpu.memory_space<vmem>>, vector<1x32xf32>
    %c1 = arith.constant 1 : index
    %c0_12 = arith.constant 0 : index
    %14 = vector.load %arg4[%c1, %c0_12] : memref<15x32xf32, #tpu.memory_space<vmem>>, vector<1x32xf32>
    %15 = arith.addf %13, %14 : vector<1x32xf32>
    %c2 = arith.constant 2 : index
    %c0_13 = arith.constant 0 : index
    %16 = vector.load %arg4[%c2, %c0_13] : memref<15x32xf32, #tpu.memory_space<vmem>>, vector<4x32xf32>
    %c0_14 = arith.constant 0 : index
    %c0_15 = arith.constant 0 : index
    %17 = vector.load %arg15[%c0_14, %c0_15] : memref<10x32xf32, #tpu.memory_space<vmem>>, vector<1x32xf32>
    tpu.vector_store %arg15[%c0_14, %c0_15], %15 {strides = array<i32>} : memref<10x32xf32, #tpu.memory_space<vmem>>, vector<1x32xf32>,
    %18 = vector.extract_strided_slice %12 {offsets = [0, 0], sizes = [4, 32], strides = [1, 1]} : vector<8x32xf32> to vector<4x32xf32>
    %19 = arith.addf %18, %16 : vector<4x32xf32>
    %c1_16 = arith.constant 1 : index
    %c0_17 = arith.constant 0 : index
    %20 = vector.load %arg15[%c1_16, %c0_17] : memref<10x32xf32, #tpu.memory_space<vmem>>, vector<4x32xf32>
    tpu.vector_store %arg15[%c1_16, %c0_17], %19 {strides = array<i32>} : memref<10x32xf32, #tpu.memory_space<vmem>>, vector<4x32xf32>,
    %c5 = arith.constant 5 : index
    %c0_18 = arith.constant 0 : index
    %21 = vector.load %arg15[%c5, %c0_18] : memref<10x32xf32, #tpu.memory_space<vmem>>, vector<1x32xf32>
    tpu.vector_store %arg15[%c5, %c0_18], %15 {strides = array<i32>} : memref<10x32xf32, #tpu.memory_space<vmem>>, vector<1x32xf32>,
    %22 = vector.extract_strided_slice %12 {offsets = [4, 0], sizes = [4, 32], strides = [1, 1]} : vector<8x32xf32> to vector<4x32xf32>
    %23 = arith.addf %22, %16 : vector<4x32xf32>
    %c6_19 = arith.constant 6 : index
    %c0_20 = arith.constant 0 : index
    %24 = vector.load %arg15[%c6_19, %c0_20] : memref<10x32xf32, #tpu.memory_space<vmem>>, vector<4x32xf32>
    tpu.vector_store %arg15[%c6_19, %c0_20], %23 {strides = array<i32>} : memref<10x32xf32, #tpu.memory_space<vmem>>, vector<4x32xf32>,
    %c0_21 = arith.constant 0 : index
    %c0_22 = arith.constant 0 : index
    %25 = vector.load %arg15[%c0_21, %c0_22] : memref<10x32xf32, #tpu.memory_space<vmem>>, vector<10x32xf32>
    %c0_23 = arith.constant 0 : index
    %c0_24 = arith.constant 0 : index
    %26 = vector.load %arg5[%c0_23, %c0_24] : memref<10x10xf32, #tpu.memory_space<vmem>>, vector<10x10xf32>
    %c7 = arith.constant 7 : index
    %c0_25 = arith.constant 0 : index
    %27 = vector.load %arg4[%c7, %c0_25] : memref<15x32xf32, #tpu.memory_space<vmem>>, vector<1x32xf32>
    %c8 = arith.constant 8 : index
    %c0_26 = arith.constant 0 : index
    %28 = vector.load %arg4[%c8, %c0_26] : memref<15x32xf32, #tpu.memory_space<vmem>>, vector<1x32xf32>
    %c9 = arith.constant 9 : index
    %c0_27 = arith.constant 0 : index
    %29 = vector.load %arg4[%c9, %c0_27] : memref<15x32xf32, #tpu.memory_space<vmem>>, vector<1x32xf32>
    %c10 = arith.constant 10 : index
    %c0_28 = arith.constant 0 : index
    %30 = vector.load %arg4[%c10, %c0_28] : memref<15x32xf32, #tpu.memory_space<vmem>>, vector<1x32xf32>
    %c11 = arith.constant 11 : index
    %c0_29 = arith.constant 0 : index
    %31 = vector.load %arg4[%c11, %c0_29] : memref<15x32xf32, #tpu.memory_space<vmem>>, vector<1x32xf32>
    %c12 = arith.constant 12 : index
    %c0_30 = arith.constant 0 : index
    %32 = vector.load %arg4[%c12, %c0_30] : memref<15x32xf32, #tpu.memory_space<vmem>>, vector<1x32xf32>
    %c0_31 = arith.constant 0 : index
    %c0_32 = arith.constant 0 : index
    %33 = vector.load %arg9[%c0_31, %c0_32] : memref<32x128xf32, #tpu.memory_space<vmem>>, vector<32x128xf32>
    %c0_33 = arith.constant 0 : index
    %c0_34 = arith.constant 0 : index
    %34 = vector.load %arg10[%c0_33, %c0_34] : memref<1x128xf32, #tpu.memory_space<vmem>>, vector<1x128xf32>
    %c0_35 = arith.constant 0 : index
    %c0_36 = arith.constant 0 : index
    %35 = vector.load %arg11[%c0_35, %c0_36] : memref<128x32xf32, #tpu.memory_space<vmem>>, vector<128x32xf32>
    %c0_37 = arith.constant 0 : index
    %c0_38 = arith.constant 0 : index
    %c0_39 = arith.constant 0 : index
    %36 = vector.load %arg6[%c0_37, %c0_38, %c0_39] : memref<12x32x8xf32, #tpu.memory_space<vmem>>, vector<1x32x8xf32>
    %37 = vector.shape_cast %36 : vector<1x32x8xf32> to vector<32x8xf32>
    %c1_40 = arith.constant 1 : index
    %c0_41 = arith.constant 0 : index
    %c0_42 = arith.constant 0 : index
    %38 = vector.load %arg6[%c1_40, %c0_41, %c0_42] : memref<12x32x8xf32, #tpu.memory_space<vmem>>, vector<1x32x8xf32>
    %39 = vector.shape_cast %38 : vector<1x32x8xf32> to vector<32x8xf32>
    %c2_43 = arith.constant 2 : index
    %c0_44 = arith.constant 0 : index
    %c0_45 = arith.constant 0 : index
    %40 = vector.load %arg6[%c2_43, %c0_44, %c0_45] : memref<12x32x8xf32, #tpu.memory_space<vmem>>, vector<1x32x8xf32>
    %41 = vector.shape_cast %40 : vector<1x32x8xf32> to vector<32x8xf32>
    %c3 = arith.constant 3 : index
    %c0_46 = arith.constant 0 : index
    %c0_47 = arith.constant 0 : index
    %42 = vector.load %arg6[%c3, %c0_46, %c0_47] : memref<12x32x8xf32, #tpu.memory_space<vmem>>, vector<1x32x8xf32>
    %43 = vector.shape_cast %42 : vector<1x32x8xf32> to vector<32x8xf32>
    %c4 = arith.constant 4 : index
    %c0_48 = arith.constant 0 : index
    %c0_49 = arith.constant 0 : index
    %44 = vector.load %arg6[%c4, %c0_48, %c0_49] : memref<12x32x8xf32, #tpu.memory_space<vmem>>, vector<1x32x8xf32>
    %45 = vector.shape_cast %44 : vector<1x32x8xf32> to vector<32x8xf32>
    %c5_50 = arith.constant 5 : index
    %c0_51 = arith.constant 0 : index
    %c0_52 = arith.constant 0 : index
    %46 = vector.load %arg6[%c5_50, %c0_51, %c0_52] : memref<12x32x8xf32, #tpu.memory_space<vmem>>, vector<1x32x8xf32>
    %47 = vector.shape_cast %46 : vector<1x32x8xf32> to vector<32x8xf32>
    %c6_53 = arith.constant 6 : index
    %c0_54 = arith.constant 0 : index
    %c0_55 = arith.constant 0 : index
    %48 = vector.load %arg6[%c6_53, %c0_54, %c0_55] : memref<12x32x8xf32, #tpu.memory_space<vmem>>, vector<1x32x8xf32>
    %49 = vector.shape_cast %48 : vector<1x32x8xf32> to vector<32x8xf32>
    %c7_56 = arith.constant 7 : index
    %c0_57 = arith.constant 0 : index
    %c0_58 = arith.constant 0 : index
    %50 = vector.load %arg6[%c7_56, %c0_57, %c0_58] : memref<12x32x8xf32, #tpu.memory_space<vmem>>, vector<1x32x8xf32>
    %51 = vector.shape_cast %50 : vector<1x32x8xf32> to vector<32x8xf32>
    %c8_59 = arith.constant 8 : index
    %c0_60 = arith.constant 0 : index
    %c0_61 = arith.constant 0 : index
    %52 = vector.load %arg6[%c8_59, %c0_60, %c0_61] : memref<12x32x8xf32, #tpu.memory_space<vmem>>, vector<1x32x8xf32>
    %53 = vector.shape_cast %52 : vector<1x32x8xf32> to vector<32x8xf32>
    %c9_62 = arith.constant 9 : index
    %c0_63 = arith.constant 0 : index
    %c0_64 = arith.constant 0 : index
    %54 = vector.load %arg6[%c9_62, %c0_63, %c0_64] : memref<12x32x8xf32, #tpu.memory_space<vmem>>, vector<1x32x8xf32>
    %55 = vector.shape_cast %54 : vector<1x32x8xf32> to vector<32x8xf32>
    %c10_65 = arith.constant 10 : index
    %c0_66 = arith.constant 0 : index
    %c0_67 = arith.constant 0 : index
    %56 = vector.load %arg6[%c10_65, %c0_66, %c0_67] : memref<12x32x8xf32, #tpu.memory_space<vmem>>, vector<1x32x8xf32>
    %57 = vector.shape_cast %56 : vector<1x32x8xf32> to vector<32x8xf32>
    %c11_68 = arith.constant 11 : index
    %c0_69 = arith.constant 0 : index
    %c0_70 = arith.constant 0 : index
    %58 = vector.load %arg6[%c11_68, %c0_69, %c0_70] : memref<12x32x8xf32, #tpu.memory_space<vmem>>, vector<1x32x8xf32>
    %59 = vector.shape_cast %58 : vector<1x32x8xf32> to vector<32x8xf32>
    %c0_71 = arith.constant 0 : index
    %c0_72 = arith.constant 0 : index
    %c0_73 = arith.constant 0 : index
    %60 = vector.load %arg7[%c0_71, %c0_72, %c0_73] : memref<12x1x8xf32, #tpu.memory_space<vmem>>, vector<1x1x8xf32>
    %61 = vector.shape_cast %60 : vector<1x1x8xf32> to vector<1x8xf32>
    %c1_74 = arith.constant 1 : index
    %c0_75 = arith.constant 0 : index
    %c0_76 = arith.constant 0 : index
    %62 = vector.load %arg7[%c1_74, %c0_75, %c0_76] : memref<12x1x8xf32, #tpu.memory_space<vmem>>, vector<1x1x8xf32>
    %63 = vector.shape_cast %62 : vector<1x1x8xf32> to vector<1x8xf32>
    %c2_77 = arith.constant 2 : index
    %c0_78 = arith.constant 0 : index
    %c0_79 = arith.constant 0 : index
    %64 = vector.load %arg7[%c2_77, %c0_78, %c0_79] : memref<12x1x8xf32, #tpu.memory_space<vmem>>, vector<1x1x8xf32>
    %65 = vector.shape_cast %64 : vector<1x1x8xf32> to vector<1x8xf32>
    %c3_80 = arith.constant 3 : index
    %c0_81 = arith.constant 0 : index
    %c0_82 = arith.constant 0 : index
    %66 = vector.load %arg7[%c3_80, %c0_81, %c0_82] : memref<12x1x8xf32, #tpu.memory_space<vmem>>, vector<1x1x8xf32>
    %67 = vector.shape_cast %66 : vector<1x1x8xf32> to vector<1x8xf32>
    %c4_83 = arith.constant 4 : index
    %c0_84 = arith.constant 0 : index
    %c0_85 = arith.constant 0 : index
    %68 = vector.load %arg7[%c4_83, %c0_84, %c0_85] : memref<12x1x8xf32, #tpu.memory_space<vmem>>, vector<1x1x8xf32>
    %69 = vector.shape_cast %68 : vector<1x1x8xf32> to vector<1x8xf32>
    %c5_86 = arith.constant 5 : index
    %c0_87 = arith.constant 0 : index
    %c0_88 = arith.constant 0 : index
    %70 = vector.load %arg7[%c5_86, %c0_87, %c0_88] : memref<12x1x8xf32, #tpu.memory_space<vmem>>, vector<1x1x8xf32>
    %71 = vector.shape_cast %70 : vector<1x1x8xf32> to vector<1x8xf32>
    %c6_89 = arith.constant 6 : index
    %c0_90 = arith.constant 0 : index
    %c0_91 = arith.constant 0 : index
    %72 = vector.load %arg7[%c6_89, %c0_90, %c0_91] : memref<12x1x8xf32, #tpu.memory_space<vmem>>, vector<1x1x8xf32>
    %73 = vector.shape_cast %72 : vector<1x1x8xf32> to vector<1x8xf32>
    %c7_92 = arith.constant 7 : index
    %c0_93 = arith.constant 0 : index
    %c0_94 = arith.constant 0 : index
    %74 = vector.load %arg7[%c7_92, %c0_93, %c0_94] : memref<12x1x8xf32, #tpu.memory_space<vmem>>, vector<1x1x8xf32>
    %75 = vector.shape_cast %74 : vector<1x1x8xf32> to vector<1x8xf32>
    %c8_95 = arith.constant 8 : index
    %c0_96 = arith.constant 0 : index
    %c0_97 = arith.constant 0 : index
    %76 = vector.load %arg7[%c8_95, %c0_96, %c0_97] : memref<12x1x8xf32, #tpu.memory_space<vmem>>, vector<1x1x8xf32>
    %77 = vector.shape_cast %76 : vector<1x1x8xf32> to vector<1x8xf32>
    %c9_98 = arith.constant 9 : index
    %c0_99 = arith.constant 0 : index
    %c0_100 = arith.constant 0 : index
    %78 = vector.load %arg7[%c9_98, %c0_99, %c0_100] : memref<12x1x8xf32, #tpu.memory_space<vmem>>, vector<1x1x8xf32>
    %79 = vector.shape_cast %78 : vector<1x1x8xf32> to vector<1x8xf32>
    %c10_101 = arith.constant 10 : index
    %c0_102 = arith.constant 0 : index
    %c0_103 = arith.constant 0 : index
    %80 = vector.load %arg7[%c10_101, %c0_102, %c0_103] : memref<12x1x8xf32, #tpu.memory_space<vmem>>, vector<1x1x8xf32>
    %81 = vector.shape_cast %80 : vector<1x1x8xf32> to vector<1x8xf32>
    %c11_104 = arith.constant 11 : index
    %c0_105 = arith.constant 0 : index
    %c0_106 = arith.constant 0 : index
    %82 = vector.load %arg7[%c11_104, %c0_105, %c0_106] : memref<12x1x8xf32, #tpu.memory_space<vmem>>, vector<1x1x8xf32>
    %83 = vector.shape_cast %82 : vector<1x1x8xf32> to vector<1x8xf32>
    %c0_107 = arith.constant 0 : index
    %c0_108 = arith.constant 0 : index
    %c0_109 = arith.constant 0 : index
    %84 = vector.load %arg8[%c0_107, %c0_108, %c0_109] : memref<4x8x32xf32, #tpu.memory_space<vmem>>, vector<1x8x32xf32>
    %85 = vector.shape_cast %84 : vector<1x8x32xf32> to vector<8x32xf32>
    %c1_110 = arith.constant 1 : index
    %c0_111 = arith.constant 0 : index
    %c0_112 = arith.constant 0 : index
    %86 = vector.load %arg8[%c1_110, %c0_111, %c0_112] : memref<4x8x32xf32, #tpu.memory_space<vmem>>, vector<1x8x32xf32>
    %87 = vector.shape_cast %86 : vector<1x8x32xf32> to vector<8x32xf32>
    %c2_113 = arith.constant 2 : index
    %c0_114 = arith.constant 0 : index
    %c0_115 = arith.constant 0 : index
    %88 = vector.load %arg8[%c2_113, %c0_114, %c0_115] : memref<4x8x32xf32, #tpu.memory_space<vmem>>, vector<1x8x32xf32>
    %89 = vector.shape_cast %88 : vector<1x8x32xf32> to vector<8x32xf32>
    %c3_116 = arith.constant 3 : index
    %c0_117 = arith.constant 0 : index
    %c0_118 = arith.constant 0 : index
    %90 = vector.load %arg8[%c3_116, %c0_117, %c0_118] : memref<4x8x32xf32, #tpu.memory_space<vmem>>, vector<1x8x32xf32>
    %91 = vector.shape_cast %90 : vector<1x8x32xf32> to vector<8x32xf32>
    %cst_119 = arith.constant dense<0.000000e+00> : vector<10xf32>
    %92 = vector.multi_reduction <add>, %25, %cst_119 [1] : vector<10x32xf32> to vector<10xf32>
    %93 = vector.shape_cast %92 : vector<10xf32> to vector<10x1xf32>
    %cst_120 = arith.constant 3.200000e+01 : f32
    %94 = vector.broadcast %cst_120 : f32 to vector<10x1xf32>
    %95 = arith.divf %93, %94 : vector<10x1xf32>
    %96 = vector.broadcast %95 : vector<10x1xf32> to vector<10x32xf32>
    %97 = arith.subf %25, %96 : vector<10x32xf32>
    %98 = arith.mulf %97, %97 : vector<10x32xf32>
    %cst_121 = arith.constant dense<0.000000e+00> : vector<10xf32>
    %99 = vector.multi_reduction <add>, %98, %cst_121 [1] : vector<10x32xf32> to vector<10xf32>
    %100 = vector.shape_cast %99 : vector<10xf32> to vector<10x1xf32>
    %cst_122 = arith.constant 0.0322580636 : f32
    %101 = vector.broadcast %cst_122 : f32 to vector<10x1xf32>
    %102 = arith.mulf %100, %101 : vector<10x1xf32>
    %103 = vector.broadcast %27 : vector<1x32xf32> to vector<10x32xf32>
    %104 = arith.mulf %103, %97 : vector<10x32xf32>
    %105 = math.sqrt %102 : vector<10x1xf32>
    %cst_123 = arith.constant 9.99999997E-7 : f32
    %106 = vector.broadcast %cst_123 : f32 to vector<10x1xf32>
    %107 = arith.addf %105, %106 : vector<10x1xf32>
    %108 = vector.broadcast %107 : vector<10x1xf32> to vector<10x32xf32>
    %109 = arith.divf %104, %108 : vector<10x32xf32>
    %110 = vector.broadcast %28 : vector<1x32xf32> to vector<10x32xf32>
    %111 = arith.addf %109, %110 : vector<10x32xf32>
    %cst_124 = arith.constant 0.000000e+00 : f32
    %112 = vector.broadcast %cst_124 : f32 to vector<10x32xf32>
    %cst_125 = arith.constant dense<0.000000e+00> : vector<10x8xf32>
    %113 = tpu.matmul %111, %37, %cst_125 {dimension_numbers = #tpu.dot_dimension_numbers<[1], [0], [0], [1], [0, 0, 1, 1], [], []>} : vector<10x32xf32>, vector<32x8xf32>, vector<10x8xf32> -> vector<10x8xf32>
    %114 = vector.broadcast %61 : vector<1x8xf32> to vector<10x8xf32>
    %115 = arith.addf %113, %114 : vector<10x8xf32>
    %cst_126 = arith.constant dense<0.000000e+00> : vector<10x8xf32>
    %116 = tpu.matmul %111, %45, %cst_126 {dimension_numbers = #tpu.dot_dimension_numbers<[1], [0], [0], [1], [0, 0, 1, 1], [], []>} : vector<10x32xf32>, vector<32x8xf32>, vector<10x8xf32> -> vector<10x8xf32>
    %117 = vector.broadcast %69 : vector<1x8xf32> to vector<10x8xf32>
    %118 = arith.addf %116, %117 : vector<10x8xf32>
    %cst_127 = arith.constant dense<0.000000e+00> : vector<10x8xf32>
    %119 = tpu.matmul %111, %53, %cst_127 {dimension_numbers = #tpu.dot_dimension_numbers<[1], [0], [0], [1], [0, 0, 1, 1], [], []>} : vector<10x32xf32>, vector<32x8xf32>, vector<10x8xf32> -> vector<10x8xf32>
    %120 = vector.broadcast %77 : vector<1x8xf32> to vector<10x8xf32>
    %121 = arith.addf %119, %120 : vector<10x8xf32>
    %cst_128 = arith.constant dense<0.000000e+00> : vector<10x10xf32>
    %122 = tpu.matmul %115, %118, %cst_128 {dimension_numbers = #tpu.dot_dimension_numbers<[1], [1], [0], [0], [0, 0, 1, 0], [], []>} : vector<10x8xf32>, vector<10x8xf32>, vector<10x10xf32> -> vector<10x10xf32>
    %cst_129 = arith.constant 0.353553385 : f32
    %123 = vector.broadcast %cst_129 : f32 to vector<10x10xf32>
    %124 = arith.mulf %122, %123 : vector<10x10xf32>
    %125 = arith.addf %124, %26 : vector<10x10xf32>
    %cst_130 = arith.constant dense<0xFF800000> : vector<10xf32>
    %126 = vector.multi_reduction <maximumf>, %125, %cst_130 [1] : vector<10x10xf32> to vector<10xf32>
    %127 = vector.shape_cast %126 : vector<10xf32> to vector<10x1xf32>
    %128 = vector.broadcast %127 : vector<10x1xf32> to vector<10x10xf32>
    %129 = arith.subf %125, %128 : vector<10x10xf32>
    %130 = math.exp %129 : vector<10x10xf32>
    %cst_131 = arith.constant dense<0.000000e+00> : vector<10xf32>
    %131 = vector.multi_reduction <add>, %130, %cst_131 [1] : vector<10x10xf32> to vector<10xf32>
    %132 = vector.shape_cast %131 : vector<10xf32> to vector<10x1xf32>
    %133 = vector.broadcast %132 : vector<10x1xf32> to vector<10x10xf32>
    %134 = arith.divf %130, %133 : vector<10x10xf32>
    %cst_132 = arith.constant dense<0.000000e+00> : vector<10x8xf32>
    %135 = tpu.matmul %134, %121, %cst_132 {dimension_numbers = #tpu.dot_dimension_numbers<[1], [0], [0], [1], [0, 0, 1, 1], [], []>} : vector<10x10xf32>, vector<10x8xf32>, vector<10x8xf32> -> vector<10x8xf32>
    %cst_133 = arith.constant dense<0.000000e+00> : vector<10x32xf32>
    %136 = tpu.matmul %135, %85, %cst_133 {dimension_numbers = #tpu.dot_dimension_numbers<[1], [0], [0], [1], [0, 0, 1, 1], [], []>} : vector<10x8xf32>, vector<8x32xf32>, vector<10x32xf32> -> vector<10x32xf32>
    %137 = arith.addf %112, %136 : vector<10x32xf32>
    %cst_134 = arith.constant dense<0.000000e+00> : vector<10x8xf32>
    %138 = tpu.matmul %111, %39, %cst_134 {dimension_numbers = #tpu.dot_dimension_numbers<[1], [0], [0], [1], [0, 0, 1, 1], [], []>} : vector<10x32xf32>, vector<32x8xf32>, vector<10x8xf32> -> vector<10x8xf32>
    %139 = vector.broadcast %63 : vector<1x8xf32> to vector<10x8xf32>
    %140 = arith.addf %138, %139 : vector<10x8xf32>
    %cst_135 = arith.constant dense<0.000000e+00> : vector<10x8xf32>
    %141 = tpu.matmul %111, %47, %cst_135 {dimension_numbers = #tpu.dot_dimension_numbers<[1], [0], [0], [1], [0, 0, 1, 1], [], []>} : vector<10x32xf32>, vector<32x8xf32>, vector<10x8xf32> -> vector<10x8xf32>
    %142 = vector.broadcast %71 : vector<1x8xf32> to vector<10x8xf32>
    %143 = arith.addf %141, %142 : vector<10x8xf32>
    %cst_136 = arith.constant dense<0.000000e+00> : vector<10x8xf32>
    %144 = tpu.matmul %111, %55, %cst_136 {dimension_numbers = #tpu.dot_dimension_numbers<[1], [0], [0], [1], [0, 0, 1, 1], [], []>} : vector<10x32xf32>, vector<32x8xf32>, vector<10x8xf32> -> vector<10x8xf32>
    %145 = vector.broadcast %79 : vector<1x8xf32> to vector<10x8xf32>
    %146 = arith.addf %144, %145 : vector<10x8xf32>
    %cst_137 = arith.constant dense<0.000000e+00> : vector<10x10xf32>
    %147 = tpu.matmul %140, %143, %cst_137 {dimension_numbers = #tpu.dot_dimension_numbers<[1], [1], [0], [0], [0, 0, 1, 0], [], []>} : vector<10x8xf32>, vector<10x8xf32>, vector<10x10xf32> -> vector<10x10xf32>
    %cst_138 = arith.constant 0.353553385 : f32
    %148 = vector.broadcast %cst_138 : f32 to vector<10x10xf32>
    %149 = arith.mulf %147, %148 : vector<10x10xf32>
    %150 = arith.addf %149, %26 : vector<10x10xf32>
    %cst_139 = arith.constant dense<0xFF800000> : vector<10xf32>
    %151 = vector.multi_reduction <maximumf>, %150, %cst_139 [1] : vector<10x10xf32> to vector<10xf32>
    %152 = vector.shape_cast %151 : vector<10xf32> to vector<10x1xf32>
    %153 = vector.broadcast %152 : vector<10x1xf32> to vector<10x10xf32>
    %154 = arith.subf %150, %153 : vector<10x10xf32>
    %155 = math.exp %154 : vector<10x10xf32>
    %cst_140 = arith.constant dense<0.000000e+00> : vector<10xf32>
    %156 = vector.multi_reduction <add>, %155, %cst_140 [1] : vector<10x10xf32> to vector<10xf32>
    %157 = vector.shape_cast %156 : vector<10xf32> to vector<10x1xf32>
    %158 = vector.broadcast %157 : vector<10x1xf32> to vector<10x10xf32>
    %159 = arith.divf %155, %158 : vector<10x10xf32>
    %cst_141 = arith.constant dense<0.000000e+00> : vector<10x8xf32>
    %160 = tpu.matmul %159, %146, %cst_141 {dimension_numbers = #tpu.dot_dimension_numbers<[1], [0], [0], [1], [0, 0, 1, 1], [], []>} : vector<10x10xf32>, vector<10x8xf32>, vector<10x8xf32> -> vector<10x8xf32>
    %cst_142 = arith.constant dense<0.000000e+00> : vector<10x32xf32>
    %161 = tpu.matmul %160, %87, %cst_142 {dimension_numbers = #tpu.dot_dimension_numbers<[1], [0], [0], [1], [0, 0, 1, 1], [], []>} : vector<10x8xf32>, vector<8x32xf32>, vector<10x32xf32> -> vector<10x32xf32>
    %162 = arith.addf %137, %161 : vector<10x32xf32>
    %cst_143 = arith.constant dense<0.000000e+00> : vector<10x8xf32>
    %163 = tpu.matmul %111, %41, %cst_143 {dimension_numbers = #tpu.dot_dimension_numbers<[1], [0], [0], [1], [0, 0, 1, 1], [], []>} : vector<10x32xf32>, vector<32x8xf32>, vector<10x8xf32> -> vector<10x8xf32>
    %164 = vector.broadcast %65 : vector<1x8xf32> to vector<10x8xf32>
    %165 = arith.addf %163, %164 : vector<10x8xf32>
    %cst_144 = arith.constant dense<0.000000e+00> : vector<10x8xf32>
    %166 = tpu.matmul %111, %49, %cst_144 {dimension_numbers = #tpu.dot_dimension_numbers<[1], [0], [0], [1], [0, 0, 1, 1], [], []>} : vector<10x32xf32>, vector<32x8xf32>, vector<10x8xf32> -> vector<10x8xf32>
    %167 = vector.broadcast %73 : vector<1x8xf32> to vector<10x8xf32>
    %168 = arith.addf %166, %167 : vector<10x8xf32>
    %cst_145 = arith.constant dense<0.000000e+00> : vector<10x8xf32>
    %169 = tpu.matmul %111, %57, %cst_145 {dimension_numbers = #tpu.dot_dimension_numbers<[1], [0], [0], [1], [0, 0, 1, 1], [], []>} : vector<10x32xf32>, vector<32x8xf32>, vector<10x8xf32> -> vector<10x8xf32>
    %170 = vector.broadcast %81 : vector<1x8xf32> to vector<10x8xf32>
    %171 = arith.addf %169, %170 : vector<10x8xf32>
    %cst_146 = arith.constant dense<0.000000e+00> : vector<10x10xf32>
    %172 = tpu.matmul %165, %168, %cst_146 {dimension_numbers = #tpu.dot_dimension_numbers<[1], [1], [0], [0], [0, 0, 1, 0], [], []>} : vector<10x8xf32>, vector<10x8xf32>, vector<10x10xf32> -> vector<10x10xf32>
    %cst_147 = arith.constant 0.353553385 : f32
    %173 = vector.broadcast %cst_147 : f32 to vector<10x10xf32>
    %174 = arith.mulf %172, %173 : vector<10x10xf32>
    %175 = arith.addf %174, %26 : vector<10x10xf32>
    %cst_148 = arith.constant dense<0xFF800000> : vector<10xf32>
    %176 = vector.multi_reduction <maximumf>, %175, %cst_148 [1] : vector<10x10xf32> to vector<10xf32>
    %177 = vector.shape_cast %176 : vector<10xf32> to vector<10x1xf32>
    %178 = vector.broadcast %177 : vector<10x1xf32> to vector<10x10xf32>
    %179 = arith.subf %175, %178 : vector<10x10xf32>
    %180 = math.exp %179 : vector<10x10xf32>
    %cst_149 = arith.constant dense<0.000000e+00> : vector<10xf32>
    %181 = vector.multi_reduction <add>, %180, %cst_149 [1] : vector<10x10xf32> to vector<10xf32>
    %182 = vector.shape_cast %181 : vector<10xf32> to vector<10x1xf32>
    %183 = vector.broadcast %182 : vector<10x1xf32> to vector<10x10xf32>
    %184 = arith.divf %180, %183 : vector<10x10xf32>
    %cst_150 = arith.constant dense<0.000000e+00> : vector<10x8xf32>
    %185 = tpu.matmul %184, %171, %cst_150 {dimension_numbers = #tpu.dot_dimension_numbers<[1], [0], [0], [1], [0, 0, 1, 1], [], []>} : vector<10x10xf32>, vector<10x8xf32>, vector<10x8xf32> -> vector<10x8xf32>
    %cst_151 = arith.constant dense<0.000000e+00> : vector<10x32xf32>
    %186 = tpu.matmul %185, %89, %cst_151 {dimension_numbers = #tpu.dot_dimension_numbers<[1], [0], [0], [1], [0, 0, 1, 1], [], []>} : vector<10x8xf32>, vector<8x32xf32>, vector<10x32xf32> -> vector<10x32xf32>
    %187 = arith.addf %162, %186 : vector<10x32xf32>
    %cst_152 = arith.constant dense<0.000000e+00> : vector<10x8xf32>
    %188 = tpu.matmul %111, %43, %cst_152 {dimension_numbers = #tpu.dot_dimension_numbers<[1], [0], [0], [1], [0, 0, 1, 1], [], []>} : vector<10x32xf32>, vector<32x8xf32>, vector<10x8xf32> -> vector<10x8xf32>
    %189 = vector.broadcast %67 : vector<1x8xf32> to vector<10x8xf32>
    %190 = arith.addf %188, %189 : vector<10x8xf32>
    %cst_153 = arith.constant dense<0.000000e+00> : vector<10x8xf32>
    %191 = tpu.matmul %111, %51, %cst_153 {dimension_numbers = #tpu.dot_dimension_numbers<[1], [0], [0], [1], [0, 0, 1, 1], [], []>} : vector<10x32xf32>, vector<32x8xf32>, vector<10x8xf32> -> vector<10x8xf32>
    %192 = vector.broadcast %75 : vector<1x8xf32> to vector<10x8xf32>
    %193 = arith.addf %191, %192 : vector<10x8xf32>
    %cst_154 = arith.constant dense<0.000000e+00> : vector<10x8xf32>
    %194 = tpu.matmul %111, %59, %cst_154 {dimension_numbers = #tpu.dot_dimension_numbers<[1], [0], [0], [1], [0, 0, 1, 1], [], []>} : vector<10x32xf32>, vector<32x8xf32>, vector<10x8xf32> -> vector<10x8xf32>
    %195 = vector.broadcast %83 : vector<1x8xf32> to vector<10x8xf32>
    %196 = arith.addf %194, %195 : vector<10x8xf32>
    %cst_155 = arith.constant dense<0.000000e+00> : vector<10x10xf32>
    %197 = tpu.matmul %190, %193, %cst_155 {dimension_numbers = #tpu.dot_dimension_numbers<[1], [1], [0], [0], [0, 0, 1, 0], [], []>} : vector<10x8xf32>, vector<10x8xf32>, vector<10x10xf32> -> vector<10x10xf32>
    %cst_156 = arith.constant 0.353553385 : f32
    %198 = vector.broadcast %cst_156 : f32 to vector<10x10xf32>
    %199 = arith.mulf %197, %198 : vector<10x10xf32>
    %200 = arith.addf %199, %26 : vector<10x10xf32>
    %cst_157 = arith.constant dense<0xFF800000> : vector<10xf32>
    %201 = vector.multi_reduction <maximumf>, %200, %cst_157 [1] : vector<10x10xf32> to vector<10xf32>
    %202 = vector.shape_cast %201 : vector<10xf32> to vector<10x1xf32>
    %203 = vector.broadcast %202 : vector<10x1xf32> to vector<10x10xf32>
    %204 = arith.subf %200, %203 : vector<10x10xf32>
    %205 = math.exp %204 : vector<10x10xf32>
    %cst_158 = arith.constant dense<0.000000e+00> : vector<10xf32>
    %206 = vector.multi_reduction <add>, %205, %cst_158 [1] : vector<10x10xf32> to vector<10xf32>
    %207 = vector.shape_cast %206 : vector<10xf32> to vector<10x1xf32>
    %208 = vector.broadcast %207 : vector<10x1xf32> to vector<10x10xf32>
    %209 = arith.divf %205, %208 : vector<10x10xf32>
    %cst_159 = arith.constant dense<0.000000e+00> : vector<10x8xf32>
    %210 = tpu.matmul %209, %196, %cst_159 {dimension_numbers = #tpu.dot_dimension_numbers<[1], [0], [0], [1], [0, 0, 1, 1], [], []>} : vector<10x10xf32>, vector<10x8xf32>, vector<10x8xf32> -> vector<10x8xf32>
    %cst_160 = arith.constant dense<0.000000e+00> : vector<10x32xf32>
    %211 = tpu.matmul %210, %91, %cst_160 {dimension_numbers = #tpu.dot_dimension_numbers<[1], [0], [0], [1], [0, 0, 1, 1], [], []>} : vector<10x8xf32>, vector<8x32xf32>, vector<10x32xf32> -> vector<10x32xf32>
    %212 = arith.addf %187, %211 : vector<10x32xf32>
    %213 = arith.addf %25, %212 : vector<10x32xf32>
    %214 = vector.broadcast %31 : vector<1x32xf32> to vector<10x32xf32>
    %215 = arith.addf %213, %214 : vector<10x32xf32>
    %cst_161 = arith.constant dense<0.000000e+00> : vector<10xf32>
    %216 = vector.multi_reduction <add>, %215, %cst_161 [1] : vector<10x32xf32> to vector<10xf32>
    %217 = vector.shape_cast %216 : vector<10xf32> to vector<10x1xf32>
    %cst_162 = arith.constant 3.200000e+01 : f32
    %218 = vector.broadcast %cst_162 : f32 to vector<10x1xf32>
    %219 = arith.divf %217, %218 : vector<10x1xf32>
    %220 = vector.broadcast %219 : vector<10x1xf32> to vector<10x32xf32>
    %221 = arith.subf %215, %220 : vector<10x32xf32>
    %222 = arith.mulf %221, %221 : vector<10x32xf32>
    %cst_163 = arith.constant dense<0.000000e+00> : vector<10xf32>
    %223 = vector.multi_reduction <add>, %222, %cst_163 [1] : vector<10x32xf32> to vector<10xf32>
    %224 = vector.shape_cast %223 : vector<10xf32> to vector<10x1xf32>
    %cst_164 = arith.constant 0.0322580636 : f32
    %225 = vector.broadcast %cst_164 : f32 to vector<10x1xf32>
    %226 = arith.mulf %224, %225 : vector<10x1xf32>
    %227 = vector.broadcast %29 : vector<1x32xf32> to vector<10x32xf32>
    %228 = arith.mulf %227, %221 : vector<10x32xf32>
    %229 = math.sqrt %226 : vector<10x1xf32>
    %cst_165 = arith.constant 9.99999997E-7 : f32
    %230 = vector.broadcast %cst_165 : f32 to vector<10x1xf32>
    %231 = arith.addf %229, %230 : vector<10x1xf32>
    %232 = vector.broadcast %231 : vector<10x1xf32> to vector<10x32xf32>
    %233 = arith.divf %228, %232 : vector<10x32xf32>
    %234 = vector.broadcast %30 : vector<1x32xf32> to vector<10x32xf32>
    %235 = arith.addf %233, %234 : vector<10x32xf32>
    %cst_166 = arith.constant dense<0.000000e+00> : vector<10x128xf32>
    %236 = tpu.matmul %235, %33, %cst_166 {dimension_numbers = #tpu.dot_dimension_numbers<[1], [0], [0], [1], [0, 0, 1, 1], [], []>} : vector<10x32xf32>, vector<32x128xf32>, vector<10x128xf32> -> vector<10x128xf32>
    %237 = vector.broadcast %34 : vector<1x128xf32> to vector<10x128xf32>
    %238 = arith.addf %236, %237 : vector<10x128xf32>
    %cst_167 = arith.constant 5.000000e-01 : f32
    %239 = vector.broadcast %cst_167 : f32 to vector<10x128xf32>
    %240 = arith.mulf %239, %238 : vector<10x128xf32>
    %cst_168 = arith.constant 0.707106769 : f32
    %241 = vector.broadcast %cst_168 : f32 to vector<10x128xf32>
    %242 = arith.mulf %238, %241 : vector<10x128xf32>
    %243 = math.erf %242 : vector<10x128xf32>
    %cst_169 = arith.constant 1.000000e+00 : f32
    %244 = vector.broadcast %cst_169 : f32 to vector<10x128xf32>
    %245 = arith.addf %244, %243 : vector<10x128xf32>
    %246 = arith.mulf %240, %245 : vector<10x128xf32>
    %cst_170 = arith.constant dense<0.000000e+00> : vector<10x32xf32>
    %247 = tpu.matmul %246, %35, %cst_170 {dimension_numbers = #tpu.dot_dimension_numbers<[1], [0], [0], [1], [0, 0, 1, 1], [], []>} : vector<10x128xf32>, vector<128x32xf32>, vector<10x32xf32> -> vector<10x32xf32>
    %248 = arith.addf %215, %247 : vector<10x32xf32>
    %249 = vector.broadcast %32 : vector<1x32xf32> to vector<10x32xf32>
    %250 = arith.addf %248, %249 : vector<10x32xf32>
    %cst_171 = arith.constant dense<0.000000e+00> : vector<10xf32>
    %251 = vector.multi_reduction <add>, %250, %cst_171 [1] : vector<10x32xf32> to vector<10xf32>
    %252 = vector.shape_cast %251 : vector<10xf32> to vector<10x1xf32>
    %cst_172 = arith.constant 3.200000e+01 : f32
    %253 = vector.broadcast %cst_172 : f32 to vector<10x1xf32>
    %254 = arith.divf %252, %253 : vector<10x1xf32>
    %255 = vector.broadcast %254 : vector<10x1xf32> to vector<10x32xf32>
    %256 = arith.subf %250, %255 : vector<10x32xf32>
    %257 = arith.mulf %256, %256 : vector<10x32xf32>
    %cst_173 = arith.constant dense<0.000000e+00> : vector<10xf32>
    %258 = vector.multi_reduction <add>, %257, %cst_173 [1] : vector<10x32xf32> to vector<10xf32>
    %259 = vector.shape_cast %258 : vector<10xf32> to vector<10x1xf32>
    %cst_174 = arith.constant 0.0322580636 : f32
    %260 = vector.broadcast %cst_174 : f32 to vector<10x1xf32>
    %261 = arith.mulf %259, %260 : vector<10x1xf32>
    %262 = vector.broadcast %27 : vector<1x32xf32> to vector<10x32xf32>
    %263 = arith.mulf %262, %256 : vector<10x32xf32>
    %264 = math.sqrt %261 : vector<10x1xf32>
    %cst_175 = arith.constant 9.99999997E-7 : f32
    %265 = vector.broadcast %cst_175 : f32 to vector<10x1xf32>
    %266 = arith.addf %264, %265 : vector<10x1xf32>
    %267 = vector.broadcast %266 : vector<10x1xf32> to vector<10x32xf32>
    %268 = arith.divf %263, %267 : vector<10x32xf32>
    %269 = vector.broadcast %28 : vector<1x32xf32> to vector<10x32xf32>
    %270 = arith.addf %268, %269 : vector<10x32xf32>
    %cst_176 = arith.constant 0.000000e+00 : f32
    %271 = vector.broadcast %cst_176 : f32 to vector<10x32xf32>
    %cst_177 = arith.constant dense<0.000000e+00> : vector<10x8xf32>
    %272 = tpu.matmul %270, %37, %cst_177 {dimension_numbers = #tpu.dot_dimension_numbers<[1], [0], [0], [1], [0, 0, 1, 1], [], []>} : vector<10x32xf32>, vector<32x8xf32>, vector<10x8xf32> -> vector<10x8xf32>
    %273 = vector.broadcast %61 : vector<1x8xf32> to vector<10x8xf32>
    %274 = arith.addf %272, %273 : vector<10x8xf32>
    %cst_178 = arith.constant dense<0.000000e+00> : vector<10x8xf32>
    %275 = tpu.matmul %270, %45, %cst_178 {dimension_numbers = #tpu.dot_dimension_numbers<[1], [0], [0], [1], [0, 0, 1, 1], [], []>} : vector<10x32xf32>, vector<32x8xf32>, vector<10x8xf32> -> vector<10x8xf32>
    %276 = vector.broadcast %69 : vector<1x8xf32> to vector<10x8xf32>
    %277 = arith.addf %275, %276 : vector<10x8xf32>
    %cst_179 = arith.constant dense<0.000000e+00> : vector<10x8xf32>
    %278 = tpu.matmul %270, %53, %cst_179 {dimension_numbers = #tpu.dot_dimension_numbers<[1], [0], [0], [1], [0, 0, 1, 1], [], []>} : vector<10x32xf32>, vector<32x8xf32>, vector<10x8xf32> -> vector<10x8xf32>
    %279 = vector.broadcast %77 : vector<1x8xf32> to vector<10x8xf32>
    %280 = arith.addf %278, %279 : vector<10x8xf32>
    %cst_180 = arith.constant dense<0.000000e+00> : vector<10x10xf32>
    %281 = tpu.matmul %274, %277, %cst_180 {dimension_numbers = #tpu.dot_dimension_numbers<[1], [1], [0], [0], [0, 0, 1, 0], [], []>} : vector<10x8xf32>, vector<10x8xf32>, vector<10x10xf32> -> vector<10x10xf32>
    %cst_181 = arith.constant 0.353553385 : f32
    %282 = vector.broadcast %cst_181 : f32 to vector<10x10xf32>
    %283 = arith.mulf %281, %282 : vector<10x10xf32>
    %284 = arith.addf %283, %26 : vector<10x10xf32>
    %cst_182 = arith.constant dense<0xFF800000> : vector<10xf32>
    %285 = vector.multi_reduction <maximumf>, %284, %cst_182 [1] : vector<10x10xf32> to vector<10xf32>
    %286 = vector.shape_cast %285 : vector<10xf32> to vector<10x1xf32>
    %287 = vector.broadcast %286 : vector<10x1xf32> to vector<10x10xf32>
    %288 = arith.subf %284, %287 : vector<10x10xf32>
    %289 = math.exp %288 : vector<10x10xf32>
    %cst_183 = arith.constant dense<0.000000e+00> : vector<10xf32>
    %290 = vector.multi_reduction <add>, %289, %cst_183 [1] : vector<10x10xf32> to vector<10xf32>
    %291 = vector.shape_cast %290 : vector<10xf32> to vector<10x1xf32>
    %292 = vector.broadcast %291 : vector<10x1xf32> to vector<10x10xf32>
    %293 = arith.divf %289, %292 : vector<10x10xf32>
    %cst_184 = arith.constant dense<0.000000e+00> : vector<10x8xf32>
    %294 = tpu.matmul %293, %280, %cst_184 {dimension_numbers = #tpu.dot_dimension_numbers<[1], [0], [0], [1], [0, 0, 1, 1], [], []>} : vector<10x10xf32>, vector<10x8xf32>, vector<10x8xf32> -> vector<10x8xf32>
    %cst_185 = arith.constant dense<0.000000e+00> : vector<10x32xf32>
    %295 = tpu.matmul %294, %85, %cst_185 {dimension_numbers = #tpu.dot_dimension_numbers<[1], [0], [0], [1], [0, 0, 1, 1], [], []>} : vector<10x8xf32>, vector<8x32xf32>, vector<10x32xf32> -> vector<10x32xf32>
    %296 = arith.addf %271, %295 : vector<10x32xf32>
    %cst_186 = arith.constant dense<0.000000e+00> : vector<10x8xf32>
    %297 = tpu.matmul %270, %39, %cst_186 {dimension_numbers = #tpu.dot_dimension_numbers<[1], [0], [0], [1], [0, 0, 1, 1], [], []>} : vector<10x32xf32>, vector<32x8xf32>, vector<10x8xf32> -> vector<10x8xf32>
    %298 = vector.broadcast %63 : vector<1x8xf32> to vector<10x8xf32>
    %299 = arith.addf %297, %298 : vector<10x8xf32>
    %cst_187 = arith.constant dense<0.000000e+00> : vector<10x8xf32>
    %300 = tpu.matmul %270, %47, %cst_187 {dimension_numbers = #tpu.dot_dimension_numbers<[1], [0], [0], [1], [0, 0, 1, 1], [], []>} : vector<10x32xf32>, vector<32x8xf32>, vector<10x8xf32> -> vector<10x8xf32>
    %301 = vector.broadcast %71 : vector<1x8xf32> to vector<10x8xf32>
    %302 = arith.addf %300, %301 : vector<10x8xf32>
    %cst_188 = arith.constant dense<0.000000e+00> : vector<10x8xf32>
    %303 = tpu.matmul %270, %55, %cst_188 {dimension_numbers = #tpu.dot_dimension_numbers<[1], [0], [0], [1], [0, 0, 1, 1], [], []>} : vector<10x32xf32>, vector<32x8xf32>, vector<10x8xf32> -> vector<10x8xf32>
    %304 = vector.broadcast %79 : vector<1x8xf32> to vector<10x8xf32>
    %305 = arith.addf %303, %304 : vector<10x8xf32>
    %cst_189 = arith.constant dense<0.000000e+00> : vector<10x10xf32>
    %306 = tpu.matmul %299, %302, %cst_189 {dimension_numbers = #tpu.dot_dimension_numbers<[1], [1], [0], [0], [0, 0, 1, 0], [], []>} : vector<10x8xf32>, vector<10x8xf32>, vector<10x10xf32> -> vector<10x10xf32>
    %cst_190 = arith.constant 0.353553385 : f32
    %307 = vector.broadcast %cst_190 : f32 to vector<10x10xf32>
    %308 = arith.mulf %306, %307 : vector<10x10xf32>
    %309 = arith.addf %308, %26 : vector<10x10xf32>
    %cst_191 = arith.constant dense<0xFF800000> : vector<10xf32>
    %310 = vector.multi_reduction <maximumf>, %309, %cst_191 [1] : vector<10x10xf32> to vector<10xf32>
    %311 = vector.shape_cast %310 : vector<10xf32> to vector<10x1xf32>
    %312 = vector.broadcast %311 : vector<10x1xf32> to vector<10x10xf32>
    %313 = arith.subf %309, %312 : vector<10x10xf32>
    %314 = math.exp %313 : vector<10x10xf32>
    %cst_192 = arith.constant dense<0.000000e+00> : vector<10xf32>
    %315 = vector.multi_reduction <add>, %314, %cst_192 [1] : vector<10x10xf32> to vector<10xf32>
    %316 = vector.shape_cast %315 : vector<10xf32> to vector<10x1xf32>
    %317 = vector.broadcast %316 : vector<10x1xf32> to vector<10x10xf32>
    %318 = arith.divf %314, %317 : vector<10x10xf32>
    %cst_193 = arith.constant dense<0.000000e+00> : vector<10x8xf32>
    %319 = tpu.matmul %318, %305, %cst_193 {dimension_numbers = #tpu.dot_dimension_numbers<[1], [0], [0], [1], [0, 0, 1, 1], [], []>} : vector<10x10xf32>, vector<10x8xf32>, vector<10x8xf32> -> vector<10x8xf32>
    %cst_194 = arith.constant dense<0.000000e+00> : vector<10x32xf32>
    %320 = tpu.matmul %319, %87, %cst_194 {dimension_numbers = #tpu.dot_dimension_numbers<[1], [0], [0], [1], [0, 0, 1, 1], [], []>} : vector<10x8xf32>, vector<8x32xf32>, vector<10x32xf32> -> vector<10x32xf32>
    %321 = arith.addf %296, %320 : vector<10x32xf32>
    %cst_195 = arith.constant dense<0.000000e+00> : vector<10x8xf32>
    %322 = tpu.matmul %270, %41, %cst_195 {dimension_numbers = #tpu.dot_dimension_numbers<[1], [0], [0], [1], [0, 0, 1, 1], [], []>} : vector<10x32xf32>, vector<32x8xf32>, vector<10x8xf32> -> vector<10x8xf32>
    %323 = vector.broadcast %65 : vector<1x8xf32> to vector<10x8xf32>
    %324 = arith.addf %322, %323 : vector<10x8xf32>
    %cst_196 = arith.constant dense<0.000000e+00> : vector<10x8xf32>
    %325 = tpu.matmul %270, %49, %cst_196 {dimension_numbers = #tpu.dot_dimension_numbers<[1], [0], [0], [1], [0, 0, 1, 1], [], []>} : vector<10x32xf32>, vector<32x8xf32>, vector<10x8xf32> -> vector<10x8xf32>
    %326 = vector.broadcast %73 : vector<1x8xf32> to vector<10x8xf32>
    %327 = arith.addf %325, %326 : vector<10x8xf32>
    %cst_197 = arith.constant dense<0.000000e+00> : vector<10x8xf32>
    %328 = tpu.matmul %270, %57, %cst_197 {dimension_numbers = #tpu.dot_dimension_numbers<[1], [0], [0], [1], [0, 0, 1, 1], [], []>} : vector<10x32xf32>, vector<32x8xf32>, vector<10x8xf32> -> vector<10x8xf32>
    %329 = vector.broadcast %81 : vector<1x8xf32> to vector<10x8xf32>
    %330 = arith.addf %328, %329 : vector<10x8xf32>
    %cst_198 = arith.constant dense<0.000000e+00> : vector<10x10xf32>
    %331 = tpu.matmul %324, %327, %cst_198 {dimension_numbers = #tpu.dot_dimension_numbers<[1], [1], [0], [0], [0, 0, 1, 0], [], []>} : vector<10x8xf32>, vector<10x8xf32>, vector<10x10xf32> -> vector<10x10xf32>
    %cst_199 = arith.constant 0.353553385 : f32
    %332 = vector.broadcast %cst_199 : f32 to vector<10x10xf32>
    %333 = arith.mulf %331, %332 : vector<10x10xf32>
    %334 = arith.addf %333, %26 : vector<10x10xf32>
    %cst_200 = arith.constant dense<0xFF800000> : vector<10xf32>
    %335 = vector.multi_reduction <maximumf>, %334, %cst_200 [1] : vector<10x10xf32> to vector<10xf32>
    %336 = vector.shape_cast %335 : vector<10xf32> to vector<10x1xf32>
    %337 = vector.broadcast %336 : vector<10x1xf32> to vector<10x10xf32>
    %338 = arith.subf %334, %337 : vector<10x10xf32>
    %339 = math.exp %338 : vector<10x10xf32>
    %cst_201 = arith.constant dense<0.000000e+00> : vector<10xf32>
    %340 = vector.multi_reduction <add>, %339, %cst_201 [1] : vector<10x10xf32> to vector<10xf32>
    %341 = vector.shape_cast %340 : vector<10xf32> to vector<10x1xf32>
    %342 = vector.broadcast %341 : vector<10x1xf32> to vector<10x10xf32>
    %343 = arith.divf %339, %342 : vector<10x10xf32>
    %cst_202 = arith.constant dense<0.000000e+00> : vector<10x8xf32>
    %344 = tpu.matmul %343, %330, %cst_202 {dimension_numbers = #tpu.dot_dimension_numbers<[1], [0], [0], [1], [0, 0, 1, 1], [], []>} : vector<10x10xf32>, vector<10x8xf32>, vector<10x8xf32> -> vector<10x8xf32>
    %cst_203 = arith.constant dense<0.000000e+00> : vector<10x32xf32>
    %345 = tpu.matmul %344, %89, %cst_203 {dimension_numbers = #tpu.dot_dimension_numbers<[1], [0], [0], [1], [0, 0, 1, 1], [], []>} : vector<10x8xf32>, vector<8x32xf32>, vector<10x32xf32> -> vector<10x32xf32>
    %346 = arith.addf %321, %345 : vector<10x32xf32>
    %cst_204 = arith.constant dense<0.000000e+00> : vector<10x8xf32>
    %347 = tpu.matmul %270, %43, %cst_204 {dimension_numbers = #tpu.dot_dimension_numbers<[1], [0], [0], [1], [0, 0, 1, 1], [], []>} : vector<10x32xf32>, vector<32x8xf32>, vector<10x8xf32> -> vector<10x8xf32>
    %348 = vector.broadcast %67 : vector<1x8xf32> to vector<10x8xf32>
    %349 = arith.addf %347, %348 : vector<10x8xf32>
    %cst_205 = arith.constant dense<0.000000e+00> : vector<10x8xf32>
    %350 = tpu.matmul %270, %51, %cst_205 {dimension_numbers = #tpu.dot_dimension_numbers<[1], [0], [0], [1], [0, 0, 1, 1], [], []>} : vector<10x32xf32>, vector<32x8xf32>, vector<10x8xf32> -> vector<10x8xf32>
    %351 = vector.broadcast %75 : vector<1x8xf32> to vector<10x8xf32>
    %352 = arith.addf %350, %351 : vector<10x8xf32>
    %cst_206 = arith.constant dense<0.000000e+00> : vector<10x8xf32>
    %353 = tpu.matmul %270, %59, %cst_206 {dimension_numbers = #tpu.dot_dimension_numbers<[1], [0], [0], [1], [0, 0, 1, 1], [], []>} : vector<10x32xf32>, vector<32x8xf32>, vector<10x8xf32> -> vector<10x8xf32>
    %354 = vector.broadcast %83 : vector<1x8xf32> to vector<10x8xf32>
    %355 = arith.addf %353, %354 : vector<10x8xf32>
    %cst_207 = arith.constant dense<0.000000e+00> : vector<10x10xf32>
    %356 = tpu.matmul %349, %352, %cst_207 {dimension_numbers = #tpu.dot_dimension_numbers<[1], [1], [0], [0], [0, 0, 1, 0], [], []>} : vector<10x8xf32>, vector<10x8xf32>, vector<10x10xf32> -> vector<10x10xf32>
    %cst_208 = arith.constant 0.353553385 : f32
    %357 = vector.broadcast %cst_208 : f32 to vector<10x10xf32>
    %358 = arith.mulf %356, %357 : vector<10x10xf32>
    %359 = arith.addf %358, %26 : vector<10x10xf32>
    %cst_209 = arith.constant dense<0xFF800000> : vector<10xf32>
    %360 = vector.multi_reduction <maximumf>, %359, %cst_209 [1] : vector<10x10xf32> to vector<10xf32>
    %361 = vector.shape_cast %360 : vector<10xf32> to vector<10x1xf32>
    %362 = vector.broadcast %361 : vector<10x1xf32> to vector<10x10xf32>
    %363 = arith.subf %359, %362 : vector<10x10xf32>
    %364 = math.exp %363 : vector<10x10xf32>
    %cst_210 = arith.constant dense<0.000000e+00> : vector<10xf32>
    %365 = vector.multi_reduction <add>, %364, %cst_210 [1] : vector<10x10xf32> to vector<10xf32>
    %366 = vector.shape_cast %365 : vector<10xf32> to vector<10x1xf32>
    %367 = vector.broadcast %366 : vector<10x1xf32> to vector<10x10xf32>
    %368 = arith.divf %364, %367 : vector<10x10xf32>
    %cst_211 = arith.constant dense<0.000000e+00> : vector<10x8xf32>
    %369 = tpu.matmul %368, %355, %cst_211 {dimension_numbers = #tpu.dot_dimension_numbers<[1], [0], [0], [1], [0, 0, 1, 1], [], []>} : vector<10x10xf32>, vector<10x8xf32>, vector<10x8xf32> -> vector<10x8xf32>
    %cst_212 = arith.constant dense<0.000000e+00> : vector<10x32xf32>
    %370 = tpu.matmul %369, %91, %cst_212 {dimension_numbers = #tpu.dot_dimension_numbers<[1], [0], [0], [1], [0, 0, 1, 1], [], []>} : vector<10x8xf32>, vector<8x32xf32>, vector<10x32xf32> -> vector<10x32xf32>
    %371 = arith.addf %346, %370 : vector<10x32xf32>
    %372 = arith.addf %250, %371 : vector<10x32xf32>
    %373 = vector.broadcast %31 : vector<1x32xf32> to vector<10x32xf32>
    %374 = arith.addf %372, %373 : vector<10x32xf32>
    %cst_213 = arith.constant dense<0.000000e+00> : vector<10xf32>
    %375 = vector.multi_reduction <add>, %374, %cst_213 [1] : vector<10x32xf32> to vector<10xf32>
    %376 = vector.shape_cast %375 : vector<10xf32> to vector<10x1xf32>
    %cst_214 = arith.constant 3.200000e+01 : f32
    %377 = vector.broadcast %cst_214 : f32 to vector<10x1xf32>
    %378 = arith.divf %376, %377 : vector<10x1xf32>
    %379 = vector.broadcast %378 : vector<10x1xf32> to vector<10x32xf32>
    %380 = arith.subf %374, %379 : vector<10x32xf32>
    %381 = arith.mulf %380, %380 : vector<10x32xf32>
    %cst_215 = arith.constant dense<0.000000e+00> : vector<10xf32>
    %382 = vector.multi_reduction <add>, %381, %cst_215 [1] : vector<10x32xf32> to vector<10xf32>
    %383 = vector.shape_cast %382 : vector<10xf32> to vector<10x1xf32>
    %cst_216 = arith.constant 0.0322580636 : f32
    %384 = vector.broadcast %cst_216 : f32 to vector<10x1xf32>
    %385 = arith.mulf %383, %384 : vector<10x1xf32>
    %386 = vector.broadcast %29 : vector<1x32xf32> to vector<10x32xf32>
    %387 = arith.mulf %386, %380 : vector<10x32xf32>
    %388 = math.sqrt %385 : vector<10x1xf32>
    %cst_217 = arith.constant 9.99999997E-7 : f32
    %389 = vector.broadcast %cst_217 : f32 to vector<10x1xf32>
    %390 = arith.addf %388, %389 : vector<10x1xf32>
    %391 = vector.broadcast %390 : vector<10x1xf32> to vector<10x32xf32>
    %392 = arith.divf %387, %391 : vector<10x32xf32>
    %393 = vector.broadcast %30 : vector<1x32xf32> to vector<10x32xf32>
    %394 = arith.addf %392, %393 : vector<10x32xf32>
    %cst_218 = arith.constant dense<0.000000e+00> : vector<10x128xf32>
    %395 = tpu.matmul %394, %33, %cst_218 {dimension_numbers = #tpu.dot_dimension_numbers<[1], [0], [0], [1], [0, 0, 1, 1], [], []>} : vector<10x32xf32>, vector<32x128xf32>, vector<10x128xf32> -> vector<10x128xf32>
    %396 = vector.broadcast %34 : vector<1x128xf32> to vector<10x128xf32>
    %397 = arith.addf %395, %396 : vector<10x128xf32>
    %cst_219 = arith.constant 5.000000e-01 : f32
    %398 = vector.broadcast %cst_219 : f32 to vector<10x128xf32>
    %399 = arith.mulf %398, %397 : vector<10x128xf32>
    %cst_220 = arith.constant 0.707106769 : f32
    %400 = vector.broadcast %cst_220 : f32 to vector<10x128xf32>
    %401 = arith.mulf %397, %400 : vector<10x128xf32>
    %402 = math.erf %401 : vector<10x128xf32>
    %cst_221 = arith.constant 1.000000e+00 : f32
    %403 = vector.broadcast %cst_221 : f32 to vector<10x128xf32>
    %404 = arith.addf %403, %402 : vector<10x128xf32>
    %405 = arith.mulf %399, %404 : vector<10x128xf32>
    %cst_222 = arith.constant dense<0.000000e+00> : vector<10x32xf32>
    %406 = tpu.matmul %405, %35, %cst_222 {dimension_numbers = #tpu.dot_dimension_numbers<[1], [0], [0], [1], [0, 0, 1, 1], [], []>} : vector<10x128xf32>, vector<128x32xf32>, vector<10x32xf32> -> vector<10x32xf32>
    %407 = arith.addf %374, %406 : vector<10x32xf32>
    %408 = vector.broadcast %32 : vector<1x32xf32> to vector<10x32xf32>
    %409 = arith.addf %407, %408 : vector<10x32xf32>
    %c13 = arith.constant 13 : index
    %c0_223 = arith.constant 0 : index
    %410 = vector.load %arg4[%c13, %c0_223] : memref<15x32xf32, #tpu.memory_space<vmem>>, vector<1x32xf32>
    %c14 = arith.constant 14 : index
    %c0_224 = arith.constant 0 : index
    %411 = vector.load %arg4[%c14, %c0_224] : memref<15x32xf32, #tpu.memory_space<vmem>>, vector<1x32xf32>
    %cst_225 = arith.constant dense<0.000000e+00> : vector<10xf32>
    %412 = vector.multi_reduction <add>, %409, %cst_225 [1] : vector<10x32xf32> to vector<10xf32>
    %413 = vector.shape_cast %412 : vector<10xf32> to vector<10x1xf32>
    %cst_226 = arith.constant 3.200000e+01 : f32
    %414 = vector.broadcast %cst_226 : f32 to vector<10x1xf32>
    %415 = arith.divf %413, %414 : vector<10x1xf32>
    %416 = vector.broadcast %415 : vector<10x1xf32> to vector<10x32xf32>
    %417 = arith.subf %409, %416 : vector<10x32xf32>
    %418 = arith.mulf %417, %417 : vector<10x32xf32>
    %cst_227 = arith.constant dense<0.000000e+00> : vector<10xf32>
    %419 = vector.multi_reduction <add>, %418, %cst_227 [1] : vector<10x32xf32> to vector<10xf32>
    %420 = vector.shape_cast %419 : vector<10xf32> to vector<10x1xf32>
    %cst_228 = arith.constant 3.200000e+01 : f32
    %421 = vector.broadcast %cst_228 : f32 to vector<10x1xf32>
    %422 = arith.divf %420, %421 : vector<10x1xf32>
    %423 = vector.broadcast %415 : vector<10x1xf32> to vector<10x32xf32>
    %424 = arith.subf %409, %423 : vector<10x32xf32>
    %cst_229 = arith.constant 9.99999974E-6 : f32
    %425 = vector.broadcast %cst_229 : f32 to vector<10x1xf32>
    %426 = arith.addf %422, %425 : vector<10x1xf32>
    %427 = math.sqrt %426 : vector<10x1xf32>
    %428 = vector.broadcast %427 : vector<10x1xf32> to vector<10x32xf32>
    %429 = arith.divf %424, %428 : vector<10x32xf32>
    %430 = vector.broadcast %410 : vector<1x32xf32> to vector<10x32xf32>
    %431 = arith.mulf %429, %430 : vector<10x32xf32>
    %432 = vector.broadcast %411 : vector<1x32xf32> to vector<10x32xf32>
    %433 = arith.addf %431, %432 : vector<10x32xf32>
    %c0_230 = arith.constant 0 : index
    %c0_231 = arith.constant 0 : index
    %434 = vector.load %arg12[%c0_230, %c0_231] : memref<32x2xf32, #tpu.memory_space<vmem>>, vector<32x2xf32>
    %cst_232 = arith.constant dense<0.000000e+00> : vector<10x2xf32>
    %435 = tpu.matmul %433, %434, %cst_232 {dimension_numbers = #tpu.dot_dimension_numbers<[1], [0], [0], [1], [0, 0, 1, 1], [], []>} : vector<10x32xf32>, vector<32x2xf32>, vector<10x2xf32> -> vector<10x2xf32>
    %c0_233 = arith.constant 0 : index
    %c0_234 = arith.constant 0 : index
    %436 = vector.load %arg13[%c0_233, %c0_234] : memref<1x2xf32, #tpu.memory_space<vmem>>, vector<1x2xf32>
    %437 = vector.broadcast %436 : vector<1x2xf32> to vector<10x2xf32>
    %438 = arith.addf %435, %437 : vector<10x2xf32>
    %439 = vector.extract_strided_slice %438 {offsets = [0, 0], sizes = [1, 2], strides = [1, 1]} : vector<10x2xf32> to vector<1x2xf32>
    %c0_235 = arith.constant 0 : index
    %c0_236 = arith.constant 0 : index
    %440 = vector.load %arg14[%c0_235, %c0_236] : memref<2x2xf32, #tpu.memory_space<vmem>>, vector<1x2xf32>
    tpu.vector_store %arg14[%c0_235, %c0_236], %439 {strides = array<i32>} : memref<2x2xf32, #tpu.memory_space<vmem>>, vector<1x2xf32>,
    %441 = vector.extract_strided_slice %438 {offsets = [5, 0], sizes = [1, 2], strides = [1, 1]} : vector<10x2xf32> to vector<1x2xf32>
    %c1_237 = arith.constant 1 : index
    %c0_238 = arith.constant 0 : index
    %442 = vector.load %arg14[%c1_237, %c0_238] : memref<2x2xf32, #tpu.memory_space<vmem>>, vector<1x2xf32>
    tpu.vector_store %arg14[%c1_237, %c0_238], %441 {strides = array<i32>} : memref<2x2xf32, #tpu.memory_space<vmem>>, vector<1x2xf32>,
    return
  }
}

</mosaic_0001>

<bundles_post_ra>
// kernel: vit_hybrid_forward.1
= control target key start
LH: loop header
LB: loop body
LE: loop exit
PB: predicated region body
PF: predicated region fallthrough
CT: control target
= control target key end

     0   :  { %s8164_s0 = inlined_call_operand.vmem [shape: f32[8,768], index: 0, kind: input, shape index: {}]   ;;  %s8165_s1 = inlined_call_operand.vmem [shape: f32[768,8], index: 1, kind: input, shape index: {}]   ;;  %s8166_s2 = inlined_call_operand.vmem [shape: f32[1,8], index: 2, kind: input, shape index: {}]   ;;  %s8167_s3 = inlined_call_operand.vmem [shape: f32[8,32], index: 3, kind: input, shape index: {}]   ;;  %s8168_s4 = inlined_call_operand.vmem [shape: f32[15,32], index: 4, kind: input, shape index: {}]   ;;  %s8169_s5 = inlined_call_operand.vmem [shape: f32[10,10], index: 5, kind: input, shape index: {}]   ;;  %s8170_s6 = inlined_call_operand.vmem [shape: f32[12,32,8], index: 6, kind: input, shape index: {}]   ;;  %s8171_s7 = inlined_call_operand.vmem [shape: f32[12,1,8], index: 7, kind: input, shape index: {}]   ;;  %s8172_s8 = inlined_call_operand.vmem [shape: f32[4,8,32], index: 8, kind: input, shape index: {}]   ;;  %s8173_s9 = inlined_call_operand.vmem [shape: f32[32,128], index: 9, kind: input, shape index: {}]   ;;  %s8174_s10 = inlined_call_operand.vmem [shape: f32[1,128], index: 10, kind: input, shape index: {}]   ;;  %s8175_s11 = inlined_call_operand.vmem [shape: f32[128,32], index: 11, kind: input, shape index: {}]   ;;  %s8176_s12 = inlined_call_operand.vmem [shape: f32[32,2], index: 12, kind: input, shape index: {}]   ;;  %s8177_s13 = inlined_call_operand.vmem [shape: f32[1,2], index: 13, kind: input, shape index: {}]   ;;  %s8178_s14 = inlined_call_operand.hbm [shape: f32[2,2], index: 14, kind: output, shape index: {}]  }
   0x1   :  { %v85_v0 = vld [vmem:[%s8165_s1 + $0xf8] sm:$0xff]  ;;  %v84_v2 = vld [vmem:[%s8165_s1 + $0xf0] sm:$0xff]  ;;  %v83_v6 = vld [vmem:[%s8165_s1 + $0xe8] sm:$0xff] }
   0x2   :  { %v69_v1 = vld [vmem:[%s8165_s1 + $0x78] sm:$0xff]  ;;  %5632 = vmatprep.subr.mxu0 %v85_v0  ;;  %v68_v4 = vld [vmem:[%s8165_s1 + $0x70] sm:$0xff]  ;;  %v67_v8 = vld [vmem:[%s8165_s1 + $0x68] sm:$0xff] }
   0x3   :  { %v117_v3 = vld [vmem:[%s8165_s1 + $0x1f8] sm:$0xff]  ;;  %5633 = vmatpush3.msra.mxu0 %v69_v1  ;;  %v116_v7 = vld [vmem:[%s8165_s1 + $0x1f0] sm:$0xff]  ;;  %v115_v10 = vld [vmem:[%s8165_s1 + $0x1e8] sm:$0xff] }
   0x4   :  { %v101_v5 = vld [vmem:[%s8165_s1 + $0x178] sm:$0xff]  ;;  %5667 = vmatprep.subr.mxu1 %v117_v3  ;;  %5634 = vmatprep.subr.mxu0 %v84_v2  ;;  %v100_v9 = vld [vmem:[%s8165_s1 + $0x170] sm:$0xff]  ;;  %v82_v11 = vld [vmem:[%s8165_s1 + $0xe0] sm:$0xff] }
   0x5   :  { %5668 = vmatpush3.msra.mxu1 %v101_v5  ;;  %5635 = vmatpush3.msra.mxu0 %v68_v4  ;;  %v99_v12 = vld [vmem:[%s8165_s1 + $0x168] sm:$0xff]  ;;  %v66_v13 = vld [vmem:[%s8165_s1 + $0x60] sm:$0xff]  ;;  %v81_v15 = vld [vmem:[%s8165_s1 + $0xd8] sm:$0xff] }
   0x6   :  { %5669 = vmatprep.subr.mxu1 %v116_v7  ;;  %5636 = vmatprep.subr.mxu0 %v83_v6  ;;  %v114_v14 = vld [vmem:[%s8165_s1 + $0x1e0] sm:$0xff]  ;;  %v65_v17 = vld [vmem:[%s8165_s1 + $0x58] sm:$0xff]  ;;  %v80_v19 = vld [vmem:[%s8165_s1 + $0xd0] sm:$0xff] }
   0x7   :  { %5670 = vmatpush3.msra.mxu1 %v100_v9  ;;  %5637 = vmatpush3.msra.mxu0 %v67_v8  ;;  %v98_v16 = vld [vmem:[%s8165_s1 + $0x160] sm:$0xff]  ;;  %v113_v18 = vld [vmem:[%s8165_s1 + $0x1d8] sm:$0xff]  ;;  %v64_v21 = vld [vmem:[%s8165_s1 + $0x50] sm:$0xff] }
   0x8   :  { %5671 = vmatprep.subr.mxu1 %v115_v10  ;;  %5638 = vmatprep.subr.mxu0 %v82_v11  ;;  %v97_v20 = vld [vmem:[%s8165_s1 + $0x158] sm:$0xff]  ;;  %v112_v22 = vld [vmem:[%s8165_s1 + $0x1d0] sm:$0xff]  ;;  %v79_v23 = vld [vmem:[%s8165_s1 + $0xc8] sm:$0xff] }
   0x9   :  { %5672 = vmatpush3.msra.mxu1 %v99_v12  ;;  %5639 = vmatpush3.msra.mxu0 %v66_v13  ;;  %v96_v24 = vld [vmem:[%s8165_s1 + $0x150] sm:$0xff]  ;;  %v63_v25 = vld [vmem:[%s8165_s1 + $0x48] sm:$0xff]  ;;  %v78_v27 = vld [vmem:[%s8165_s1 + $0xc0] sm:$0xff] }
   0xa   :  { %5673 = vmatprep.subr.mxu1 %v114_v14  ;;  %5640 = vmatprep.subr.mxu0 %v81_v15  ;;  %v111_v26 = vld [vmem:[%s8165_s1 + $0x1c8] sm:$0xff]  ;;  %v62_v29 = vld [vmem:[%s8165_s1 + $0x40] sm:$0xff]  ;;  %v77_v31 = vld [vmem:[%s8165_s1 + $0xb8] sm:$0xff] }
   0xb   :  { %5674 = vmatpush3.msra.mxu1 %v98_v16  ;;  %5641 = vmatpush3.msra.mxu0 %v65_v17  ;;  %v95_v28 = vld [vmem:[%s8165_s1 + $0x148] sm:$0xff]  ;;  %v110_v30 = vld [vmem:[%s8165_s1 + $0x1c0] sm:$0xff]  ;;  %v61_v33 = vld [vmem:[%s8165_s1 + $0x38] sm:$0xff] }
   0xc   :  { %5675 = vmatprep.subr.mxu1 %v113_v18  ;;  %5642 = vmatprep.subr.mxu0 %v80_v19  ;;  %v94_v32 = vld [vmem:[%s8165_s1 + $0x140] sm:$0xff]  ;;  %v109_v34 = vld [vmem:[%s8165_s1 + $0x1b8] sm:$0xff]  ;;  %v76_v35 = vld [vmem:[%s8165_s1 + $0xb0] sm:$0xff] }
   0xd   :  { %5676 = vmatpush3.msra.mxu1 %v97_v20  ;;  %5643 = vmatpush3.msra.mxu0 %v64_v21  ;;  %v93_v36 = vld [vmem:[%s8165_s1 + $0x138] sm:$0xff]  ;;  %v60_v37 = vld [vmem:[%s8165_s1 + $0x30] sm:$0xff]  ;;  %v75_v39 = vld [vmem:[%s8165_s1 + $0xa8] sm:$0xff] }
   0xe   :  { %5677 = vmatprep.subr.mxu1 %v112_v22  ;;  %5644 = vmatprep.subr.mxu0 %v79_v23  ;;  %v108_v38 = vld [vmem:[%s8165_s1 + $0x1b0] sm:$0xff]  ;;  %v59_v41 = vld [vmem:[%s8165_s1 + $0x28] sm:$0xff]  ;;  %v74_v43 = vld [vmem:[%s8165_s1 + $0xa0] sm:$0xff] }
   0xf   :  { %5678 = vmatpush3.msra.mxu1 %v96_v24  ;;  %5645 = vmatpush3.msra.mxu0 %v63_v25  ;;  %v92_v40 = vld [vmem:[%s8165_s1 + $0x130] sm:$0xff]  ;;  %v107_v42 = vld [vmem:[%s8165_s1 + $0x1a8] sm:$0xff]  ;;  %v58_v45 = vld [vmem:[%s8165_s1 + $0x20] sm:$0xff] }
  0x10   :  { %5679 = vmatprep.subr.mxu1 %v111_v26  ;;  %5646 = vmatprep.subr.mxu0 %v78_v27  ;;  %v91_v44 = vld [vmem:[%s8165_s1 + $0x128] sm:$0xff]  ;;  %v106_v46 = vld [vmem:[%s8165_s1 + $0x1a0] sm:$0xff]  ;;  %v73_v47 = vld [vmem:[%s8165_s1 + $0x98] sm:$0xff] }
  0x11   :  { %5680 = vmatpush3.msra.mxu1 %v95_v28  ;;  %5647 = vmatpush3.msra.mxu0 %v62_v29  ;;  %v90_v48 = vld [vmem:[%s8165_s1 + $0x120] sm:$0xff]  ;;  %v57_v49 = vld [vmem:[%s8165_s1 + $0x18] sm:$0xff]  ;;  %v72_v51 = vld [vmem:[%s8165_s1 + $0x90] sm:$0xff] }
  0x12   :  { %5681 = vmatprep.subr.mxu1 %v110_v30  ;;  %5648 = vmatprep.subr.mxu0 %v77_v31  ;;  %v105_v50 = vld [vmem:[%s8165_s1 + $0x198] sm:$0xff]  ;;  %v56_v53 = vld [vmem:[%s8165_s1 + $0x10] sm:$0xff]  ;;  %v71_v55 = vld [vmem:[%s8165_s1 + $0x88] sm:$0xff] }
  0x13   :  { %5682 = vmatpush3.msra.mxu1 %v94_v32  ;;  %5649 = vmatpush3.msra.mxu0 %v61_v33  ;;  %v89_v52 = vld [vmem:[%s8165_s1 + $0x118] sm:$0xff]  ;;  %v104_v54 = vld [vmem:[%s8165_s1 + $0x190] sm:$0xff]  ;;  %v55_v57 = vld [vmem:[%s8165_s1 + $0x8] sm:$0xff] }
  0x14   :  { %5683 = vmatprep.subr.mxu1 %v109_v34  ;;  %5650 = vmatprep.subr.mxu0 %v76_v35  ;;  %v88_v56 = vld [vmem:[%s8165_s1 + $0x110] sm:$0xff]  ;;  %v103_v58 = vld [vmem:[%s8165_s1 + $0x188] sm:$0xff]  ;;  %v70_v59 = vld [vmem:[%s8165_s1 + $0x80] sm:$0xff] }
  0x15   :  { %5684 = vmatpush3.msra.mxu1 %v93_v36  ;;  %5651 = vmatpush3.msra.mxu0 %v60_v37  ;;  %v49_v60 = vld [vmem:[%s8164_s0 + $0x8] sm:$0xff]  ;;  %v54_v61 = vld [vmem:[%s8165_s1] sm:$0xff]  ;;  %v149_v1 = vld [vmem:[%s8165_s1 + $0x2f8] sm:$0xff] }
  0x16   :  { %5685 = vmatprep.subr.mxu1 %v108_v38  ;;  %5652 = vmatprep.subr.mxu0 %v75_v39  ;;  %v87_v62 = vld [vmem:[%s8165_s1 + $0x108] sm:$0xff]  ;;  %v48_v63 = vld [vmem:[%s8164_s0] sm:$0xff]  ;;  %v51_v3 = vld [vmem:[%s8164_s0 + $0x18] sm:$0xff] }
  0x17   :  { %5686 = vmatpush3.msra.mxu1 %v92_v40  ;;  %5653 = vmatpush3.msra.mxu0 %v59_v41  ;;  %v102_v0 = vld [vmem:[%s8165_s1 + $0x180] sm:$0xff]  ;;  %v133_v4 = vld [vmem:[%s8165_s1 + $0x278] sm:$0xff]  ;;  %v50_v5 = vld [vmem:[%s8164_s0 + $0x10] sm:$0xff] }
  0x18   :  { %5687 = vmatprep.subr.mxu1 %v107_v42  ;;  %5654 = vmatprep.subr.mxu0 %v74_v43  ;;  %v86_v2 = vld [vmem:[%s8165_s1 + $0x100] sm:$0xff]  ;;  %v148_v6 = vld [vmem:[%s8165_s1 + $0x2f0] sm:$0xff]  ;;  %v53_v8 = vld [vmem:[%s8164_s0 + $0x28] sm:$0xff] }
  0x19   :  { %5688 = vmatpush3.msra.mxu1 %v91_v44  ;;  %5655 = vmatpush3.msra.mxu0 %v58_v45  ;;  %v132_v7 = vld [vmem:[%s8165_s1 + $0x270] sm:$0xff] }
  0x1a   :  { %5689 = vmatprep.subr.mxu1 %v106_v46  ;;  %5656 = vmatprep.subr.mxu0 %v73_v47 }
  0x1b   :  { %5690 = vmatpush3.msra.mxu1 %v90_v48  ;;  %5657 = vmatpush3.msra.mxu0 %v57_v49 }
  0x1c   :  { %5691 = vmatprep.subr.mxu1 %v105_v50  ;;  %5658 = vmatprep.subr.mxu0 %v72_v51 }
  0x1d   :  { %5692 = vmatpush3.msra.mxu1 %v89_v52  ;;  %5659 = vmatpush3.msra.mxu0 %v56_v53 }
  0x1e   :  { %5693 = vmatprep.subr.mxu1 %v104_v54  ;;  %5660 = vmatprep.subr.mxu0 %v71_v55 }
  0x1f   :  { %5694 = vmatpush3.msra.mxu1 %v88_v56  ;;  %5661 = vmatpush3.msra.mxu0 %v55_v57 }
  0x20   :  { %5695 = vmatprep.subr.mxu1 %v103_v58  ;;  %5662 = vmatprep.subr.mxu0 %v70_v59 }
  0x21   :  { %221 = vmatprep.mubr.f32.mxu0 %v49_v60  ;;  %5663 = vmatpush3.msra.mxu0 %v54_v61 }
  0x22   :  { %5696 = vmatpush3.msra.mxu1 %v87_v62  ;;  %222 = vmatmul.mubr.f32.vlgmr.msra.gmra.mxu0 %v48_v63 }
  0x23   :  { %5697 = vmatprep.subr.mxu1 %v102_v0  ;;  %5702 = vmatprep.subr.mxu0 %v149_v1 }
  0x24   :  { %5698 = vmatpush3.msra.mxu1 %v86_v2 }
  0x25   :  { %19 = vsyncpa [#allocation4], 0  ;;  %291 = vmatprep.mubr.f32.mxu1 %v51_v3  ;;  %5703 = vmatpush3.msra.mxu0 %v133_v4  ;;  %v147_v9 = vld [vmem:[%s8165_s1 + $0x2e8] sm:$0xff]  ;;  %v146_v11 = vld [vmem:[%s8165_s1 + $0x2e0] sm:$0xff]  ;;  %v6766_v38 = vmov 0.0   ;;  %vm6767_vm0 = vmmov 0  }
  0x26   :  { %292 = vmatmul.mubr.f32.vlgmr.msra.gmra.mxu1 %v50_v5  ;;  %5704 = vmatprep.subr.mxu0 %v148_v6  ;;  %v131_v10 = vld [vmem:[%s8165_s1 + $0x268] sm:$0xff]  ;;  %v130_v12 = vld [vmem:[%s8165_s1 + $0x260] sm:$0xff]  ;;  %v145_v13 = vld [vmem:[%s8165_s1 + $0x2d8] sm:$0xff]  ;;  %vm374_vm1 = vcmask 64512   ;;  %vm452_vm2 = vcmask 253952   ;;  %vm455_vm3 = vcmask 257024  }
  0x27   :  { %5705 = vmatpush3.msra.mxu0 %v132_v7  ;;  %361 = vmatprep.mubr.f32.mxu0 %v53_v8  ;;  %v129_v14 = vld [vmem:[%s8165_s1 + $0x258] sm:$0xff]  ;;  %v144_v15 = vld [vmem:[%s8165_s1 + $0x2d0] sm:$0xff]  ;;  %v143_v17 = vld [vmem:[%s8165_s1 + $0x2c8] sm:$0xff]  ;;  %vm462_vm4 = vcmask 261124   ;;  %vm584_vm5 = vcmask 261120   ;;  %vm588_vm6 = vcmask 254976  }
  0x28   :  { %5706 = vmatprep.subr.mxu0 %v147_v9  ;;  %v128_v16 = vld [vmem:[%s8165_s1 + $0x250] sm:$0xff]  ;;  %v127_v18 = vld [vmem:[%s8165_s1 + $0x248] sm:$0xff]  ;;  %v142_v19 = vld [vmem:[%s8165_s1 + $0x2c0] sm:$0xff]  ;;  %6025 = vmatprep.subr.mxu1 %v6766_v38  ;;  %vm1009_vm11 = vcmask 1041408   ;;  %vm983_vm12 = vcmask 74752   ;;  %vm979_vm13 = vcmask 80896  }
  0x29   :  { %5707 = vmatpush3.msra.mxu0 %v131_v10  ;;  %v126_v20 = vld [vmem:[%s8165_s1 + $0x240] sm:$0xff]  ;;  %v141_v21 = vld [vmem:[%s8165_s1 + $0x2b8] sm:$0xff]  ;;  %v140_v23 = vld [vmem:[%s8165_s1 + $0x2b0] sm:$0xff]  ;;  %6027 = vmatprep.mubr.msk.f32.mxu1 %vm6767_vm0, %v6766_v38  ;;  %s6768_s21 = smov [#allocation3]  }
  0x2a   :  { %5708 = vmatprep.subr.mxu0 %v146_v11  ;;  %v125_v22 = vld [vmem:[%s8165_s1 + $0x238] sm:$0xff]  ;;  %v124_v24 = vld [vmem:[%s8165_s1 + $0x230] sm:$0xff]  ;;  %v139_v25 = vld [vmem:[%s8165_s1 + $0x2a8] sm:$0xff]  ;;  %s5415_s22 = sshll.u32 %s6768_s21, 4  ;;  %s5416_s22 = int_to_ptr.vmem [resolvable:$true] %s5415_s22 }
  0x2b   :  { %5709 = vmatpush3.msra.mxu0 %v130_v12  ;;  %v123_v26 = vld [vmem:[%s8165_s1 + $0x228] sm:$0xff]  ;;  %v138_v27 = vld [vmem:[%s8165_s1 + $0x2a0] sm:$0xff]  ;;  %v137_v29 = vld [vmem:[%s8165_s1 + $0x298] sm:$0xff]  ;;  %p6749_p1 = scmp.lt.s32.totalorder %s5416_s22, %s5416_s22 }
  0x2c   :  { %5710 = vmatprep.subr.mxu0 %v145_v13  ;;  %v122_v28 = vld [vmem:[%s8165_s1 + $0x220] sm:$0xff]  ;;  %v121_v30 = vld [vmem:[%s8165_s1 + $0x218] sm:$0xff]  ;;  %v136_v31 = vld [vmem:[%s8165_s1 + $0x290] sm:$0xff] }
  0x2d   :  { %5711 = vmatpush3.msra.mxu0 %v129_v14  ;;  %v120_v32 = vld [vmem:[%s8165_s1 + $0x210] sm:$0xff]  ;;  %v135_v33 = vld [vmem:[%s8165_s1 + $0x288] sm:$0xff]  ;;  %v134_v35 = vld [vmem:[%s8165_s1 + $0x280] sm:$0xff] }
  0x2e   :  { %5712 = vmatprep.subr.mxu0 %v144_v15  ;;  %v119_v34 = vld [vmem:[%s8165_s1 + $0x208] sm:$0xff]  ;;  %v118_v36 = vld [vmem:[%s8165_s1 + $0x200] sm:$0xff]  ;;  %v498_v15 = vld [vmem:[%s8170_s6 + $0x18] sm:$0xff] }
  0x2f   :  { %5713 = vmatpush3.msra.mxu0 %v128_v16  ;;  %v52_v37 = vld [vmem:[%s8164_s0 + $0x20] sm:$0xff]  ;;  %v497_v16 = vld [vmem:[%s8170_s6 + $0x10] sm:$0xff] }
  0x30   :  { %5714 = vmatprep.subr.mxu0 %v143_v17  ;;  %v368_v39 = vld [vmem:[%s8167_s3] sm:$0xff]  ;;  %v496_v17 = vld [vmem:[%s8170_s6 + $0x8] sm:$0xff] }
  0x31   :  { %5715 = vmatpush3.msra.mxu0 %v127_v18  ;;  %6026 = vmatpush3.msra.mxu1 %v368_v39  ;;  %v5423_v44 = vld [vmem:[%s8166_s2] ss:$0 sm:$0xff]  ;;  %v449_v55 = vld [vmem:[%s8168_s4 + $0x1] sm:$0x1]  ;;  %v451_v57 = vld [vmem:[%s8168_s4 + $0x2] sm:$0xf] }
  0x32   :  { %5716 = vmatprep.subr.mxu0 %v142_v19  ;;  %v448_v54 = vld [vmem:[%s8168_s4] sm:$0x1]  ;;  %v5424_v58 = vld [vmem:[%s8168_s4 + $0x6] ss:$0 sm:$0xff]  ;;  %v459_v59 = vrot.slane %v451_v57, 4  ;;  %6030 = vmatprep.subr.mxu1 %v498_v15  ;;  %v5441_v19 = vld [vmem:[%s8170_s6 + $0x98] sm:$0xff] }
  0x33   :  { %5717 = vmatpush3.msra.mxu0 %v126_v20  ;;  %v450_v56 = vadd.f32 %v449_v55, %v448_v54  ;;  %v495_v18 = vld [vmem:[%s8170_s6] sm:$0xff]  ;;  %v5485_v39 = vld [vmem:[%s8168_s4 + $0x8] ss:$0 sm:$0xff] }
  0x34   :  { %5718 = vmatprep.subr.mxu0 %v141_v21  ;;  %v5486_v54 = vld [vmem:[%s8171_s7] ss:$0 sm:$0xff] }
  0x35   :  { %5719 = vmatpush3.msra.mxu0 %v125_v22  ;;  %453 = vst.msk [vmem:[#allocation2] sm:$0x1] %vm452_vm2, %v450_v56  ;;  %457 = vst.msk [vmem:[#allocation2 + $0x5] sm:$0x1] %vm452_vm2, %v450_v56 }
  0x36   :  { %5720 = vmatprep.subr.mxu0 %v140_v23 }
  0x37   :  { %5721 = vmatpush3.msra.mxu0 %v124_v24 }
  0x38   :  { %5722 = vmatprep.subr.mxu0 %v139_v25 }
  0x39   :  { %5723 = vmatpush3.msra.mxu0 %v123_v26 }
  0x3a   :  { %5724 = vmatprep.subr.mxu0 %v138_v27 }
  0x3b   :  { %5725 = vmatpush3.msra.mxu0 %v122_v28 }
  0x3c   :  { %5726 = vmatprep.subr.mxu0 %v137_v29 }
  0x3d   :  { %5727 = vmatpush3.msra.mxu0 %v121_v30 }
  0x3e   :  { %5728 = vmatprep.subr.mxu0 %v136_v31 }
  0x3f   :  { %5729 = vmatpush3.msra.mxu0 %v120_v32 }
  0x40   :  { %5730 = vmatprep.subr.mxu0 %v135_v33 }
  0x41   :  { %5731 = vmatpush3.msra.mxu0 %v119_v34 }
  0x42   :  { %5732 = vmatprep.subr.mxu0 %v134_v35 }
  0x43   :  { %5733 = vmatpush3.msra.mxu0 %v118_v36  ;;  %v5484_v36 = vld [vmem:[%s8168_s4 + $0x7] ss:$0 sm:$0xff] }
  0x44   :  { %362 = vmatmul.mubr.f32.vlgmr.msra.gmra.mxu0 %v52_v37 }
  0xe2   :  { %v5664_v40 = vpop.f32.mrf.mxu0 }
  0xe4   :  { %v5665_v41 = vpop.f32.mrf.mxu0 }
  0xe5   :  { %v5666_v43 = vadd.f32 %v5665_v41, %v5664_v40 }
  0xe6   :  { %v5699_v42 = vpop.f32.mrf.mxu1 }
  0xe7   :  { %v224_v46 = vadd.f32 %v5666_v43, %v5423_v44 }
  0xe8   :  { %v5700_v45 = vpop.f32.mrf.mxu1 }
  0xe9   :  { %v5701_v47 = vadd.f32 %v5700_v45, %v5699_v42 }
  0xeb   :  { %v294_v50 = vadd.f32 %v5701_v47, %v224_v46  ;;  %v5440_v46 = vld [vmem:[%s8170_s6 + $0x90] sm:$0xff]  ;;  %v5439_v47 = vld [vmem:[%s8170_s6 + $0x88] sm:$0xff] }
 0x104   :  { %v5734_v48 = vpop.f32.mrf.mxu0 }
 0x106   :  { %v5735_v49 = vpop.f32.mrf.mxu0 }
 0x107   :  { %v5736_v51 = vadd.f32 %v5735_v49, %v5734_v48  ;;  %v5438_v48 = vld [vmem:[%s8170_s6 + $0x80] sm:$0xff]  ;;  %v5457_v49 = vld [vmem:[%s8170_s6 + $0x118] sm:$0xff] }
 0x109   :  { %v364_v52 = vadd.f32 %v5736_v51, %v294_v50  ;;  %v5456_v50 = vld [vmem:[%s8170_s6 + $0x110] sm:$0xff]  ;;  %v5455_v51 = vld [vmem:[%s8170_s6 + $0x108] sm:$0xff] }
 0x10b   :  { %v367_v53 = vmax.f32 %v364_v52, 0.0  ;;  %v5454_v52 = vld [vmem:[%s8170_s6 + $0x100] sm:$0xff] }
 0x10d   :  { %6028 = vmatmul.mubr.msk.f32.vlgmr.msra.gmra.mxu1 %vm374_vm1, %v367_v53 }
 0x10e   :  { %6031 = vmatpush3.msra.mxu1 %v498_v15  ;;  %v7291_v15 = vld [vmem:[%s8169_s5 + $0x8] sm:$0x3] }
 0x10f   :  { %6032 = vmatprep.subr.mxu1 %v497_v16 }
 0x110   :  { %6033 = vmatpush3.msra.mxu1 %v497_v16 }
 0x111   :  { %6034 = vmatprep.subr.mxu1 %v496_v17 }
 0x112   :  { %6035 = vmatpush3.msra.mxu1 %v496_v17 }
 0x113   :  { %6036 = vmatprep.subr.mxu1 %v495_v18 }
 0x114   :  { %6037 = vmatpush3.msra.mxu1 %v495_v18  ;;  %v7296_v18 = vld [vmem:[%s8169_s5] sm:$0xff] }
 0x115   :  { %6041 = vmatprep.subr.mxu1 %v5441_v19 }
 0x1cd   :  { %v444_v60 = vpop.f32.mrf.mxu1 }
 0x1ce   :  { %v445_v61 = vadd.f32 %v5424_v58, %v444_v60 }
 0x1cf   :  { %v6029_v62 = vpop.f32.mrf.mxu1 }
 0x1d0   :  { %v454_v63 = vadd.f32 %v451_v57, %v445_v61  ;;  %v461_v0 = vadd.f32 %v459_v59, %v445_v61  ;;  %v5489_v57 = vld [vmem:[%s8171_s7 + $0x4] ss:$0 sm:$0xff]  ;;  %v5492_v62 = vld [vmem:[%s8171_s7 + $0x8] ss:$0 sm:$0xff] }
 0x1d2   :  { %456 = vst.msk [vmem:[#allocation2 + $0x1] sm:$0xf] %vm455_vm3, %v454_v63  ;;  %v5429_v63 = vld [vmem:[%s8170_s6 + $0x38] sm:$0xff] }
 0x1d3   :  { %463 = vst.msk [vmem:[#allocation2 + $0x2] sm:$0xf0] %vm462_vm4, %v461_v0 }
 0x1da   :  { %v7169_v1 = vld [vmem:[#allocation2] sm:$0xff]  ;;  %v7173_v3 = vld [vmem:[#allocation2 + $0x8] sm:$0x3] }
 0x1db   :  { %v585_v2 = vsel %vm584_vm5, %v7169_v1, 0.0  ;;  %v589_v4 = vsel %vm588_vm6, %v7173_v3, 0.0 }
 0x1dc   :  { %586 = vadd.xlane.f32.xlu0 %v585_v2 }
 0x1e0   :  { %590 = vadd.xlane.f32.xlu0 %v589_v4 }
 0x265   :  { %v587_v5 = vpop.xlane.xlu0 %586 }
 0x266   :  { %v593_v6 = vmul.f32 0.03125, %v587_v5 }
 0x268   :  { %v595_v7 = vsub.f32 %v7169_v1, %v593_v6 }
 0x269   :  { %v591_v8 = vpop.xlane.xlu0 %590 }
 0x26a   :  { %v594_v9 = vmul.f32 0.03125, %v591_v8  ;;  %v597_v10 = vmul.f32 %v595_v7, %v595_v7  ;;  %v611_v37 = vmul.f32 %v5484_v36, %v595_v7  ;;  %v5428_v7 = vld [vmem:[%s8170_s6 + $0x30] sm:$0xff]  ;;  %v5427_v8 = vld [vmem:[%s8170_s6 + $0x28] sm:$0xff] }
 0x26c   :  { %v596_v11 = vsub.f32 %v7173_v3, %v594_v9  ;;  %v599_v12 = vsel %vm584_vm5, %v597_v10, 0.0  ;;  %v5426_v9 = vld [vmem:[%s8170_s6 + $0x20] sm:$0xff]  ;;  %v5445_v10 = vld [vmem:[%s8170_s6 + $0xb8] sm:$0xff] }
 0x26d   :  { %600 = vadd.xlane.f32.xlu1 %v599_v12  ;;  %v5443_v12 = vld [vmem:[%s8170_s6 + $0xa8] sm:$0xff] }
 0x26e   :  { %v598_v13 = vmul.f32 %v596_v11, %v596_v11  ;;  %v612_v41 = vmul.f32 %v5484_v36, %v596_v11  ;;  %v5444_v11 = vld [vmem:[%s8170_s6 + $0xb0] sm:$0xff] }
 0x270   :  { %v602_v14 = vsel %vm588_vm6, %v598_v13, 0.0  ;;  %v5442_v13 = vld [vmem:[%s8170_s6 + $0xa0] sm:$0xff] }
 0x271   :  { %603 = vadd.xlane.f32.xlu1 %v602_v14 }
 0x2f6   :  { %v601_v20 = vpop.xlane.xlu1 %600 }
 0x2f7   :  { %v605_v21 = vmul.f32 0.032258064, %v601_v20 }
 0x2f9   :  { %6552 = vrsqrt.f32 %v605_v21  ;;  %vm615_vm7 = vcmp.eq.f32.partialorder %v605_v21, inf  ;;  %v618_v26 = vand.u32 2147483648, %v605_v21  ;;  %vm617_vm8 = vcmp.eq.f32.partialorder %v605_v21, 0.0 }
 0x2fa   :  { %v604_v22 = vpop.xlane.xlu1 %603 }
 0x2fb   :  { %v606_v23 = vmul.f32 0.032258064, %v604_v22 }
 0x2fd   :  { %6554 = vrsqrt.f32 %v606_v23  ;;  %vm622_vm9 = vcmp.eq.f32.partialorder %v606_v23, inf  ;;  %v625_v32 = vand.u32 2147483648, %v606_v23  ;;  %vm624_vm10 = vcmp.eq.f32.partialorder %v606_v23, 0.0 }
 0x306   :  { %v6553_v24 = vpop.eup %6552 }
 0x307   :  { %v614_v25 = vmul.f32 %v6553_v24, %v605_v21 }
 0x309   :  { %v616_v27 = vsel %vm615_vm7, %v605_v21, %v614_v25  ;;  %v5502_v25 = vld [vmem:[%s8171_s7 + $0x1] ss:$0 sm:$0xff] }
 0x30a   :  { %v6555_v28 = vpop.eup %6554  ;;  %v619_v29 = vsel %vm617_vm8, %v618_v26, %v616_v27 }
 0x30b   :  { %v627_v30 = vadd.f32 1e-06, %v619_v29  ;;  %v621_v31 = vmul.f32 %v6555_v28, %v606_v23  ;;  %v5505_v28 = vld [vmem:[%s8171_s7 + $0x5] ss:$0 sm:$0xff] }
 0x30d   :  { %6556 = vrcp.f32 %v627_v30  ;;  %v623_v33 = vsel %vm622_vm9, %v606_v23, %v621_v31 }
 0x30e   :  { %v626_v34 = vsel %vm624_vm10, %v625_v32, %v623_v33 }
 0x30f   :  { %v628_v35 = vadd.f32 1e-06, %v626_v34 }
 0x311   :  { %6558 = vrcp.f32 %v628_v35 }
 0x31a   :  { %v6557_v38 = vpop.eup %6556 }
 0x31b   :  { %v630_v40 = vmul.f32 %v6557_v38, %v611_v37 }
 0x31d   :  { %v7202_v42 = vadd.f32 %v5485_v39, %v630_v40 }
 0x31e   :  { %v6559_v43 = vpop.eup %6558 }
 0x31f   :  { %v632_v44 = vmul.f32 %v6559_v43, %v612_v41  ;;  %6038 = vmatprep.mubr.msk.f32.mxu1 %vm584_vm5, %v7202_v42 }
 0x321   :  { %v7206_v45 = vadd.f32 %v5485_v39, %v632_v44 }
 0x323   :  { %6039 = vmatmul.mubr.msk.f32.vlgmr.msra.gmra.mxu1 %vm584_vm5, %v7206_v45 }
 0x324   :  { %6042 = vmatpush3.msra.mxu1 %v5441_v19  ;;  %6049 = vmatprep.mubr.msk.f32.mxu1 %vm584_vm5, %v7202_v42 }
 0x325   :  { %6043 = vmatprep.subr.mxu1 %v5440_v46 }
 0x326   :  { %6044 = vmatpush3.msra.mxu1 %v5440_v46  ;;  %v5461_v46 = vld [vmem:[%s8170_s6 + $0x138] sm:$0xff] }
 0x327   :  { %6045 = vmatprep.subr.mxu1 %v5439_v47 }
 0x328   :  { %6046 = vmatpush3.msra.mxu1 %v5439_v47 }
 0x329   :  { %6047 = vmatprep.subr.mxu1 %v5438_v48 }
 0x32a   :  { %6048 = vmatpush3.msra.mxu1 %v5438_v48 }
 0x32b   :  { %6050 = vmatmul.mubr.msk.f32.vlgmr.msra.gmra.mxu1 %vm584_vm5, %v7206_v45  ;;  %6052 = vmatprep.subr.mxu1 %v5457_v49 }
 0x32c   :  { %6053 = vmatpush3.msra.mxu1 %v5457_v49  ;;  %6060 = vmatprep.mubr.msk.f32.mxu1 %vm584_vm5, %v7202_v42 }
 0x32d   :  { %6054 = vmatprep.subr.mxu1 %v5456_v50 }
 0x32e   :  { %6055 = vmatpush3.msra.mxu1 %v5456_v50 }
 0x32f   :  { %6056 = vmatprep.subr.mxu1 %v5455_v51 }
 0x330   :  { %6057 = vmatpush3.msra.mxu1 %v5455_v51 }
 0x331   :  { %6058 = vmatprep.subr.mxu1 %v5454_v52 }
 0x332   :  { %6059 = vmatpush3.msra.mxu1 %v5454_v52 }
 0x333   :  { %6061 = vmatmul.mubr.msk.f32.vlgmr.msra.gmra.mxu1 %vm584_vm5, %v7206_v45 }
 0x3e3   :  { %v6040_v53 = vpop.f32.mrf.mxu1 }
 0x3e4   :  { %v723_v2 = vadd.f32 %v6040_v53, %v5486_v54 }
 0x3e5   :  { %v717_v55 = vpop.f32.mrf.mxu1 }
 0x3e6   :  { %v718_v56 = vadd.f32 %v5486_v54, %v717_v55 }
 0x3e8   :  { %6067 = vmatprep.mubr.msk.f32.mxu1 %vm374_vm1, %v718_v56 }
 0x3eb   :  { %v6051_v58 = vpop.f32.mrf.mxu1 }
 0x3ec   :  { %v804_v59 = vadd.f32 %v6051_v58, %v5489_v57 }
 0x3ed   :  { %v798_v60 = vpop.f32.mrf.mxu1 }
 0x3ee   :  { %v799_v61 = vadd.f32 %v5489_v57, %v798_v60  ;;  %6063 = vmatprep.subr.msk.mxu1 %vm374_vm1, %v804_v59 }
 0x3ef   :  { %6064 = vmatpush3.xpose.msk.msra.mxu1 %vm374_vm1, %v804_v59 }
 0x3f0   :  { %6065 = vmatprep.subr.msk.mxu1 %vm374_vm1, %v799_v61 }
 0x3f3   :  { %v6062_v0 = vpop.f32.mrf.mxu1  ;;  %6066 = vmatpush3.xpose.msk.msra.mxu1 %vm374_vm1, %v799_v61  ;;  %v5460_v61 = vld [vmem:[%s8170_s6 + $0x130] sm:$0xff] }
 0x3f4   :  { %v885_v4 = vadd.f32 %v6062_v0, %v5492_v62  ;;  %6077 = vmatprep.subr.mxu1 %v5429_v63 }
 0x3f5   :  { %v879_v5 = vpop.f32.mrf.mxu1 }
 0x3f6   :  { %v880_v6 = vadd.f32 %v5492_v62, %v879_v5  ;;  %6068 = vmatmul.mubr.msk.f32.vlgmr.msra.gmra.mxu1 %vm374_vm1, %v723_v2  ;;  %6070 = vmatprep.subr.msk.mxu0 %vm1009_vm11, %v885_v4  ;;  %v5459_v62 = vld [vmem:[%s8170_s6 + $0x128] sm:$0xff] }
 0x3f7   :  { %6071 = vmatpush3.msk.msra.mxu0 %vm1009_vm11, %v885_v4  ;;  %6078 = vmatpush3.msra.mxu1 %v5429_v63  ;;  %v5458_v63 = vld [vmem:[%s8170_s6 + $0x120] sm:$0xff] }
 0x3f8   :  { %6085 = vmatprep.mubr.msk.f32.mxu1 %vm584_vm5, %v7202_v42  ;;  %6072 = vmatprep.subr.mxu0 %v880_v6 }
 0x3f9   :  { %6079 = vmatprep.subr.mxu1 %v5428_v7  ;;  %6073 = vmatpush3.msra.mxu0 %v880_v6 }
 0x3fa   :  { %6080 = vmatpush3.msra.mxu1 %v5428_v7  ;;  %6099 = vmatprep.subr.mxu0 %v5461_v46 }
 0x3fb   :  { %6081 = vmatprep.subr.mxu1 %v5427_v8 }
 0x3fc   :  { %6082 = vmatpush3.msra.mxu1 %v5427_v8 }
 0x3fd   :  { %6083 = vmatprep.subr.mxu1 %v5426_v9 }
 0x3fe   :  { %6084 = vmatpush3.msra.mxu1 %v5426_v9 }
 0x3ff   :  { %6086 = vmatmul.mubr.msk.f32.vlgmr.msra.gmra.mxu1 %vm584_vm5, %v7206_v45  ;;  %6088 = vmatprep.subr.mxu1 %v5445_v10 }
 0x400   :  { %6089 = vmatpush3.msra.mxu1 %v5445_v10  ;;  %6096 = vmatprep.mubr.msk.f32.mxu1 %vm584_vm5, %v7202_v42 }
 0x401   :  { %6090 = vmatprep.subr.mxu1 %v5444_v11 }
 0x402   :  { %6091 = vmatpush3.msra.mxu1 %v5444_v11 }
 0x403   :  { %6092 = vmatprep.subr.mxu1 %v5443_v12 }
 0x404   :  { %6093 = vmatpush3.msra.mxu1 %v5443_v12  ;;  %v5481_v12 = vld [vmem:[%s8172_s8 + $0x8] sm:$0xff] }
 0x405   :  { %6094 = vmatprep.subr.mxu1 %v5442_v13 }
 0x406   :  { %6095 = vmatpush3.msra.mxu1 %v5442_v13 }
 0x407   :  { %6097 = vmatmul.mubr.msk.f32.vlgmr.msra.gmra.mxu1 %vm584_vm5, %v7206_v45 }
 0x4b6   :  { %v6069_v14 = vpop.f32.mrf.mxu1 }
 0x4b7   :  { %v976_v16 = vmul.f32 0.35355338, %v6069_v14 }
 0x4b8   :  { %v966_v17 = vpop.f32.mrf.mxu1 }
 0x4b9   :  { %v975_v19 = vmul.f32 0.35355338, %v966_v17  ;;  %v978_v20 = vadd.f32 %v976_v16, %v7291_v15  ;;  %v5508_v16 = vld [vmem:[%s8171_s7 + $0x9] ss:$0 sm:$0xff] }
 0x4bb   :  { %v984_v21 = vsel %vm983_vm12, %v978_v20, -inf  ;;  %v977_v22 = vadd.f32 %v975_v19, %v7296_v18 }
 0x4bc   :  { %985 = vmax.xlane.f32.xlu1 %v984_v21 }
 0x4bd   :  { %v980_v23 = vsel %vm979_vm13, %v977_v22, -inf }
 0x4be   :  { %981 = vmax.xlane.f32.xlu0 %v980_v23 }
 0x4bf   :  { %v6087_v24 = vpop.f32.mrf.mxu1 }
 0x4c0   :  { %v1166_v33 = vadd.f32 %v6087_v24, %v5502_v25  ;;  %v577_v24 = vld [vmem:[%s8172_s8] sm:$0xff] }
 0x4c1   :  { %v1160_v26 = vpop.f32.mrf.mxu1 }
 0x4c2   :  { %v1161_v27 = vadd.f32 %v5502_v25, %v1160_v26 }
 0x4c4   :  { %6114 = vmatprep.mubr.msk.f32.mxu1 %vm374_vm1, %v1161_v27 }
 0x4c7   :  { %v6098_v29 = vpop.f32.mrf.mxu1 }
 0x4c8   :  { %v1247_v30 = vadd.f32 %v6098_v29, %v5505_v28  ;;  %v5449_v29 = vld [vmem:[%s8170_s6 + $0xd8] sm:$0xff] }
 0x4c9   :  { %v1241_v31 = vpop.f32.mrf.mxu1 }
 0x4ca   :  { %v1242_v32 = vadd.f32 %v5505_v28, %v1241_v31  ;;  %6110 = vmatprep.subr.msk.mxu1 %vm374_vm1, %v1247_v30  ;;  %v5447_v31 = vld [vmem:[%s8170_s6 + $0xc8] sm:$0xff] }
 0x4cb   :  { %6111 = vmatpush3.xpose.msk.msra.mxu1 %vm374_vm1, %v1247_v30  ;;  %v5448_v30 = vld [vmem:[%s8170_s6 + $0xd0] sm:$0xff] }
 0x4cc   :  { %6112 = vmatprep.subr.msk.mxu1 %vm374_vm1, %v1242_v32 }
 0x4cf   :  { %6113 = vmatpush3.xpose.msk.msra.mxu1 %vm374_vm1, %v1242_v32  ;;  %v5446_v32 = vld [vmem:[%s8170_s6 + $0xc0] sm:$0xff] }
 0x4d0   :  { %6124 = vmatprep.subr.mxu1 %v5481_v12 }
 0x4d2   :  { %6115 = vmatmul.mubr.msk.f32.vlgmr.msra.gmra.mxu1 %vm374_vm1, %v1166_v33  ;;  %v5433_v33 = vld [vmem:[%s8170_s6 + $0x58] sm:$0xff] }
 0x4d3   :  { %6125 = vmatpush3.msra.mxu1 %v5481_v12 }
 0x4d4   :  { %6134 = vmatprep.subr.mxu1 %v5433_v33 }
 0x545   :  { %v986_v34 = vpop.xlane.xlu1 %985 }
 0x546   :  { %v988_v35 = vsub.f32 %v978_v20, %v986_v34 }
 0x547   :  { %v982_v36 = vpop.xlane.xlu0 %981 }
 0x548   :  { %v991_v37 = vmul.f32 1.442695, %v988_v35  ;;  %v987_v38 = vsub.f32 %v977_v22, %v982_v36  ;;  %v5432_v36 = vld [vmem:[%s8170_s6 + $0x50] sm:$0xff] }
 0x54a   :  { %6560 = vpow2.f32 %v991_v37  ;;  %v989_v39 = vmul.f32 1.442695, %v987_v38  ;;  %v5431_v37 = vld [vmem:[%s8170_s6 + $0x48] sm:$0xff] }
 0x54c   :  { %6562 = vpow2.f32 %v989_v39  ;;  %v5430_v39 = vld [vmem:[%s8170_s6 + $0x40] sm:$0xff] }
 0x557   :  { %v6561_v40 = vpop.eup %6560 }
 0x558   :  { %v996_v41 = vsel %vm983_vm12, %v6561_v40, 0.0 }
 0x559   :  { %v6563_v43 = vpop.eup %6562  ;;  %997 = vadd.xlane.f32.xlu1 %v996_v41 }
 0x55a   :  { %v993_v44 = vsel %vm979_vm13, %v6563_v43, 0.0 }
 0x55b   :  { %994 = vadd.xlane.f32.xlu0 %v993_v44  ;;  %v5464_v44 = vld [vmem:[%s8170_s6 + $0x150] sm:$0xff] }
 0x592   :  { %v6116_v47 = vpop.f32.mrf.mxu1 }
 0x593   :  { %v1419_v48 = vmul.f32 0.35355338, %v6116_v47 }
 0x594   :  { %v1409_v49 = vpop.f32.mrf.mxu1 }
 0x595   :  { %v1418_v50 = vmul.f32 0.35355338, %v1409_v49  ;;  %v1421_v51 = vadd.f32 %v1419_v48, %v7291_v15  ;;  %v5463_v48 = vld [vmem:[%s8170_s6 + $0x148] sm:$0xff] }
 0x597   :  { %v1425_v52 = vsel %vm983_vm12, %v1421_v51, -inf  ;;  %v1420_v53 = vadd.f32 %v1418_v50, %v7296_v18 }
 0x598   :  { %1426 = vmax.xlane.f32.xlu1 %v1425_v52 }
 0x599   :  { %v1422_v54 = vsel %vm979_vm13, %v1420_v53, -inf }
 0x59a   :  { %1423 = vmax.xlane.f32.xlu0 %v1422_v54 }
 0x5e2   :  { %v998_v55 = vpop.xlane.xlu1 %997 }
 0x5e3   :  { %6564 = vrcp.f32 %v998_v55  ;;  %v5522_v55 = vld [vmem:[%s8171_s7 + $0x2] ss:$0 sm:$0xff] }
 0x5e4   :  { %v995_v56 = vpop.xlane.xlu0 %994 }
 0x5e5   :  { %6566 = vrcp.f32 %v995_v56 }
 0x5f0   :  { %v6565_v57 = vpop.eup %6564 }
 0x5f1   :  { %v1002_v60 = vmul.f32 %v6565_v57, %v6561_v40  ;;  %v5465_v40 = vld [vmem:[%s8170_s6 + $0x158] sm:$0xff] }
 0x5f2   :  { %v6567_v58 = vpop.eup %6566 }
 0x5f3   :  { %v1000_v59 = vmul.f32 %v6567_v58, %v6563_v43  ;;  %v5525_v43 = vld [vmem:[%s8171_s7 + $0x6] ss:$0 sm:$0xff] }
 0x5f5   :  { %6074 = vmatprep.mubr.msk.f32.mxu0 %vm979_vm13, %v1000_v59  ;;  %v5528_v59 = vld [vmem:[%s8171_s7 + $0xa] ss:$0 sm:$0xff] }
 0x5f6   :  { %6075 = vmatmul.mubr.msk.f32.vlgmr.msra.gmra.mxu0 %vm979_vm13, %v1002_v60 }
 0x5f7   :  { %6100 = vmatpush3.msra.mxu0 %v5461_v46  ;;  %6107 = vmatprep.mubr.msk.f32.mxu0 %vm584_vm5, %v7202_v42 }
 0x5f8   :  { %6101 = vmatprep.subr.mxu0 %v5460_v61 }
 0x5f9   :  { %6102 = vmatpush3.msra.mxu0 %v5460_v61 }
 0x5fa   :  { %6103 = vmatprep.subr.mxu0 %v5459_v62 }
 0x5fb   :  { %6104 = vmatpush3.msra.mxu0 %v5459_v62 }
 0x5fc   :  { %6105 = vmatprep.subr.mxu0 %v5458_v63 }
 0x5fd   :  { %6106 = vmatpush3.msra.mxu0 %v5458_v63 }
 0x5fe   :  { %6108 = vmatmul.mubr.msk.f32.vlgmr.msra.gmra.mxu0 %vm584_vm5, %v7206_v45 }
 0x621   :  { %v1427_v0 = vpop.xlane.xlu1 %1426 }
 0x622   :  { %v1429_v2 = vsub.f32 %v1421_v51, %v1427_v0  ;;  %v5462_v51 = vld [vmem:[%s8170_s6 + $0x140] sm:$0xff] }
 0x623   :  { %v1424_v4 = vpop.xlane.xlu0 %1423 }
 0x624   :  { %v1432_v5 = vmul.f32 1.442695, %v1429_v2  ;;  %v1428_v6 = vsub.f32 %v1420_v53, %v1424_v4 }
 0x626   :  { %6568 = vpow2.f32 %v1432_v5  ;;  %v1430_v7 = vmul.f32 1.442695, %v1428_v6 }
 0x628   :  { %6570 = vpow2.f32 %v1430_v7 }
 0x633   :  { %v6569_v8 = vpop.eup %6568 }
 0x634   :  { %v1437_v9 = vsel %vm983_vm12, %v6569_v8, 0.0 }
 0x635   :  { %v6571_v10 = vpop.eup %6570  ;;  %1438 = vadd.xlane.f32.xlu1 %v1437_v9 }
 0x636   :  { %v1434_v11 = vsel %vm979_vm13, %v6571_v10, 0.0 }
 0x637   :  { %1435 = vadd.xlane.f32.xlu0 %v1434_v11 }
 0x6b6   :  { %v6076_v13 = vpop.f32.mrf.mxu0 }
 0x6b8   :  { %v1079_v14 = vpop.f32.mrf.mxu0 }
 0x6be   :  { %v1439_v17 = vpop.xlane.xlu1 %1438  ;;  %v6109_v19 = vpop.f32.mrf.mxu0 }
 0x6bf   :  { %v1328_v20 = vadd.f32 %v6109_v19, %v5508_v16  ;;  %6572 = vrcp.f32 %v1439_v17 }
 0x6c0   :  { %v1322_v21 = vpop.f32.mrf.mxu0  ;;  %v1436_v22 = vpop.xlane.xlu0 %1435 }
 0x6c1   :  { %v1323_v23 = vadd.f32 %v5508_v16, %v1322_v21  ;;  %6574 = vrcp.f32 %v1436_v22  ;;  %6117 = vmatprep.subr.msk.mxu0 %vm1009_vm11, %v1328_v20  ;;  %v5437_v22 = vld [vmem:[%s8170_s6 + $0x78] sm:$0xff] }
 0x6c2   :  { %6118 = vmatpush3.msk.msra.mxu0 %vm1009_vm11, %v1328_v20 }
 0x6c3   :  { %6119 = vmatprep.subr.mxu0 %v1323_v23 }
 0x6c4   :  { %6120 = vmatpush3.msra.mxu0 %v1323_v23  ;;  %v5482_v23 = vld [vmem:[%s8172_s8 + $0x10] sm:$0xff] }
 0x6c5   :  { %6129 = vmatprep.subr.mxu0 %v577_v24 }
 0x6cc   :  { %v6573_v25 = vpop.eup %6572 }
 0x6cd   :  { %v1443_v28 = vmul.f32 %v6573_v25, %v6569_v8 }
 0x6ce   :  { %v6575_v26 = vpop.eup %6574 }
 0x6cf   :  { %v1441_v27 = vmul.f32 %v6575_v26, %v6571_v10 }
 0x6d1   :  { %6121 = vmatprep.mubr.msk.f32.mxu0 %vm979_vm13, %v1441_v27 }
 0x6d2   :  { %6122 = vmatmul.mubr.msk.f32.vlgmr.msra.gmra.mxu0 %vm979_vm13, %v1443_v28 }
 0x6d3   :  { %6131 = vmatprep.mubr.msk.f32.mxu0 %vm374_vm1, %v1079_v14  ;;  %6130 = vmatpush3.msra.mxu0 %v577_v24 }
 0x6d4   :  { %6145 = vmatprep.subr.mxu0 %v5449_v29 }
 0x6d6   :  { %6132 = vmatmul.mubr.msk.f32.vlgmr.msra.gmra.mxu0 %vm374_vm1, %v6076_v13 }
 0x6d7   :  { %6146 = vmatpush3.msra.mxu0 %v5449_v29  ;;  %6153 = vmatprep.mubr.msk.f32.mxu0 %vm584_vm5, %v7202_v42 }
 0x6d8   :  { %6147 = vmatprep.subr.mxu0 %v5448_v30 }
 0x6d9   :  { %6148 = vmatpush3.msra.mxu0 %v5448_v30  ;;  %v5436_v30 = vld [vmem:[%s8170_s6 + $0x70] sm:$0xff] }
 0x6da   :  { %6149 = vmatprep.subr.mxu0 %v5447_v31 }
 0x6db   :  { %6150 = vmatpush3.msra.mxu0 %v5447_v31  ;;  %v5435_v31 = vld [vmem:[%s8170_s6 + $0x68] sm:$0xff] }
 0x6dc   :  { %6151 = vmatprep.subr.mxu0 %v5446_v32 }
 0x6dd   :  { %6152 = vmatpush3.msra.mxu0 %v5446_v32  ;;  %v5434_v32 = vld [vmem:[%s8170_s6 + $0x60] sm:$0xff] }
 0x6de   :  { %6154 = vmatmul.mubr.msk.f32.vlgmr.msra.gmra.mxu0 %vm584_vm5, %v7206_v45 }
 0x792   :  { %v6123_v34 = vpop.f32.mrf.mxu0 }
 0x794   :  { %v1519_v35 = vpop.f32.mrf.mxu0 }
 0x795   :  { %6126 = vmatprep.mubr.msk.f32.mxu1 %vm374_vm1, %v1519_v35  ;;  %v5467_v35 = vld [vmem:[%s8170_s6 + $0x168] sm:$0xff] }
 0x796   :  { %6127 = vmatmul.mubr.msk.f32.vlgmr.msra.gmra.mxu1 %vm374_vm1, %v6123_v34  ;;  %v7384_v38 = vpop.f32.mrf.mxu0  ;;  %v5468_v34 = vld [vmem:[%s8170_s6 + $0x170] sm:$0xff] }
 0x797   :  { %6135 = vmatpush3.msra.mxu1 %v5433_v33  ;;  %6142 = vmatprep.mubr.msk.f32.mxu1 %vm584_vm5, %v7202_v42  ;;  %v5469_v33 = vld [vmem:[%s8170_s6 + $0x178] sm:$0xff] }
 0x798   :  { %6136 = vmatprep.subr.mxu1 %v5432_v36  ;;  %v7392_v41 = vpop.f32.mrf.mxu0 }
 0x799   :  { %6137 = vmatpush3.msra.mxu1 %v5432_v36  ;;  %v5466_v36 = vld [vmem:[%s8170_s6 + $0x160] sm:$0xff] }
 0x79a   :  { %6138 = vmatprep.subr.mxu1 %v5431_v37 }
 0x79b   :  { %6139 = vmatpush3.msra.mxu1 %v5431_v37  ;;  %v5453_v37 = vld [vmem:[%s8170_s6 + $0xf8] sm:$0xff] }
 0x79c   :  { %6140 = vmatprep.subr.mxu1 %v5430_v39 }
 0x79d   :  { %6141 = vmatpush3.msra.mxu1 %v5430_v39 }
 0x79e   :  { %6143 = vmatmul.mubr.msk.f32.vlgmr.msra.gmra.mxu1 %vm584_vm5, %v7206_v45  ;;  %v6155_v46 = vpop.f32.mrf.mxu0  ;;  %6156 = vmatprep.subr.mxu1 %v5465_v40 }
 0x79f   :  { %v1849_v47 = vadd.f32 %v6155_v46, %v5525_v43  ;;  %6157 = vmatpush3.msra.mxu1 %v5465_v40  ;;  %6164 = vmatprep.mubr.msk.f32.mxu1 %vm584_vm5, %v7202_v42  ;;  %v5450_v46 = vld [vmem:[%s8170_s6 + $0xe0] sm:$0xff] }
 0x7a0   :  { %v1843_v49 = vpop.f32.mrf.mxu0  ;;  %6158 = vmatprep.subr.mxu1 %v5464_v44 }
 0x7a1   :  { %v1844_v50 = vadd.f32 %v5525_v43, %v1843_v49  ;;  %6159 = vmatpush3.msra.mxu1 %v5464_v44  ;;  %6167 = vmatprep.subr.msk.mxu0 %vm374_vm1, %v1849_v47  ;;  %v5452_v43 = vld [vmem:[%s8170_s6 + $0xf0] sm:$0xff]  ;;  %v5451_v44 = vld [vmem:[%s8170_s6 + $0xe8] sm:$0xff] }
 0x7a2   :  { %6160 = vmatprep.subr.mxu1 %v5463_v48  ;;  %6168 = vmatpush3.xpose.msk.msra.mxu0 %vm374_vm1, %v1849_v47 }
 0x7a3   :  { %6161 = vmatpush3.msra.mxu1 %v5463_v48  ;;  %6169 = vmatprep.subr.msk.mxu0 %vm374_vm1, %v1844_v50  ;;  %v5540_v48 = vld [vmem:[%s8171_s7 + $0x3] ss:$0 sm:$0xff] }
 0x7a4   :  { %6162 = vmatprep.subr.mxu1 %v5462_v51 }
 0x7a5   :  { %6163 = vmatpush3.msra.mxu1 %v5462_v51 }
 0x7a6   :  { %6165 = vmatmul.mubr.msk.f32.vlgmr.msra.gmra.mxu1 %vm584_vm5, %v7206_v45  ;;  %6170 = vmatpush3.xpose.msk.msra.mxu0 %vm374_vm1, %v1844_v50  ;;  %v5546_v50 = vld [vmem:[%s8171_s7 + $0xb] ss:$0 sm:$0xff] }
 0x7a7   :  { %6181 = vmatprep.subr.mxu0 %v5482_v23 }
 0x856   :  { %v7416_v52 = vpop.f32.mrf.mxu1 }
 0x858   :  { %v7418_v53 = vpop.f32.mrf.mxu1 }
 0x85e   :  { %v6144_v54 = vpop.f32.mrf.mxu1 }
 0x85f   :  { %v1768_v58 = vadd.f32 %v6144_v54, %v5522_v55 }
 0x860   :  { %v1762_v56 = vpop.f32.mrf.mxu1 }
 0x861   :  { %v1763_v57 = vadd.f32 %v5522_v55, %v1762_v56 }
 0x863   :  { %6171 = vmatprep.mubr.msk.f32.mxu0 %vm374_vm1, %v1763_v57  ;;  %v1687_v57 = vadd.f32 %v7384_v38, %v7416_v52 }
 0x864   :  { %6172 = vmatmul.mubr.msk.f32.vlgmr.msra.gmra.mxu0 %vm374_vm1, %v1768_v58  ;;  %v1682_v58 = vadd.f32 %v7392_v41, %v7418_v53 }
 0x865   :  { %6182 = vmatpush3.msra.mxu0 %v5482_v23 }
 0x866   :  { %v6166_v60 = vpop.f32.mrf.mxu1  ;;  %6197 = vmatprep.subr.mxu0 %v5453_v37 }
 0x867   :  { %v1930_v61 = vadd.f32 %v6166_v60, %v5528_v59 }
 0x868   :  { %v1924_v62 = vpop.f32.mrf.mxu1 }
 0x869   :  { %v1925_v63 = vadd.f32 %v5528_v59, %v1924_v62  ;;  %6174 = vmatprep.subr.msk.mxu1 %vm1009_vm11, %v1930_v61  ;;  %v5543_v62 = vld [vmem:[%s8171_s7 + $0x7] ss:$0 sm:$0xff] }
 0x86a   :  { %6175 = vmatpush3.msk.msra.mxu1 %vm1009_vm11, %v1930_v61 }
 0x86b   :  { %6176 = vmatprep.subr.mxu1 %v1925_v63 }
 0x86c   :  { %6177 = vmatpush3.msra.mxu1 %v1925_v63 }
 0x86d   :  { %6186 = vmatprep.subr.mxu1 %v5437_v22 }
 0x924   :  { %v6173_v0 = vpop.f32.mrf.mxu0 }
 0x925   :  { %v2021_v2 = vmul.f32 0.35355338, %v6173_v0 }
 0x926   :  { %v2011_v4 = vpop.f32.mrf.mxu0 }
 0x927   :  { %v2020_v5 = vmul.f32 0.35355338, %v2011_v4  ;;  %v2023_v6 = vadd.f32 %v2021_v2, %v7291_v15 }
 0x929   :  { %v2027_v7 = vsel %vm983_vm12, %v2023_v6, -inf  ;;  %v2022_v8 = vadd.f32 %v2020_v5, %v7296_v18 }
 0x92a   :  { %2028 = vmax.xlane.f32.xlu1 %v2027_v7 }
 0x92b   :  { %v2024_v9 = vsel %vm979_vm13, %v2022_v8, -inf }
 0x92c   :  { %2025 = vmax.xlane.f32.xlu0 %v2024_v9 }
 0x9b3   :  { %v2029_v10 = vpop.xlane.xlu1 %2028 }
 0x9b4   :  { %v2031_v11 = vsub.f32 %v2023_v6, %v2029_v10 }
 0x9b5   :  { %v2026_v12 = vpop.xlane.xlu0 %2025 }
 0x9b6   :  { %v2034_v13 = vmul.f32 1.442695, %v2031_v11  ;;  %v2030_v14 = vsub.f32 %v2022_v8, %v2026_v12 }
 0x9b8   :  { %6576 = vpow2.f32 %v2034_v13  ;;  %v2032_v16 = vmul.f32 1.442695, %v2030_v14 }
 0x9ba   :  { %6578 = vpow2.f32 %v2032_v16 }
 0x9c5   :  { %v6577_v17 = vpop.eup %6576 }
 0x9c6   :  { %v2039_v19 = vsel %vm983_vm12, %v6577_v17, 0.0 }
 0x9c7   :  { %v6579_v20 = vpop.eup %6578  ;;  %2040 = vadd.xlane.f32.xlu1 %v2039_v19 }
 0x9c8   :  { %v2036_v21 = vsel %vm979_vm13, %v6579_v20, 0.0 }
 0x9c9   :  { %2037 = vadd.xlane.f32.xlu0 %v2036_v21 }
 0xa50   :  { %v2041_v24 = vpop.xlane.xlu1 %2040 }
 0xa51   :  { %6580 = vrcp.f32 %v2041_v24 }
 0xa52   :  { %v2038_v25 = vpop.xlane.xlu0 %2037 }
 0xa53   :  { %6582 = vrcp.f32 %v2038_v25 }
 0xa5e   :  { %v6581_v26 = vpop.eup %6580 }
 0xa5f   :  { %v2045_v29 = vmul.f32 %v6581_v26, %v6577_v17 }
 0xa60   :  { %v6583_v27 = vpop.eup %6582 }
 0xa61   :  { %v2043_v28 = vmul.f32 %v6583_v27, %v6579_v20 }
 0xa63   :  { %6178 = vmatprep.mubr.msk.f32.mxu1 %vm979_vm13, %v2043_v28 }
 0xa64   :  { %6179 = vmatmul.mubr.msk.f32.vlgmr.msra.gmra.mxu1 %vm979_vm13, %v2045_v29 }
 0xa65   :  { %6187 = vmatpush3.msra.mxu1 %v5437_v22  ;;  %6194 = vmatprep.mubr.msk.f32.mxu1 %vm584_vm5, %v7202_v42 }
 0xa66   :  { %6188 = vmatprep.subr.mxu1 %v5436_v30 }
 0xa67   :  { %6189 = vmatpush3.msra.mxu1 %v5436_v30 }
 0xa68   :  { %6190 = vmatprep.subr.mxu1 %v5435_v31 }
 0xa69   :  { %6191 = vmatpush3.msra.mxu1 %v5435_v31  ;;  %v5558_v31 = vld [vmem:[%s8168_s4 + $0xb] ss:$0 sm:$0xff] }
 0xa6a   :  { %6192 = vmatprep.subr.mxu1 %v5434_v32 }
 0xa6b   :  { %6193 = vmatpush3.msra.mxu1 %v5434_v32 }
 0xa6c   :  { %6195 = vmatmul.mubr.msk.f32.vlgmr.msra.gmra.mxu1 %vm584_vm5, %v7206_v45  ;;  %6208 = vmatprep.subr.mxu1 %v5469_v33 }
 0xa6d   :  { %6209 = vmatpush3.msra.mxu1 %v5469_v33  ;;  %6216 = vmatprep.mubr.msk.f32.mxu1 %vm584_vm5, %v7202_v42 }
 0xa6e   :  { %6210 = vmatprep.subr.mxu1 %v5468_v34 }
 0xa6f   :  { %6211 = vmatpush3.msra.mxu1 %v5468_v34 }
 0xa70   :  { %6212 = vmatprep.subr.mxu1 %v5467_v35 }
 0xa71   :  { %6213 = vmatpush3.msra.mxu1 %v5467_v35 }
 0xa72   :  { %6214 = vmatprep.subr.mxu1 %v5466_v36 }
 0xa73   :  { %6215 = vmatpush3.msra.mxu1 %v5466_v36 }
 0xa74   :  { %6217 = vmatmul.mubr.msk.f32.vlgmr.msra.gmra.mxu1 %vm584_vm5, %v7206_v45 }
 0xb24   :  { %v6180_v39 = vpop.f32.mrf.mxu1 }
 0xb26   :  { %v2121_v40 = vpop.f32.mrf.mxu1 }
 0xb27   :  { %6183 = vmatprep.mubr.msk.f32.mxu0 %vm374_vm1, %v2121_v40 }
 0xb28   :  { %6184 = vmatmul.mubr.msk.f32.vlgmr.msra.gmra.mxu0 %vm374_vm1, %v6180_v39 }
 0xb29   :  { %6198 = vmatpush3.msra.mxu0 %v5453_v37  ;;  %6205 = vmatprep.mubr.msk.f32.mxu0 %vm584_vm5, %v7202_v42 }
 0xb2a   :  { %6199 = vmatprep.subr.mxu0 %v5452_v43 }
 0xb2b   :  { %6200 = vmatpush3.msra.mxu0 %v5452_v43 }
 0xb2c   :  { %v6196_v47 = vpop.f32.mrf.mxu1  ;;  %6201 = vmatprep.subr.mxu0 %v5451_v44 }
 0xb2d   :  { %6202 = vmatpush3.msra.mxu0 %v5451_v44  ;;  %v2291_v38 = vadd.f32 %v6196_v47, %v5540_v48 }
 0xb2e   :  { %v2285_v49 = vpop.f32.mrf.mxu1  ;;  %6203 = vmatprep.subr.mxu0 %v5450_v46 }
 0xb2f   :  { %v2286_v42 = vadd.f32 %v5540_v48, %v2285_v49  ;;  %6204 = vmatpush3.msra.mxu0 %v5450_v46 }
 0xb30   :  { %6206 = vmatmul.mubr.msk.f32.vlgmr.msra.gmra.mxu0 %vm584_vm5, %v7206_v45 }
 0xb31   :  { %6223 = vmatprep.mubr.msk.f32.mxu0 %vm374_vm1, %v2286_v42 }
 0xb34   :  { %v6218_v51 = vpop.f32.mrf.mxu1 }
 0xb35   :  { %v2453_v54 = vadd.f32 %v6218_v51, %v5546_v50  ;;  %v7545_v51 = vld [vmem:[%s8173_s9 + $0x18] sm:$0xff] }
 0xb36   :  { %v2447_v55 = vpop.f32.mrf.mxu1 }
 0xb37   :  { %v2448_v56 = vadd.f32 %v5546_v50, %v2447_v55  ;;  %6226 = vmatprep.subr.msk.mxu1 %vm1009_vm11, %v2453_v54  ;;  %v475_v55 = vld [vmem:[%s8173_s9 + $0x8] sm:$0xff] }
 0xb38   :  { %6227 = vmatpush3.msk.msra.mxu1 %vm1009_vm11, %v2453_v54  ;;  %v476_v54 = vld [vmem:[%s8173_s9 + $0x10] sm:$0xff] }
 0xb39   :  { %6228 = vmatprep.subr.mxu1 %v2448_v56 }
 0xb3a   :  { %6229 = vmatpush3.msra.mxu1 %v2448_v56  ;;  %v474_v56 = vld [vmem:[%s8173_s9] sm:$0xff] }
 0xb3b   :  { %6238 = vmatprep.subr.mxu1 %v7545_v51 }
 0xbe8   :  { %v6185_v45 = vpop.f32.mrf.mxu0 }
 0xbe9   :  { %v2212_v59 = vadd.f32 %v6185_v45, %v1687_v57  ;;  %v6664_v57 = vld [vmem:[%s8170_s6 + $0x18] sm:$0xff] }
 0xbea   :  { %v2202_v60 = vpop.f32.mrf.mxu0  ;;  %v7564_v45 = vld [vmem:[%s8175_s11 + $0x78] sm:$0xff] }
 0xbeb   :  { %v2211_v61 = vadd.f32 %v2202_v60, %v1682_v58  ;;  %v493_v58 = vld [vmem:[%s8175_s11 + $0x70] sm:$0xff] }
 0xbf0   :  { %v6207_v63 = vpop.f32.mrf.mxu0 }
 0xbf1   :  { %v2372_v0 = vadd.f32 %v6207_v63, %v5543_v62 }
 0xbf2   :  { %v2366_v2 = vpop.f32.mrf.mxu0 }
 0xbf3   :  { %v2367_v4 = vadd.f32 %v5543_v62, %v2366_v2  ;;  %6219 = vmatprep.subr.msk.mxu0 %vm374_vm1, %v2372_v0 }
 0xbf4   :  { %6220 = vmatpush3.xpose.msk.msra.mxu0 %vm374_vm1, %v2372_v0 }
 0xbf5   :  { %6221 = vmatprep.subr.msk.mxu0 %vm374_vm1, %v2367_v4 }
 0xbf8   :  { %6222 = vmatpush3.xpose.msk.msra.mxu0 %vm374_vm1, %v2367_v4 }
 0xbfb   :  { %6224 = vmatmul.mubr.msk.f32.vlgmr.msra.gmra.mxu0 %vm374_vm1, %v2291_v38 }
 0xcbb   :  { %v6225_v41 = vpop.f32.mrf.mxu0 }
 0xcbc   :  { %v2544_v52 = vmul.f32 0.35355338, %v6225_v41 }
 0xcbd   :  { %v2534_v53 = vpop.f32.mrf.mxu0 }
 0xcbe   :  { %v2543_v5 = vmul.f32 0.35355338, %v2534_v53  ;;  %v2546_v6 = vadd.f32 %v2544_v52, %v7291_v15 }
 0xcc0   :  { %v2550_v7 = vsel %vm983_vm12, %v2546_v6, -inf  ;;  %v2545_v8 = vadd.f32 %v2543_v5, %v7296_v18  ;;  %v5483_v18 = vld [vmem:[%s8172_s8 + $0x18] sm:$0xff] }
 0xcc1   :  { %2551 = vmax.xlane.f32.xlu1 %v2550_v7  ;;  %6233 = vmatprep.subr.mxu0 %v5483_v18 }
 0xcc2   :  { %v2547_v9 = vsel %vm979_vm13, %v2545_v8, -inf  ;;  %6234 = vmatpush3.msra.mxu0 %v5483_v18  ;;  %v6665_v18 = vld [vmem:[%s8170_s6 + $0x10] sm:$0xff] }
 0xcc3   :  { %2548 = vmax.xlane.f32.xlu0 %v2547_v9  ;;  %6249 = vmatprep.subr.mxu0 %v7564_v45 }
 0xd4a   :  { %v2552_v10 = vpop.xlane.xlu1 %2551 }
 0xd4b   :  { %v2554_v11 = vsub.f32 %v2546_v6, %v2552_v10  ;;  %v5559_v10 = vld [vmem:[%s8168_s4 + $0x9] ss:$0 sm:$0xff] }
 0xd4c   :  { %v2549_v12 = vpop.xlane.xlu0 %2548 }
 0xd4d   :  { %v2557_v13 = vmul.f32 1.442695, %v2554_v11  ;;  %v2553_v14 = vsub.f32 %v2545_v8, %v2549_v12 }
 0xd4f   :  { %6584 = vpow2.f32 %v2557_v13  ;;  %v2555_v16 = vmul.f32 1.442695, %v2553_v14 }
 0xd51   :  { %6586 = vpow2.f32 %v2555_v16 }
 0xd5c   :  { %v6585_v17 = vpop.eup %6584 }
 0xd5d   :  { %v2562_v19 = vsel %vm983_vm12, %v6585_v17, 0.0 }
 0xd5e   :  { %v6587_v15 = vpop.eup %6586  ;;  %2563 = vadd.xlane.f32.xlu1 %v2562_v19 }
 0xd5f   :  { %v2559_v20 = vsel %vm979_vm13, %v6587_v15, 0.0 }
 0xd60   :  { %2560 = vadd.xlane.f32.xlu0 %v2559_v20 }
 0xde7   :  { %v2564_v21 = vpop.xlane.xlu1 %2563 }
 0xde8   :  { %6588 = vrcp.f32 %v2564_v21  ;;  %v6666_v21 = vld [vmem:[%s8170_s6 + $0x8] sm:$0xff] }
 0xde9   :  { %v2561_v22 = vpop.xlane.xlu0 %2560 }
 0xdea   :  { %6590 = vrcp.f32 %v2561_v22  ;;  %v6667_v22 = vld [vmem:[%s8170_s6] sm:$0xff] }
 0xdf5   :  { %v6589_v23 = vpop.eup %6588 }
 0xdf6   :  { %v2568_v26 = vmul.f32 %v6589_v23, %v6585_v17  ;;  %v5560_v17 = vld [vmem:[%s8168_s4 + $0xa] ss:$0 sm:$0xff]  ;;  %v7594_v23 = vld [vmem:[%s8170_s6 + $0x98] sm:$0xff] }
 0xdf7   :  { %v6591_v24 = vpop.eup %6590 }
 0xdf8   :  { %v2566_v25 = vmul.f32 %v6591_v24, %v6587_v15  ;;  %v7600_v24 = vld [vmem:[%s8175_s11 + $0x60] sm:$0xff] }
 0xdfa   :  { %6230 = vmatprep.mubr.msk.f32.mxu1 %vm979_vm13, %v2566_v25  ;;  %v7607_v25 = vld [vmem:[%s8175_s11 + $0x58] sm:$0xff] }
 0xdfb   :  { %6231 = vmatmul.mubr.msk.f32.vlgmr.msra.gmra.mxu1 %vm979_vm13, %v2568_v26  ;;  %v7614_v26 = vld [vmem:[%s8175_s11 + $0x50] sm:$0xff] }
 0xdfc   :  { %6239 = vmatpush3.msra.mxu1 %v7545_v51 }
 0xdfd   :  { %6240 = vmatprep.subr.mxu1 %v476_v54 }
 0xdfe   :  { %6241 = vmatpush3.msra.mxu1 %v476_v54 }
 0xdff   :  { %6242 = vmatprep.subr.mxu1 %v475_v55 }
 0xe00   :  { %6243 = vmatpush3.msra.mxu1 %v475_v55 }
 0xe01   :  { %6244 = vmatprep.subr.mxu1 %v474_v56 }
 0xe02   :  { %6245 = vmatpush3.msra.mxu1 %v474_v56 }
 0xe03   :  { %6284 = vmatprep.subr.mxu1 %v6664_v57 }
 0xebb   :  { %v6232_v27 = vpop.f32.mrf.mxu1 }
 0xebd   :  { %v2644_v28 = vpop.f32.mrf.mxu1 }
 0xebe   :  { %6235 = vmatprep.mubr.msk.f32.mxu0 %vm374_vm1, %v2644_v28  ;;  %v7628_v28 = vld [vmem:[%s8175_s11 + $0x40] sm:$0xff] }
 0xebf   :  { %6236 = vmatmul.mubr.msk.f32.vlgmr.msra.gmra.mxu0 %vm374_vm1, %v6232_v27  ;;  %v7621_v27 = vld [vmem:[%s8175_s11 + $0x48] sm:$0xff] }
 0xec0   :  { %6250 = vmatpush3.msra.mxu0 %v7564_v45 }
 0xec1   :  { %6251 = vmatprep.subr.mxu0 %v493_v58 }
 0xec2   :  { %6252 = vmatpush3.msra.mxu0 %v493_v58  ;;  %v5564_v58 = vld [vmem:[%s8168_s4 + $0xc] ss:$0 sm:$0xff] }
 0xf7f   :  { %v6237_v29 = vpop.f32.mrf.mxu0 }
 0xf80   :  { %v2735_v30 = vadd.f32 %v6237_v29, %v2212_v59  ;;  %v492_v59 = vld [vmem:[%s8175_s11 + $0x68] sm:$0xff]  ;;  %v7635_v29 = vld [vmem:[%s8175_s11 + $0x38] sm:$0xff] }
 0xf81   :  { %v2725_v32 = vpop.f32.mrf.mxu0  ;;  %6253 = vmatprep.subr.mxu0 %v492_v59 }
 0xf82   :  { %v2737_v33 = vadd.f32 %v2735_v30, %v7173_v3  ;;  %v2734_v34 = vadd.f32 %v2725_v32, %v2211_v61  ;;  %6254 = vmatpush3.msra.mxu0 %v492_v59  ;;  %v7642_v30 = vld [vmem:[%s8175_s11 + $0x30] sm:$0xff]  ;;  %v7656_v32 = vld [vmem:[%s8175_s11 + $0x20] sm:$0xff] }
 0xf83   :  { %6255 = vmatprep.subr.mxu0 %v7600_v24 }
 0xf84   :  { %v7529_v35 = vadd.f32 %v5558_v31, %v2737_v33  ;;  %v2736_v36 = vadd.f32 %v2734_v34, %v7169_v1  ;;  %6256 = vmatpush3.msra.mxu0 %v7600_v24  ;;  %v7663_v33 = vld [vmem:[%s8175_s11 + $0x18] sm:$0xff]  ;;  %v7670_v34 = vld [vmem:[%s8175_s11 + $0x10] sm:$0xff] }
 0xf85   :  { %6257 = vmatprep.subr.mxu0 %v7607_v25 }
 0xf86   :  { %v7532_v37 = vadd.f32 %v5558_v31, %v2736_v36  ;;  %v2747_v39 = vsel %vm588_vm6, %v7529_v35, 0.0  ;;  %6258 = vmatpush3.msra.mxu0 %v7607_v25  ;;  %v7649_v31 = vld [vmem:[%s8175_s11 + $0x28] sm:$0xff] }
 0xf87   :  { %2748 = vadd.xlane.f32.xlu1 %v2747_v39  ;;  %6259 = vmatprep.subr.mxu0 %v7614_v26  ;;  %v7677_v36 = vld [vmem:[%s8175_s11 + $0x8] sm:$0xff]  ;;  %v7682_v39 = vld [vmem:[%s8175_s11] sm:$0xff] }
 0xf88   :  { %v2744_v40 = vsel %vm584_vm5, %v7532_v37, 0.0  ;;  %6260 = vmatpush3.msra.mxu0 %v7614_v26 }
 0xf89   :  { %2745 = vadd.xlane.f32.xlu0 %v2744_v40  ;;  %6261 = vmatprep.subr.mxu0 %v7621_v27  ;;  %v5561_v40 = vld [vmem:[%s8174_s10] ss:$0 sm:$0xff] }
 0xf8a   :  { %6262 = vmatpush3.msra.mxu0 %v7621_v27 }
 0xf8b   :  { %6263 = vmatprep.subr.mxu0 %v7628_v28 }
 0xf8c   :  { %6264 = vmatpush3.msra.mxu0 %v7628_v28 }
 0xf8d   :  { %6265 = vmatprep.subr.mxu0 %v7635_v29 }
 0xf8e   :  { %6266 = vmatpush3.msra.mxu0 %v7635_v29 }
 0xf8f   :  { %6267 = vmatprep.subr.mxu0 %v7642_v30 }
 0xf90   :  { %6268 = vmatpush3.msra.mxu0 %v7642_v30 }
 0xf91   :  { %6269 = vmatprep.subr.mxu0 %v7649_v31 }
 0xf92   :  { %6270 = vmatpush3.msra.mxu0 %v7649_v31 }
 0xf93   :  { %6271 = vmatprep.subr.mxu0 %v7656_v32 }
 0xf94   :  { %6272 = vmatpush3.msra.mxu0 %v7656_v32 }
 0xf95   :  { %6273 = vmatprep.subr.mxu0 %v7663_v33 }
 0xf96   :  { %6274 = vmatpush3.msra.mxu0 %v7663_v33 }
 0xf97   :  { %6275 = vmatprep.subr.mxu0 %v7670_v34 }
 0xf98   :  { %6276 = vmatpush3.msra.mxu0 %v7670_v34 }
 0xf99   :  { %6277 = vmatprep.subr.mxu0 %v7677_v36 }
 0xf9a   :  { %6278 = vmatpush3.msra.mxu0 %v7677_v36 }
 0xf9b   :  { %6279 = vmatprep.subr.mxu0 %v7682_v39 }
 0xf9c   :  { %6280 = vmatpush3.msra.mxu0 %v7682_v39 }
0x1010   :  { %v2749_v43 = vpop.xlane.xlu1 %2748 }
0x1011   :  { %v2751_v44 = vmul.f32 0.03125, %v2749_v43 }
0x1012   :  { %v2746_v46 = vpop.xlane.xlu0 %2745 }
0x1013   :  { %v2753_v3 = vsub.f32 %v7529_v35, %v2751_v44  ;;  %v2750_v47 = vmul.f32 0.03125, %v2746_v46 }
0x1015   :  { %v2752_v48 = vsub.f32 %v7532_v37, %v2750_v47  ;;  %v2755_v49 = vmul.f32 %v2753_v3, %v2753_v3  ;;  %v2769_v12 = vmul.f32 %v5559_v10, %v2753_v3 }
0x1017   :  { %v2759_v1 = vsel %vm588_vm6, %v2755_v49, 0.0  ;;  %v2754_v42 = vmul.f32 %v2752_v48, %v2752_v48  ;;  %v2768_v13 = vmul.f32 %v5559_v10, %v2752_v48 }
0x1018   :  { %2760 = vadd.xlane.f32.xlu1 %v2759_v1 }
0x1019   :  { %v2756_v50 = vsel %vm584_vm5, %v2754_v42, 0.0 }
0x101a   :  { %2757 = vadd.xlane.f32.xlu0 %v2756_v50 }
0x10a1   :  { %v2761_v60 = vpop.xlane.xlu1 %2760 }
0x10a2   :  { %v2763_v61 = vmul.f32 0.032258064, %v2761_v60 }
0x10a3   :  { %v2758_v62 = vpop.xlane.xlu0 %2757 }
0x10a4   :  { %6592 = vrsqrt.f32 %v2763_v61  ;;  %v2762_v63 = vmul.f32 0.032258064, %v2758_v62  ;;  %vm2779_vm14 = vcmp.eq.f32.partialorder %v2763_v61, inf  ;;  %v2782_v4 = vand.u32 2147483648, %v2763_v61 }
0x10a5   :  { %vm2781_vm15 = vcmp.eq.f32.partialorder %v2763_v61, 0.0 }
0x10a6   :  { %6594 = vrsqrt.f32 %v2762_v63  ;;  %vm2772_vm0 = vcmp.eq.f32.partialorder %v2762_v63, inf  ;;  %v2775_v6 = vand.u32 2147483648, %v2762_v63  ;;  %vm2774_vm2 = vcmp.eq.f32.partialorder %v2762_v63, 0.0 }
0x10b1   :  { %v6593_v0 = vpop.eup %6592 }
0x10b2   :  { %v2778_v2 = vmul.f32 %v6593_v0, %v2763_v61 }
0x10b3   :  { %v6595_v38 = vpop.eup %6594 }
0x10b4   :  { %v2780_v41 = vsel %vm2779_vm14, %v2763_v61, %v2778_v2  ;;  %v2771_v53 = vmul.f32 %v6595_v38, %v2762_v63 }
0x10b5   :  { %v2783_v52 = vsel %vm2781_vm15, %v2782_v4, %v2780_v41  ;;  %vm5405_vm15 = vcmask 8192  }
0x10b6   :  { %v2785_v5 = vadd.f32 1e-06, %v2783_v52  ;;  %v2773_v7 = vsel %vm2772_vm0, %v2762_v63, %v2771_v53  ;;  %vm5407_vm0 = vcmask 13317  }
0x10b7   :  { %v2776_v8 = vsel %vm2774_vm2, %v2775_v6, %v2773_v7 }
0x10b8   :  { %6596 = vrcp.f32 %v2785_v5  ;;  %v2784_v9 = vadd.f32 1e-06, %v2776_v8 }
0x10ba   :  { %6598 = vrcp.f32 %v2784_v9 }
0x10c5   :  { %v6597_v11 = vpop.eup %6596 }
0x10c6   :  { %v2789_v16 = vmul.f32 %v6597_v11, %v2769_v12 }
0x10c7   :  { %v6599_v14 = vpop.eup %6598 }
0x10c8   :  { %v2787_v19 = vmul.f32 %v6599_v14, %v2768_v13  ;;  %v2795_v20 = vadd.f32 %v5560_v17, %v2789_v16 }
0x10ca   :  { %v2794_v15 = vadd.f32 %v5560_v17, %v2787_v19 }
0x10cc   :  { %6246 = vmatprep.mubr.msk.f32.mxu1 %vm584_vm5, %v2794_v15 }
0x10cd   :  { %6247 = vmatmul.mubr.msk.f32.vlgmr.msra.gmra.mxu1 %vm584_vm5, %v2795_v20 }
0x10ce   :  { %6285 = vmatpush3.msra.mxu1 %v6664_v57 }
0x10cf   :  { %6286 = vmatprep.subr.mxu1 %v6665_v18 }
0x10d0   :  { %6287 = vmatpush3.msra.mxu1 %v6665_v18 }
0x10d1   :  { %6288 = vmatprep.subr.mxu1 %v6666_v21 }
0x10d2   :  { %6289 = vmatpush3.msra.mxu1 %v6666_v21 }
0x10d3   :  { %6290 = vmatprep.subr.mxu1 %v6667_v22 }
0x10d4   :  { %6291 = vmatpush3.msra.mxu1 %v6667_v22 }
0x10d5   :  { %6295 = vmatprep.subr.mxu1 %v7594_v23 }
0x118d   :  { %v6248_v43 = vpop.f32.mrf.mxu1 }
0x118e   :  { %v2880_v44 = vadd.f32 %v6248_v43, %v5561_v40 }
0x118f   :  { %v2874_v46 = vpop.f32.mrf.mxu1 }
0x1190   :  { %v2886_v3 = vmul.f32 0.70710677, %v2880_v44  ;;  %v2875_v47 = vadd.f32 %v5561_v40, %v2874_v46  ;;  %v2884_v55 = vmul.f32 0.5, %v2880_v44  ;;  %v6669_v46 = vld [vmem:[%s8168_s4 + $0x7] ss:$0 sm:$0xff] }
0x1192   :  { %6600 = verf.f32 %v2886_v3  ;;  %v2885_v48 = vmul.f32 0.70710677, %v2875_v47  ;;  %v2883_v50 = vmul.f32 0.5, %v2875_v47 }
0x1194   :  { %6602 = verf.f32 %v2885_v48 }
0x119f   :  { %v6601_v49 = vpop.eup %6600 }
0x11a0   :  { %v2890_v42 = vadd.f32 1.0, %v6601_v49 }
0x11a1   :  { %v6603_v1 = vpop.eup %6602 }
0x11a2   :  { %v2889_v54 = vadd.f32 1.0, %v6603_v1  ;;  %v2892_v57 = vmul.f32 %v2890_v42, %v2884_v55  ;;  %v6670_v42 = vld [vmem:[%s8168_s4 + $0x8] ss:$0 sm:$0xff]  ;;  %v6671_v55 = vld [vmem:[%s8170_s6 + $0x90] sm:$0xff] }
0x11a4   :  { %v2891_v56 = vmul.f32 %v2889_v54, %v2883_v50 }
0x11a6   :  { %6281 = vmatprep.mubr.f32.mxu0 %v2891_v56  ;;  %v6672_v56 = vld [vmem:[%s8170_s6 + $0x88] sm:$0xff] }
0x11a7   :  { %6282 = vmatmul.mubr.f32.vlgmr.msra.gmra.mxu0 %v2892_v57  ;;  %v6673_v57 = vld [vmem:[%s8170_s6 + $0x80] sm:$0xff] }
0x1267   :  { %v6283_v59 = vpop.f32.mrf.mxu0 }
0x1268   :  { %v2969_v60 = vadd.f32 %v6283_v59, %v7529_v35  ;;  %v6676_v59 = vld [vmem:[%s8170_s6 + $0x108] sm:$0xff] }
0x1269   :  { %v2959_v61 = vpop.f32.mrf.mxu0 }
0x126a   :  { %v7695_v62 = vadd.f32 %v5564_v58, %v2969_v60  ;;  %v2968_v63 = vadd.f32 %v2959_v61, %v7532_v37  ;;  %v6677_v60 = vld [vmem:[%s8170_s6 + $0x100] sm:$0xff] }
0x126c   :  { %v7698_v0 = vadd.f32 %v5564_v58, %v2968_v63  ;;  %v2979_v2 = vsel %vm588_vm6, %v7695_v62, 0.0  ;;  %v6675_v58 = vld [vmem:[%s8170_s6 + $0x110] sm:$0xff] }
0x126d   :  { %2980 = vadd.xlane.f32.xlu1 %v2979_v2  ;;  %v6678_v2 = vld [vmem:[%s8171_s7] ss:$0 sm:$0xff] }
0x126e   :  { %v2976_v4 = vsel %vm584_vm5, %v7698_v0, 0.0 }
0x126f   :  { %2977 = vadd.xlane.f32.xlu0 %v2976_v4 }
0x12f6   :  { %v2981_v38 = vpop.xlane.xlu1 %2980 }
0x12f7   :  { %v2983_v41 = vmul.f32 0.03125, %v2981_v38 }
0x12f8   :  { %v2978_v52 = vpop.xlane.xlu0 %2977 }
0x12f9   :  { %v2985_v35 = vsub.f32 %v7695_v62, %v2983_v41  ;;  %v2982_v53 = vmul.f32 0.03125, %v2978_v52  ;;  %v6679_v41 = vld [vmem:[%s8171_s7 + $0x4] ss:$0 sm:$0xff] }
0x12fb   :  { %v2984_v5 = vsub.f32 %v7698_v0, %v2982_v53  ;;  %v2987_v6 = vmul.f32 %v2985_v35, %v2985_v35  ;;  %v2997_v3 = vmul.f32 %v6669_v46, %v2985_v35 }
0x12fd   :  { %v2991_v37 = vsel %vm588_vm6, %v2987_v6, 0.0  ;;  %v2986_v7 = vmul.f32 %v2984_v5, %v2984_v5  ;;  %v2996_v47 = vmul.f32 %v6669_v46, %v2984_v5  ;;  %v6688_v46 = vld [vmem:[%s8171_s7 + $0x5] ss:$0 sm:$0xff] }
0x12fe   :  { %2992 = vadd.xlane.f32.xlu1 %v2991_v37  ;;  %v6680_v37 = vld [vmem:[%s8171_s7 + $0x8] ss:$0 sm:$0xff] }
0x12ff   :  { %v2988_v8 = vsel %vm584_vm5, %v2986_v7, 0.0 }
0x1300   :  { %2989 = vadd.xlane.f32.xlu0 %v2988_v8  ;;  %v6681_v8 = vld [vmem:[%s8170_s6 + $0xb8] sm:$0xff] }
0x1387   :  { %v2993_v9 = vpop.xlane.xlu1 %2992 }
0x1388   :  { %v2995_v10 = vmul.f32 0.032258064, %v2993_v9 }
0x1389   :  { %v2990_v11 = vpop.xlane.xlu0 %2989 }
0x138a   :  { %6604 = vrsqrt.f32 %v2995_v10  ;;  %v2994_v12 = vmul.f32 0.032258064, %v2990_v11  ;;  %vm3007_vm3 = vcmp.eq.f32.partialorder %v2995_v10, inf  ;;  %v3010_v16 = vand.u32 2147483648, %v2995_v10  ;;  %v6682_v11 = vld [vmem:[%s8170_s6 + $0xb0] sm:$0xff] }
0x138b   :  { %vm3009_vm4 = vcmp.eq.f32.partialorder %v2995_v10, 0.0 }
0x138c   :  { %6606 = vrsqrt.f32 %v2994_v12  ;;  %vm3000_vm7 = vcmp.eq.f32.partialorder %v2994_v12, inf  ;;  %v3003_v21 = vand.u32 2147483648, %v2994_v12  ;;  %vm3002_vm8 = vcmp.eq.f32.partialorder %v2994_v12, 0.0 }
0x1397   :  { %v6605_v13 = vpop.eup %6604 }
0x1398   :  { %v3006_v14 = vmul.f32 %v6605_v13, %v2995_v10  ;;  %v6684_v13 = vld [vmem:[%s8170_s6 + $0xa8] sm:$0xff] }
0x1399   :  { %v6607_v17 = vpop.eup %6606 }
0x139a   :  { %v3008_v19 = vsel %vm3007_vm3, %v2995_v10, %v3006_v14  ;;  %v2999_v20 = vmul.f32 %v6607_v17, %v2994_v12  ;;  %v6685_v14 = vld [vmem:[%s8170_s6 + $0xa0] sm:$0xff] }
0x139b   :  { %v3011_v15 = vsel %vm3009_vm4, %v3010_v16, %v3008_v19 }
0x139c   :  { %v3013_v18 = vadd.f32 1e-06, %v3011_v15  ;;  %v3001_v22 = vsel %vm3000_vm7, %v2994_v12, %v2999_v20  ;;  %v6683_v12 = vld [vmem:[%s8170_s6 + $0x38] sm:$0xff]  ;;  %v7791_v20 = vld [vmem:[%s8169_s5 + $0x8] sm:$0x3] }
0x139d   :  { %v3004_v40 = vsel %vm3002_vm8, %v3003_v21, %v3001_v22  ;;  %v7798_v22 = vld [vmem:[%s8169_s5] sm:$0xff] }
0x139e   :  { %6608 = vrcp.f32 %v3013_v18  ;;  %v3012_v43 = vadd.f32 1e-06, %v3004_v40 }
0x13a0   :  { %6610 = vrcp.f32 %v3012_v43 }
0x13ab   :  { %v6609_v44 = vpop.eup %6608 }
0x13ac   :  { %v3017_v49 = vmul.f32 %v6609_v44, %v2997_v3 }
0x13ad   :  { %v6611_v48 = vpop.eup %6610 }
0x13ae   :  { %v3015_v1 = vmul.f32 %v6611_v48, %v2996_v47  ;;  %v7716_v54 = vadd.f32 %v6670_v42, %v3017_v49  ;;  %v6689_v49 = vld [vmem:[%s8172_s8 + $0x8] sm:$0xff] }
0x13b0   :  { %v7714_v50 = vadd.f32 %v6670_v42, %v3015_v1 }
0x13b2   :  { %6292 = vmatprep.mubr.msk.f32.mxu1 %vm584_vm5, %v7714_v50 }
0x13b3   :  { %6293 = vmatmul.mubr.msk.f32.vlgmr.msra.gmra.mxu1 %vm584_vm5, %v7716_v54 }
0x13b4   :  { %6296 = vmatpush3.msra.mxu1 %v7594_v23  ;;  %6303 = vmatprep.mubr.msk.f32.mxu1 %vm584_vm5, %v7714_v50  ;;  %v6674_v23 = vld [vmem:[%s8170_s6 + $0x118] sm:$0xff] }
0x13b5   :  { %6297 = vmatprep.subr.mxu1 %v6671_v55 }
0x13b6   :  { %6298 = vmatpush3.msra.mxu1 %v6671_v55 }
0x13b7   :  { %6299 = vmatprep.subr.mxu1 %v6672_v56 }
0x13b8   :  { %6300 = vmatpush3.msra.mxu1 %v6672_v56 }
0x13b9   :  { %6301 = vmatprep.subr.mxu1 %v6673_v57 }
0x13ba   :  { %6302 = vmatpush3.msra.mxu1 %v6673_v57 }
0x13bb   :  { %6304 = vmatmul.mubr.msk.f32.vlgmr.msra.gmra.mxu1 %vm584_vm5, %v7716_v54  ;;  %6306 = vmatprep.subr.mxu1 %v6674_v23 }
0x13bc   :  { %6307 = vmatpush3.msra.mxu1 %v6674_v23  ;;  %6314 = vmatprep.mubr.msk.f32.mxu1 %vm584_vm5, %v7714_v50 }
0x13bd   :  { %6308 = vmatprep.subr.mxu1 %v6675_v58 }
0x13be   :  { %6309 = vmatpush3.msra.mxu1 %v6675_v58 }
0x13bf   :  { %6310 = vmatprep.subr.mxu1 %v6676_v59 }
0x13c0   :  { %6311 = vmatpush3.msra.mxu1 %v6676_v59 }
0x13c1   :  { %6312 = vmatprep.subr.mxu1 %v6677_v60 }
0x13c2   :  { %6313 = vmatpush3.msra.mxu1 %v6677_v60 }
0x13c3   :  { %6315 = vmatmul.mubr.msk.f32.vlgmr.msra.gmra.mxu1 %vm584_vm5, %v7716_v54 }
0x1473   :  { %v6294_v61 = vpop.f32.mrf.mxu1 }
0x1474   :  { %v3098_v6 = vadd.f32 %v6678_v2, %v6294_v61 }
0x1475   :  { %v3092_v63 = vpop.f32.mrf.mxu1 }
0x1476   :  { %v3093_v4 = vadd.f32 %v6678_v2, %v3092_v63 }
0x1478   :  { %6321 = vmatprep.mubr.msk.f32.mxu1 %vm374_vm1, %v3093_v4 }
0x147b   :  { %v6305_v38 = vpop.f32.mrf.mxu1 }
0x147c   :  { %v3173_v52 = vadd.f32 %v6679_v41, %v6305_v38 }
0x147d   :  { %v3167_v35 = vpop.f32.mrf.mxu1 }
0x147e   :  { %v3168_v53 = vadd.f32 %v6679_v41, %v3167_v35  ;;  %6317 = vmatprep.subr.msk.mxu1 %vm374_vm1, %v3173_v52  ;;  %v6690_v35 = vld [vmem:[%s8170_s6 + $0x30] sm:$0xff] }
0x147f   :  { %6318 = vmatpush3.xpose.msk.msra.mxu1 %vm374_vm1, %v3173_v52 }
0x1480   :  { %6319 = vmatprep.subr.msk.mxu1 %vm374_vm1, %v3168_v53 }
0x1483   :  { %v6316_v5 = vpop.f32.mrf.mxu1  ;;  %6320 = vmatpush3.xpose.msk.msra.mxu1 %vm374_vm1, %v3168_v53  ;;  %v6691_v53 = vld [vmem:[%s8170_s6 + $0x28] sm:$0xff] }
0x1484   :  { %v3248_v7 = vadd.f32 %v6680_v37, %v6316_v5  ;;  %6342 = vmatprep.subr.mxu1 %v6681_v8  ;;  %v6692_v5 = vld [vmem:[%s8170_s6 + $0x20] sm:$0xff] }
0x1485   :  { %v3242_v9 = vpop.f32.mrf.mxu1 }
0x1486   :  { %v3243_v10 = vadd.f32 %v6680_v37, %v3242_v9  ;;  %6322 = vmatmul.mubr.msk.f32.vlgmr.msra.gmra.mxu1 %vm374_vm1, %v3098_v6  ;;  %6324 = vmatprep.subr.msk.mxu0 %vm1009_vm11, %v3248_v7  ;;  %v6693_v6 = vld [vmem:[%s8170_s6 + $0x138] sm:$0xff]  ;;  %v6694_v37 = vld [vmem:[%s8170_s6 + $0x130] sm:$0xff] }
0x1487   :  { %6325 = vmatpush3.msk.msra.mxu0 %vm1009_vm11, %v3248_v7  ;;  %6343 = vmatpush3.msra.mxu1 %v6681_v8  ;;  %v6695_v7 = vld [vmem:[%s8170_s6 + $0x128] sm:$0xff]  ;;  %v6696_v8 = vld [vmem:[%s8170_s6 + $0x120] sm:$0xff] }
0x1488   :  { %6350 = vmatprep.mubr.msk.f32.mxu1 %vm584_vm5, %v7714_v50  ;;  %6326 = vmatprep.subr.mxu0 %v3243_v10 }
0x1489   :  { %6344 = vmatprep.subr.mxu1 %v6682_v11  ;;  %6327 = vmatpush3.msra.mxu0 %v3243_v10 }
0x148a   :  { %6345 = vmatpush3.msra.mxu1 %v6682_v11  ;;  %6331 = vmatprep.subr.mxu0 %v6683_v12 }
0x148b   :  { %6346 = vmatprep.subr.mxu1 %v6684_v13 }
0x148c   :  { %6347 = vmatpush3.msra.mxu1 %v6684_v13  ;;  %v6697_v13 = vld [vmem:[%s8171_s7 + $0x1] ss:$0 sm:$0xff] }
0x148d   :  { %6348 = vmatprep.subr.mxu1 %v6685_v14 }
0x148e   :  { %6349 = vmatpush3.msra.mxu1 %v6685_v14 }
0x148f   :  { %6351 = vmatmul.mubr.msk.f32.vlgmr.msra.gmra.mxu1 %vm584_vm5, %v7716_v54 }
0x1546   :  { %v6323_v16 = vpop.f32.mrf.mxu1 }
0x1547   :  { %v3339_v17 = vmul.f32 0.35355338, %v6323_v16 }
0x1548   :  { %v3329_v19 = vpop.f32.mrf.mxu1 }
0x1549   :  { %v3338_v15 = vmul.f32 0.35355338, %v3329_v19  ;;  %v3341_v18 = vadd.f32 %v7791_v20, %v3339_v17  ;;  %v7853_v19 = vld [vmem:[%s8170_s6 + $0x58] sm:$0xff] }
0x154b   :  { %v3345_v21 = vsel %vm983_vm12, %v3341_v18, -inf  ;;  %v3340_v40 = vadd.f32 %v7798_v22, %v3338_v15  ;;  %v6699_v15 = vld [vmem:[%s8171_s7 + $0x9] ss:$0 sm:$0xff] }
0x154c   :  { %3346 = vmax.xlane.f32.xlu1 %v3345_v21 }
0x154d   :  { %v3342_v43 = vsel %vm979_vm13, %v3340_v40, -inf }
0x154e   :  { %3343 = vmax.xlane.f32.xlu0 %v3342_v43  ;;  %v6700_v43 = vld [vmem:[%s8172_s8] sm:$0xff] }
0x154f   :  { %v6352_v44 = vpop.f32.mrf.mxu1 }
0x1550   :  { %v3595_v3 = vadd.f32 %v6688_v46, %v6352_v44 }
0x1551   :  { %v3589_v47 = vpop.f32.mrf.mxu1 }
0x1552   :  { %v3590_v48 = vadd.f32 %v6688_v46, %v3589_v47  ;;  %6364 = vmatprep.subr.msk.mxu1 %vm374_vm1, %v3595_v3 }
0x1553   :  { %6365 = vmatpush3.xpose.msk.msra.mxu1 %vm374_vm1, %v3595_v3 }
0x1554   :  { %6366 = vmatprep.subr.msk.mxu1 %vm374_vm1, %v3590_v48 }
0x1557   :  { %6367 = vmatpush3.xpose.msk.msra.mxu1 %vm374_vm1, %v3590_v48 }
0x1558   :  { %6378 = vmatprep.subr.mxu1 %v6689_v49 }
0x15d5   :  { %v3347_v1 = vpop.xlane.xlu1 %3346 }
0x15d6   :  { %v3349_v42 = vsub.f32 %v3341_v18, %v3347_v1 }
0x15d7   :  { %v3344_v55 = vpop.xlane.xlu0 %3343 }
0x15d8   :  { %v3352_v56 = vmul.f32 1.442695, %v3349_v42  ;;  %v3348_v57 = vsub.f32 %v3340_v40, %v3344_v55 }
0x15da   :  { %6612 = vpow2.f32 %v3352_v56  ;;  %v3350_v23 = vmul.f32 1.442695, %v3348_v57 }
0x15dc   :  { %6614 = vpow2.f32 %v3350_v23 }
0x15e7   :  { %v6613_v58 = vpop.eup %6612 }
0x15e8   :  { %v3357_v59 = vsel %vm983_vm12, %v6613_v58, 0.0 }
0x15e9   :  { %v6615_v60 = vpop.eup %6614  ;;  %3358 = vadd.xlane.f32.xlu1 %v3357_v59 }
0x15ea   :  { %v3354_v61 = vsel %vm979_vm13, %v6615_v60, 0.0 }
0x15eb   :  { %3355 = vadd.xlane.f32.xlu0 %v3354_v61 }
0x1672   :  { %v3359_v63 = vpop.xlane.xlu1 %3358 }
0x1673   :  { %6616 = vrcp.f32 %v3359_v63 }
0x1674   :  { %v3356_v2 = vpop.xlane.xlu0 %3355 }
0x1675   :  { %6618 = vrcp.f32 %v3356_v2 }
0x1680   :  { %v6617_v4 = vpop.eup %6616 }
0x1681   :  { %v3363_v52 = vmul.f32 %v6617_v4, %v6613_v58 }
0x1682   :  { %v6619_v38 = vpop.eup %6618 }
0x1683   :  { %v3361_v41 = vmul.f32 %v6619_v38, %v6615_v60 }
0x1685   :  { %6328 = vmatprep.mubr.msk.f32.mxu0 %vm979_vm13, %v3361_v41 }
0x1686   :  { %6329 = vmatmul.mubr.msk.f32.vlgmr.msra.gmra.mxu0 %vm979_vm13, %v3363_v52 }
0x1687   :  { %6332 = vmatpush3.msra.mxu0 %v6683_v12  ;;  %6339 = vmatprep.mubr.msk.f32.mxu0 %vm584_vm5, %v7714_v50 }
0x1688   :  { %6333 = vmatprep.subr.mxu0 %v6690_v35 }
0x1689   :  { %6334 = vmatpush3.msra.mxu0 %v6690_v35 }
0x168a   :  { %6335 = vmatprep.subr.mxu0 %v6691_v53 }
0x168b   :  { %6336 = vmatpush3.msra.mxu0 %v6691_v53 }
0x168c   :  { %6337 = vmatprep.subr.mxu0 %v6692_v5 }
0x168d   :  { %6338 = vmatpush3.msra.mxu0 %v6692_v5  ;;  %v6701_v5 = vld [vmem:[%s8170_s6 + $0xd8] sm:$0xff] }
0x168e   :  { %6340 = vmatmul.mubr.msk.f32.vlgmr.msra.gmra.mxu0 %vm584_vm5, %v7716_v54  ;;  %6353 = vmatprep.subr.mxu0 %v6693_v6 }
0x168f   :  { %6354 = vmatpush3.msra.mxu0 %v6693_v6  ;;  %6361 = vmatprep.mubr.msk.f32.mxu0 %vm584_vm5, %v7714_v50  ;;  %v6702_v6 = vld [vmem:[%s8170_s6 + $0xd0] sm:$0xff] }
0x1690   :  { %6355 = vmatprep.subr.mxu0 %v6694_v37 }
0x1691   :  { %6356 = vmatpush3.msra.mxu0 %v6694_v37  ;;  %v6703_v37 = vld [vmem:[%s8170_s6 + $0xc8] sm:$0xff] }
0x1692   :  { %6357 = vmatprep.subr.mxu0 %v6695_v7 }
0x1693   :  { %6358 = vmatpush3.msra.mxu0 %v6695_v7  ;;  %v6704_v7 = vld [vmem:[%s8170_s6 + $0xc0] sm:$0xff] }
0x1694   :  { %6359 = vmatprep.subr.mxu0 %v6696_v8 }
0x1695   :  { %6360 = vmatpush3.msra.mxu0 %v6696_v8 }
0x1696   :  { %6362 = vmatmul.mubr.msk.f32.vlgmr.msra.gmra.mxu0 %vm584_vm5, %v7716_v54 }
0x1746   :  { %v6330_v9 = vpop.f32.mrf.mxu0 }
0x1748   :  { %v3439_v10 = vpop.f32.mrf.mxu0 }
0x174e   :  { %v6341_v11 = vpop.f32.mrf.mxu0 }
0x174f   :  { %v3520_v16 = vadd.f32 %v6697_v13, %v6341_v11  ;;  %v6705_v11 = vld [vmem:[%s8170_s6 + $0x50] sm:$0xff] }
0x1750   :  { %v3514_v12 = vpop.f32.mrf.mxu0 }
0x1751   :  { %v3515_v14 = vadd.f32 %v6697_v13, %v3514_v12  ;;  %v6706_v12 = vld [vmem:[%s8170_s6 + $0x48] sm:$0xff] }
0x1753   :  { %6368 = vmatprep.mubr.msk.f32.mxu1 %vm374_vm1, %v3515_v14  ;;  %v6707_v14 = vld [vmem:[%s8170_s6 + $0x40] sm:$0xff] }
0x1754   :  { %6369 = vmatmul.mubr.msk.f32.vlgmr.msra.gmra.mxu1 %vm374_vm1, %v3520_v16 }
0x1755   :  { %6379 = vmatpush3.msra.mxu1 %v6689_v49 }
0x1756   :  { %v6363_v17 = vpop.f32.mrf.mxu0  ;;  %6388 = vmatprep.subr.mxu1 %v7853_v19 }
0x1757   :  { %v3670_v18 = vadd.f32 %v6699_v15, %v6363_v17  ;;  %v6708_v17 = vld [vmem:[%s8170_s6 + $0x158] sm:$0xff] }
0x1758   :  { %v3664_v21 = vpop.f32.mrf.mxu0 }
0x1759   :  { %v3665_v40 = vadd.f32 %v6699_v15, %v3664_v21  ;;  %6371 = vmatprep.subr.msk.mxu0 %vm1009_vm11, %v3670_v18  ;;  %v6710_v21 = vld [vmem:[%s8170_s6 + $0x150] sm:$0xff] }
0x175a   :  { %6372 = vmatpush3.msk.msra.mxu0 %vm1009_vm11, %v3670_v18 }
0x175b   :  { %6373 = vmatprep.subr.mxu0 %v3665_v40 }
0x175c   :  { %6374 = vmatpush3.msra.mxu0 %v3665_v40 }
0x175d   :  { %6383 = vmatprep.subr.mxu0 %v6700_v43 }
0x1814   :  { %v6370_v44 = vpop.f32.mrf.mxu1 }
0x1815   :  { %v3761_v46 = vmul.f32 0.35355338, %v6370_v44  ;;  %v6712_v44 = vld [vmem:[%s8170_s6 + $0x140] sm:$0xff] }
0x1816   :  { %v3751_v3 = vpop.f32.mrf.mxu1 }
0x1817   :  { %v3760_v47 = vmul.f32 0.35355338, %v3751_v3  ;;  %v3763_v48 = vadd.f32 %v7791_v20, %v3761_v46  ;;  %v6713_v46 = vld [vmem:[%s8172_s8 + $0x10] sm:$0xff] }
0x1819   :  { %v3767_v49 = vsel %vm983_vm12, %v3763_v48, -inf  ;;  %v3762_v1 = vadd.f32 %v7798_v22, %v3760_v47 }
0x181a   :  { %3768 = vmax.xlane.f32.xlu1 %v3767_v49 }
0x181b   :  { %v3764_v42 = vsel %vm979_vm13, %v3762_v1, -inf }
0x181c   :  { %3765 = vmax.xlane.f32.xlu0 %v3764_v42 }
0x18a3   :  { %v3769_v55 = vpop.xlane.xlu1 %3768 }
0x18a4   :  { %v3771_v56 = vsub.f32 %v3763_v48, %v3769_v55 }
0x18a5   :  { %v3766_v57 = vpop.xlane.xlu0 %3765 }
0x18a6   :  { %v3774_v23 = vmul.f32 1.442695, %v3771_v56  ;;  %v3770_v58 = vsub.f32 %v3762_v1, %v3766_v57  ;;  %v6714_v1 = vld [vmem:[%s8171_s7 + $0x2] ss:$0 sm:$0xff]  ;;  %v7948_v57 = vld [vmem:[%s8170_s6 + $0xf8] sm:$0xff] }
0x18a8   :  { %6620 = vpow2.f32 %v3774_v23  ;;  %v3772_v59 = vmul.f32 1.442695, %v3770_v58  ;;  %v6716_v23 = vld [vmem:[%s8171_s7 + $0xa] ss:$0 sm:$0xff] }
0x18aa   :  { %6622 = vpow2.f32 %v3772_v59 }
0x18b5   :  { %v6621_v60 = vpop.eup %6620 }
0x18b6   :  { %v3779_v61 = vsel %vm983_vm12, %v6621_v60, 0.0 }
0x18b7   :  { %v6623_v63 = vpop.eup %6622  ;;  %3780 = vadd.xlane.f32.xlu1 %v3779_v61  ;;  %v6717_v61 = vld [vmem:[%s8170_s6 + $0x78] sm:$0xff] }
0x18b8   :  { %v3776_v2 = vsel %vm979_vm13, %v6623_v63, 0.0 }
0x18b9   :  { %3777 = vadd.xlane.f32.xlu0 %v3776_v2 }
0x1940   :  { %v3781_v4 = vpop.xlane.xlu1 %3780 }
0x1941   :  { %6624 = vrcp.f32 %v3781_v4 }
0x1942   :  { %v3778_v38 = vpop.xlane.xlu0 %3777 }
0x1943   :  { %6626 = vrcp.f32 %v3778_v38 }
0x194e   :  { %v6625_v41 = vpop.eup %6624 }
0x194f   :  { %v3785_v53 = vmul.f32 %v6625_v41, %v6621_v60 }
0x1950   :  { %v6627_v52 = vpop.eup %6626 }
0x1951   :  { %v3783_v35 = vmul.f32 %v6627_v52, %v6623_v63 }
0x1953   :  { %6375 = vmatprep.mubr.msk.f32.mxu0 %vm979_vm13, %v3783_v35 }
0x1954   :  { %6376 = vmatmul.mubr.msk.f32.vlgmr.msra.gmra.mxu0 %vm979_vm13, %v3785_v53 }
0x1955   :  { %6385 = vmatprep.mubr.msk.f32.mxu0 %vm374_vm1, %v3439_v10  ;;  %6384 = vmatpush3.msra.mxu0 %v6700_v43  ;;  %v6711_v43 = vld [vmem:[%s8170_s6 + $0x148] sm:$0xff] }
0x1956   :  { %6399 = vmatprep.subr.mxu0 %v6701_v5 }
0x1958   :  { %6386 = vmatmul.mubr.msk.f32.vlgmr.msra.gmra.mxu0 %vm374_vm1, %v6330_v9 }
0x1959   :  { %6400 = vmatpush3.msra.mxu0 %v6701_v5  ;;  %6407 = vmatprep.mubr.msk.f32.mxu0 %vm584_vm5, %v7714_v50 }
0x195a   :  { %6401 = vmatprep.subr.mxu0 %v6702_v6 }
0x195b   :  { %6402 = vmatpush3.msra.mxu0 %v6702_v6 }
0x195c   :  { %6403 = vmatprep.subr.mxu0 %v6703_v37 }
0x195d   :  { %6404 = vmatpush3.msra.mxu0 %v6703_v37 }
0x195e   :  { %6405 = vmatprep.subr.mxu0 %v6704_v7 }
0x195f   :  { %6406 = vmatpush3.msra.mxu0 %v6704_v7 }
0x1960   :  { %6408 = vmatmul.mubr.msk.f32.vlgmr.msra.gmra.mxu0 %vm584_vm5, %v7716_v54 }
0x1a14   :  { %v6377_v8 = vpop.f32.mrf.mxu0 }
0x1a16   :  { %v3861_v9 = vpop.f32.mrf.mxu0 }
0x1a17   :  { %6380 = vmatprep.mubr.msk.f32.mxu1 %vm374_vm1, %v3861_v9 }
0x1a18   :  { %6381 = vmatmul.mubr.msk.f32.vlgmr.msra.gmra.mxu1 %vm374_vm1, %v6377_v8  ;;  %v7895_v10 = vpop.f32.mrf.mxu0 }
0x1a19   :  { %6389 = vmatpush3.msra.mxu1 %v7853_v19  ;;  %6396 = vmatprep.mubr.msk.f32.mxu1 %vm584_vm5, %v7714_v50  ;;  %v6709_v19 = vld [vmem:[%s8171_s7 + $0x6] ss:$0 sm:$0xff] }
0x1a1a   :  { %6390 = vmatprep.subr.mxu1 %v6705_v11  ;;  %v7903_v13 = vpop.f32.mrf.mxu0 }
0x1a1b   :  { %6391 = vmatpush3.msra.mxu1 %v6705_v11 }
0x1a1c   :  { %6392 = vmatprep.subr.mxu1 %v6706_v12 }
0x1a1d   :  { %6393 = vmatpush3.msra.mxu1 %v6706_v12 }
0x1a1e   :  { %6394 = vmatprep.subr.mxu1 %v6707_v14 }
0x1a1f   :  { %6395 = vmatpush3.msra.mxu1 %v6707_v14 }
0x1a20   :  { %6397 = vmatmul.mubr.msk.f32.vlgmr.msra.gmra.mxu1 %vm584_vm5, %v7716_v54  ;;  %v6409_v16 = vpop.f32.mrf.mxu0  ;;  %6410 = vmatprep.subr.mxu1 %v6708_v17 }
0x1a21   :  { %v4179_v15 = vadd.f32 %v6709_v19, %v6409_v16  ;;  %6411 = vmatpush3.msra.mxu1 %v6708_v17  ;;  %6418 = vmatprep.mubr.msk.f32.mxu1 %vm584_vm5, %v7714_v50 }
0x1a22   :  { %v4173_v18 = vpop.f32.mrf.mxu0  ;;  %6412 = vmatprep.subr.mxu1 %v6710_v21 }
0x1a23   :  { %v4174_v40 = vadd.f32 %v6709_v19, %v4173_v18  ;;  %6413 = vmatpush3.msra.mxu1 %v6710_v21  ;;  %6421 = vmatprep.subr.msk.mxu0 %vm374_vm1, %v4179_v15 }
0x1a24   :  { %6414 = vmatprep.subr.mxu1 %v6711_v43  ;;  %6422 = vmatpush3.xpose.msk.msra.mxu0 %vm374_vm1, %v4179_v15 }
0x1a25   :  { %6415 = vmatpush3.msra.mxu1 %v6711_v43  ;;  %6423 = vmatprep.subr.msk.mxu0 %vm374_vm1, %v4174_v40  ;;  %v6718_v43 = vld [vmem:[%s8170_s6 + $0x70] sm:$0xff] }
0x1a26   :  { %6416 = vmatprep.subr.mxu1 %v6712_v44 }
0x1a27   :  { %6417 = vmatpush3.msra.mxu1 %v6712_v44  ;;  %v6719_v44 = vld [vmem:[%s8170_s6 + $0x68] sm:$0xff] }
0x1a28   :  { %6419 = vmatmul.mubr.msk.f32.vlgmr.msra.gmra.mxu1 %vm584_vm5, %v7716_v54  ;;  %6424 = vmatpush3.xpose.msk.msra.mxu0 %vm374_vm1, %v4174_v40 }
0x1a29   :  { %6435 = vmatprep.subr.mxu0 %v6713_v46 }
0x1ad8   :  { %v7936_v3 = vpop.f32.mrf.mxu1 }
0x1ada   :  { %v7938_v47 = vpop.f32.mrf.mxu1 }
0x1ae0   :  { %v6398_v48 = vpop.f32.mrf.mxu1 }
0x1ae1   :  { %v4104_v55 = vadd.f32 %v6714_v1, %v6398_v48  ;;  %v6721_v48 = vld [vmem:[%s8170_s6 + $0x178] sm:$0xff] }
0x1ae2   :  { %v4098_v49 = vpop.f32.mrf.mxu1 }
0x1ae3   :  { %v4099_v42 = vadd.f32 %v6714_v1, %v4098_v49  ;;  %v6722_v49 = vld [vmem:[%s8170_s6 + $0x170] sm:$0xff]  ;;  %v6723_v1 = vld [vmem:[%s8170_s6 + $0x168] sm:$0xff] }
0x1ae5   :  { %6425 = vmatprep.mubr.msk.f32.mxu0 %vm374_vm1, %v4099_v42  ;;  %v6724_v42 = vld [vmem:[%s8170_s6 + $0x160] sm:$0xff] }
0x1ae6   :  { %6426 = vmatmul.mubr.msk.f32.vlgmr.msra.gmra.mxu0 %vm374_vm1, %v4104_v55 }
0x1ae7   :  { %6436 = vmatpush3.msra.mxu0 %v6713_v46  ;;  %v6720_v46 = vld [vmem:[%s8170_s6 + $0x60] sm:$0xff] }
0x1ae8   :  { %v6420_v56 = vpop.f32.mrf.mxu1  ;;  %6451 = vmatprep.subr.mxu0 %v7948_v57 }
0x1ae9   :  { %v4254_v58 = vadd.f32 %v6716_v23, %v6420_v56 }
0x1aea   :  { %v4248_v59 = vpop.f32.mrf.mxu1 }
0x1aeb   :  { %v4249_v60 = vadd.f32 %v6716_v23, %v4248_v59  ;;  %6428 = vmatprep.subr.msk.mxu1 %vm1009_vm11, %v4254_v58  ;;  %v6725_v23 = vld [vmem:[%s8170_s6 + $0xf0] sm:$0xff]  ;;  %v6726_v59 = vld [vmem:[%s8170_s6 + $0xe8] sm:$0xff] }
0x1aec   :  { %6429 = vmatpush3.msk.msra.mxu1 %vm1009_vm11, %v4254_v58 }
0x1aed   :  { %6430 = vmatprep.subr.mxu1 %v4249_v60 }
0x1aee   :  { %6431 = vmatpush3.msra.mxu1 %v4249_v60 }
0x1aef   :  { %6440 = vmatprep.subr.mxu1 %v6717_v61 }
0x1ba6   :  { %v6427_v63 = vpop.f32.mrf.mxu0 }
0x1ba7   :  { %v4345_v2 = vmul.f32 0.35355338, %v6427_v63 }
0x1ba8   :  { %v4335_v4 = vpop.f32.mrf.mxu0 }
0x1ba9   :  { %v4344_v38 = vmul.f32 0.35355338, %v4335_v4  ;;  %v4347_v41 = vadd.f32 %v7791_v20, %v4345_v2  ;;  %v6729_v2 = vld [vmem:[%s8171_s7 + $0xb] ss:$0 sm:$0xff] }
0x1bab   :  { %v4351_v52 = vsel %vm983_vm12, %v4347_v41, -inf  ;;  %v4346_v35 = vadd.f32 %v7798_v22, %v4344_v38 }
0x1bac   :  { %4352 = vmax.xlane.f32.xlu1 %v4351_v52 }
0x1bad   :  { %v4348_v53 = vsel %vm979_vm13, %v4346_v35, -inf }
0x1bae   :  { %4349 = vmax.xlane.f32.xlu0 %v4348_v53 }
0x1c35   :  { %v4353_v5 = vpop.xlane.xlu1 %4352 }
0x1c36   :  { %v4355_v6 = vsub.f32 %v4347_v41, %v4353_v5 }
0x1c37   :  { %v4350_v37 = vpop.xlane.xlu0 %4349 }
0x1c38   :  { %v4358_v7 = vmul.f32 1.442695, %v4355_v6  ;;  %v4354_v8 = vsub.f32 %v4346_v35, %v4350_v37  ;;  %v4024_v35 = vadd.f32 %v7903_v13, %v7938_v47  ;;  %v6731_v13 = vld [vmem:[%s8172_s8 + $0x18] sm:$0xff] }
0x1c3a   :  { %6628 = vpow2.f32 %v4358_v7  ;;  %v4356_v9 = vmul.f32 1.442695, %v4354_v8  ;;  %v6730_v7 = vld [vmem:[%s8171_s7 + $0x7] ss:$0 sm:$0xff] }
0x1c3c   :  { %6630 = vpow2.f32 %v4356_v9 }
0x1c47   :  { %v6629_v11 = vpop.eup %6628 }
0x1c48   :  { %v4363_v12 = vsel %vm983_vm12, %v6629_v11, 0.0 }
0x1c49   :  { %v6631_v14 = vpop.eup %6630  ;;  %4364 = vadd.xlane.f32.xlu1 %v4363_v12 }
0x1c4a   :  { %v4360_v16 = vsel %vm979_vm13, %v6631_v14, 0.0 }
0x1c4b   :  { %4361 = vadd.xlane.f32.xlu0 %v4360_v16 }
0x1cd2   :  { %v4365_v17 = vpop.xlane.xlu1 %4364 }
0x1cd3   :  { %6632 = vrcp.f32 %v4365_v17 }
0x1cd4   :  { %v4362_v19 = vpop.xlane.xlu0 %4361 }
0x1cd5   :  { %6634 = vrcp.f32 %v4362_v19 }
0x1ce0   :  { %v6633_v15 = vpop.eup %6632 }
0x1ce1   :  { %v4369_v40 = vmul.f32 %v6633_v15, %v6629_v11 }
0x1ce2   :  { %v6635_v18 = vpop.eup %6634 }
0x1ce3   :  { %v4367_v21 = vmul.f32 %v6635_v18, %v6631_v14 }
0x1ce5   :  { %6432 = vmatprep.mubr.msk.f32.mxu1 %vm979_vm13, %v4367_v21 }
0x1ce6   :  { %6433 = vmatmul.mubr.msk.f32.vlgmr.msra.gmra.mxu1 %vm979_vm13, %v4369_v40 }
0x1ce7   :  { %6441 = vmatpush3.msra.mxu1 %v6717_v61  ;;  %6448 = vmatprep.mubr.msk.f32.mxu1 %vm584_vm5, %v7714_v50 }
0x1ce8   :  { %6442 = vmatprep.subr.mxu1 %v6718_v43 }
0x1ce9   :  { %6443 = vmatpush3.msra.mxu1 %v6718_v43 }
0x1cea   :  { %6444 = vmatprep.subr.mxu1 %v6719_v44 }
0x1ceb   :  { %6445 = vmatpush3.msra.mxu1 %v6719_v44 }
0x1cec   :  { %6446 = vmatprep.subr.mxu1 %v6720_v46 }
0x1ced   :  { %6447 = vmatpush3.msra.mxu1 %v6720_v46 }
0x1cee   :  { %6449 = vmatmul.mubr.msk.f32.vlgmr.msra.gmra.mxu1 %vm584_vm5, %v7716_v54  ;;  %6462 = vmatprep.subr.mxu1 %v6721_v48 }
0x1cef   :  { %6463 = vmatpush3.msra.mxu1 %v6721_v48  ;;  %6470 = vmatprep.mubr.msk.f32.mxu1 %vm584_vm5, %v7714_v50 }
0x1cf0   :  { %6464 = vmatprep.subr.mxu1 %v6722_v49 }
0x1cf1   :  { %6465 = vmatpush3.msra.mxu1 %v6722_v49 }
0x1cf2   :  { %6466 = vmatprep.subr.mxu1 %v6723_v1 }
0x1cf3   :  { %6467 = vmatpush3.msra.mxu1 %v6723_v1 }
0x1cf4   :  { %6468 = vmatprep.subr.mxu1 %v6724_v42 }
0x1cf5   :  { %6469 = vmatpush3.msra.mxu1 %v6724_v42 }
0x1cf6   :  { %6471 = vmatmul.mubr.msk.f32.vlgmr.msra.gmra.mxu1 %vm584_vm5, %v7716_v54 }
0x1da6   :  { %v6434_v55 = vpop.f32.mrf.mxu1 }
0x1da8   :  { %v4445_v56 = vpop.f32.mrf.mxu1 }
0x1da9   :  { %6437 = vmatprep.mubr.msk.f32.mxu0 %vm374_vm1, %v4445_v56 }
0x1daa   :  { %6438 = vmatmul.mubr.msk.f32.vlgmr.msra.gmra.mxu0 %vm374_vm1, %v6434_v55 }
0x1dab   :  { %6452 = vmatpush3.msra.mxu0 %v7948_v57  ;;  %6459 = vmatprep.mubr.msk.f32.mxu0 %vm584_vm5, %v7714_v50  ;;  %v6727_v57 = vld [vmem:[%s8170_s6 + $0xe0] sm:$0xff] }
0x1dac   :  { %6453 = vmatprep.subr.mxu0 %v6725_v23  ;;  %v6728_v50 = vld [vmem:[%s8171_s7 + $0x3] ss:$0 sm:$0xff] }
0x1dad   :  { %6454 = vmatpush3.msra.mxu0 %v6725_v23  ;;  %v6732_v23 = vld [vmem:[%s8173_s9 + $0x18] sm:$0xff] }
0x1dae   :  { %v6450_v58 = vpop.f32.mrf.mxu1  ;;  %6455 = vmatprep.subr.mxu0 %v6726_v59 }
0x1daf   :  { %6456 = vmatpush3.msra.mxu0 %v6726_v59  ;;  %v6734_v59 = vld [vmem:[%s8173_s9 + $0x8] sm:$0xff] }
0x1db0   :  { %v4603_v60 = vpop.f32.mrf.mxu1  ;;  %6457 = vmatprep.subr.mxu0 %v6727_v57 }
0x1db1   :  { %v4604_v61 = vadd.f32 %v6728_v50, %v4603_v60  ;;  %6458 = vmatpush3.msra.mxu0 %v6727_v57  ;;  %v6735_v60 = vld [vmem:[%s8173_s9] sm:$0xff] }
0x1db2   :  { %6460 = vmatmul.mubr.msk.f32.vlgmr.msra.gmra.mxu0 %vm584_vm5, %v7716_v54  ;;  %v4029_v54 = vadd.f32 %v7895_v10, %v7936_v3  ;;  %v4609_v10 = vadd.f32 %v6728_v50, %v6450_v58  ;;  %v6733_v58 = vld [vmem:[%s8173_s9 + $0x10] sm:$0xff] }
0x1db3   :  { %6477 = vmatprep.mubr.msk.f32.mxu0 %vm374_vm1, %v4604_v61  ;;  %v6736_v61 = vld [vmem:[%s8175_s11 + $0x78] sm:$0xff] }
0x1db6   :  { %v6472_v63 = vpop.f32.mrf.mxu1 }
0x1db7   :  { %v4759_v4 = vadd.f32 %v6729_v2, %v6472_v63  ;;  %v6737_v63 = vld [vmem:[%s8175_s11 + $0x70] sm:$0xff] }
0x1db8   :  { %v4753_v38 = vpop.f32.mrf.mxu1 }
0x1db9   :  { %v4754_v41 = vadd.f32 %v6729_v2, %v4753_v38  ;;  %6480 = vmatprep.subr.msk.mxu1 %vm1009_vm11, %v4759_v4  ;;  %v6738_v2 = vld [vmem:[%s8175_s11 + $0x68] sm:$0xff] }
0x1dba   :  { %6481 = vmatpush3.msk.msra.mxu1 %vm1009_vm11, %v4759_v4 }
0x1dbb   :  { %6482 = vmatprep.subr.mxu1 %v4754_v41 }
0x1dbc   :  { %6483 = vmatpush3.msra.mxu1 %v4754_v41 }
0x1dbd   :  { %6492 = vmatprep.subr.mxu1 %v7545_v51 }
0x1e6a   :  { %v6439_v52 = vpop.f32.mrf.mxu0 }
0x1e6b   :  { %v8026_v53 = vadd.f32 %v6439_v52, %v4029_v54 }
0x1e6c   :  { %v4526_v5 = vpop.f32.mrf.mxu0 }
0x1e6d   :  { %v8028_v6 = vadd.f32 %v4526_v5, %v4024_v35 }
0x1e72   :  { %v6461_v37 = vpop.f32.mrf.mxu0 }
0x1e73   :  { %v4684_v8 = vadd.f32 %v6730_v7, %v6461_v37 }
0x1e74   :  { %v4678_v9 = vpop.f32.mrf.mxu0 }
0x1e75   :  { %v4679_v51 = vadd.f32 %v6730_v7, %v4678_v9  ;;  %6473 = vmatprep.subr.msk.mxu0 %vm374_vm1, %v4684_v8 }
0x1e76   :  { %6474 = vmatpush3.xpose.msk.msra.mxu0 %vm374_vm1, %v4684_v8 }
0x1e77   :  { %6475 = vmatprep.subr.msk.mxu0 %vm374_vm1, %v4679_v51 }
0x1e7a   :  { %6476 = vmatpush3.xpose.msk.msra.mxu0 %vm374_vm1, %v4679_v51 }
0x1e7b   :  { %6487 = vmatprep.subr.mxu0 %v6731_v13 }
0x1e7d   :  { %6478 = vmatmul.mubr.msk.f32.vlgmr.msra.gmra.mxu0 %vm374_vm1, %v4609_v10 }
0x1e7e   :  { %6488 = vmatpush3.msra.mxu0 %v6731_v13 }
0x1e7f   :  { %6503 = vmatprep.subr.mxu0 %v7564_v45 }
0x1f3d   :  { %v6479_v3 = vpop.f32.mrf.mxu0 }
0x1f3e   :  { %v4850_v47 = vmul.f32 0.35355338, %v6479_v3 }
0x1f3f   :  { %v4840_v11 = vpop.f32.mrf.mxu0 }
0x1f40   :  { %v4849_v12 = vmul.f32 0.35355338, %v4840_v11  ;;  %v4852_v14 = vadd.f32 %v7791_v20, %v4850_v47 }
0x1f42   :  { %v4856_v16 = vsel %vm983_vm12, %v4852_v14, -inf  ;;  %v4851_v17 = vadd.f32 %v7798_v22, %v4849_v12 }
0x1f43   :  { %4857 = vmax.xlane.f32.xlu1 %v4856_v16 }
0x1f44   :  { %v4853_v19 = vsel %vm979_vm13, %v4851_v17, -inf }
0x1f45   :  { %4854 = vmax.xlane.f32.xlu0 %v4853_v19  ;;  %v6740_v19 = vld [vmem:[%s8168_s4 + $0x9] ss:$0 sm:$0xff] }
0x1fcc   :  { %v4858_v15 = vpop.xlane.xlu1 %4857 }
0x1fcd   :  { %v4860_v18 = vsub.f32 %v4852_v14, %v4858_v15 }
0x1fce   :  { %v4855_v21 = vpop.xlane.xlu0 %4854 }
0x1fcf   :  { %v4863_v40 = vmul.f32 1.442695, %v4860_v18  ;;  %v4859_v43 = vsub.f32 %v4851_v17, %v4855_v21 }
0x1fd1   :  { %6636 = vpow2.f32 %v4863_v40  ;;  %v4861_v45 = vmul.f32 1.442695, %v4859_v43 }
0x1fd3   :  { %6638 = vpow2.f32 %v4861_v45  ;;  %v6741_v45 = vld [vmem:[%s8168_s4 + $0xa] ss:$0 sm:$0xff] }
0x1fde   :  { %v6637_v44 = vpop.eup %6636 }
0x1fdf   :  { %v4868_v46 = vsel %vm983_vm12, %v6637_v44, 0.0 }
0x1fe0   :  { %v6639_v20 = vpop.eup %6638  ;;  %4869 = vadd.xlane.f32.xlu1 %v4868_v46 }
0x1fe1   :  { %v4865_v48 = vsel %vm979_vm13, %v6639_v20, 0.0 }
0x1fe2   :  { %4866 = vadd.xlane.f32.xlu0 %v4865_v48  ;;  %v6742_v48 = vld [vmem:[%s8174_s10] ss:$0 sm:$0xff] }
0x2069   :  { %v4870_v22 = vpop.xlane.xlu1 %4869 }
0x206a   :  { %6640 = vrcp.f32 %v4870_v22 }
0x206b   :  { %v4867_v49 = vpop.xlane.xlu0 %4866 }
0x206c   :  { %6642 = vrcp.f32 %v4867_v49 }
0x2077   :  { %v6641_v1 = vpop.eup %6640 }
0x2078   :  { %v4874_v56 = vmul.f32 %v6641_v1, %v6637_v44 }
0x2079   :  { %v6643_v42 = vpop.eup %6642 }
0x207a   :  { %v4872_v55 = vmul.f32 %v6643_v42, %v6639_v20 }
0x207c   :  { %6484 = vmatprep.mubr.msk.f32.mxu1 %vm979_vm13, %v4872_v55 }
0x207d   :  { %6485 = vmatmul.mubr.msk.f32.vlgmr.msra.gmra.mxu1 %vm979_vm13, %v4874_v56 }
0x207e   :  { %6493 = vmatpush3.msra.mxu1 %v6732_v23 }
0x207f   :  { %6494 = vmatprep.subr.mxu1 %v6733_v58 }
0x2080   :  { %6495 = vmatpush3.msra.mxu1 %v6733_v58 }
0x2081   :  { %6496 = vmatprep.subr.mxu1 %v6734_v59 }
0x2082   :  { %6497 = vmatpush3.msra.mxu1 %v6734_v59 }
0x2083   :  { %6498 = vmatprep.subr.mxu1 %v6735_v60 }
0x2084   :  { %6499 = vmatpush3.msra.mxu1 %v6735_v60 }
0x213d   :  { %v6486_v57 = vpop.f32.mrf.mxu1 }
0x213f   :  { %v4950_v50 = vpop.f32.mrf.mxu1 }
0x2140   :  { %6489 = vmatprep.mubr.msk.f32.mxu0 %vm374_vm1, %v4950_v50 }
0x2141   :  { %6490 = vmatmul.mubr.msk.f32.vlgmr.msra.gmra.mxu0 %vm374_vm1, %v6486_v57 }
0x2142   :  { %6504 = vmatpush3.msra.mxu0 %v6736_v61 }
0x2143   :  { %6505 = vmatprep.subr.mxu0 %v6737_v63 }
0x2144   :  { %6506 = vmatpush3.msra.mxu0 %v6737_v63 }
0x2145   :  { %6507 = vmatprep.subr.mxu0 %v6738_v2 }
0x2146   :  { %6508 = vmatpush3.msra.mxu0 %v6738_v2 }
0x2147   :  { %6509 = vmatprep.subr.mxu0 %v7600_v24 }
0x2148   :  { %6510 = vmatpush3.msra.mxu0 %v7600_v24 }
0x2149   :  { %6511 = vmatprep.subr.mxu0 %v7607_v25 }
0x214a   :  { %6512 = vmatpush3.msra.mxu0 %v7607_v25 }
0x214b   :  { %6513 = vmatprep.subr.mxu0 %v7614_v26 }
0x214c   :  { %6514 = vmatpush3.msra.mxu0 %v7614_v26 }
0x214d   :  { %6515 = vmatprep.subr.mxu0 %v7621_v27 }
0x214e   :  { %6516 = vmatpush3.msra.mxu0 %v7621_v27 }
0x214f   :  { %6517 = vmatprep.subr.mxu0 %v7628_v28 }
0x2150   :  { %6518 = vmatpush3.msra.mxu0 %v7628_v28 }
0x2151   :  { %6519 = vmatprep.subr.mxu0 %v7635_v29 }
0x2152   :  { %6520 = vmatpush3.msra.mxu0 %v7635_v29  ;;  %v6739_v29 = vld [vmem:[%s8168_s4 + $0xb] ss:$0 sm:$0xff] }
0x2153   :  { %6521 = vmatprep.subr.mxu0 %v7642_v30 }
0x2154   :  { %6522 = vmatpush3.msra.mxu0 %v7642_v30 }
0x2155   :  { %6523 = vmatprep.subr.mxu0 %v7649_v31 }
0x2156   :  { %6524 = vmatpush3.msra.mxu0 %v7649_v31 }
0x2157   :  { %6525 = vmatprep.subr.mxu0 %v7656_v32 }
0x2158   :  { %6526 = vmatpush3.msra.mxu0 %v7656_v32 }
0x2159   :  { %6527 = vmatprep.subr.mxu0 %v7663_v33 }
0x215a   :  { %6528 = vmatpush3.msra.mxu0 %v7663_v33 }
0x215b   :  { %6529 = vmatprep.subr.mxu0 %v7670_v34 }
0x215c   :  { %6530 = vmatpush3.msra.mxu0 %v7670_v34 }
0x215d   :  { %6531 = vmatprep.subr.mxu0 %v7677_v36 }
0x215e   :  { %6532 = vmatpush3.msra.mxu0 %v7677_v36 }
0x215f   :  { %6533 = vmatprep.subr.mxu0 %v7682_v39 }
0x2160   :  { %6534 = vmatpush3.msra.mxu0 %v7682_v39 }
0x2201   :  { %v6491_v24 = vpop.f32.mrf.mxu0 }
0x2202   :  { %v5041_v25 = vadd.f32 %v6491_v24, %v8026_v53 }
0x2203   :  { %v5031_v26 = vpop.f32.mrf.mxu0 }
0x2204   :  { %v5043_v27 = vadd.f32 %v5041_v25, %v7695_v62  ;;  %v5040_v28 = vadd.f32 %v5031_v26, %v8028_v6  ;;  %v6743_v26 = vld [vmem:[%s8168_s4 + $0xc] ss:$0 sm:$0xff] }
0x2206   :  { %v8105_v30 = vadd.f32 %v6739_v29, %v5043_v27  ;;  %v5042_v31 = vadd.f32 %v5040_v28, %v7698_v0 }
0x2208   :  { %v8108_v32 = vadd.f32 %v6739_v29, %v5042_v31  ;;  %v5049_v33 = vsel %vm588_vm6, %v8105_v30, 0.0 }
0x2209   :  { %5050 = vadd.xlane.f32.xlu1 %v5049_v33 }
0x220a   :  { %v5046_v34 = vsel %vm584_vm5, %v8108_v32, 0.0 }
0x220b   :  { %5047 = vadd.xlane.f32.xlu0 %v5046_v34 }
0x2292   :  { %v5051_v36 = vpop.xlane.xlu1 %5050 }
0x2293   :  { %v5053_v39 = vmul.f32 0.03125, %v5051_v36 }
0x2294   :  { %v5048_v62 = vpop.xlane.xlu0 %5047 }
0x2295   :  { %v5055_v4 = vsub.f32 %v8105_v30, %v5053_v39  ;;  %v5052_v38 = vmul.f32 0.03125, %v5048_v62 }
0x2297   :  { %v5054_v41 = vsub.f32 %v8108_v32, %v5052_v38  ;;  %v5057_v54 = vmul.f32 %v5055_v4, %v5055_v4  ;;  %v5067_v15 = vmul.f32 %v6740_v19, %v5055_v4 }
0x2299   :  { %v5061_v0 = vsel %vm588_vm6, %v5057_v54, 0.0  ;;  %v5056_v52 = vmul.f32 %v5054_v41, %v5054_v41  ;;  %v5066_v18 = vmul.f32 %v6740_v19, %v5054_v41  ;;  %v5317_v54 = vld [vmem:[%s8176_s12 + $0x18] sm:$0xff] }
0x229a   :  { %5062 = vadd.xlane.f32.xlu1 %v5061_v0  ;;  %v5316_v0 = vld [vmem:[%s8176_s12 + $0x10] sm:$0xff]  ;;  %6538 = vmatprep.subr.mxu1 %v5317_v54 }
0x229b   :  { %v5058_v35 = vsel %vm584_vm5, %v5056_v52, 0.0  ;;  %v5315_v52 = vld [vmem:[%s8176_s12 + $0x8] sm:$0xff] }
0x229c   :  { %5059 = vadd.xlane.f32.xlu0 %v5058_v35  ;;  %v5314_v35 = vld [vmem:[%s8176_s12] sm:$0xff] }
0x2323   :  { %v5063_v53 = vpop.xlane.xlu1 %5062 }
0x2324   :  { %v5065_v5 = vmul.f32 0.032258064, %v5063_v53 }
0x2325   :  { %v5060_v6 = vpop.xlane.xlu0 %5059 }
0x2326   :  { %6644 = vrsqrt.f32 %v5065_v5  ;;  %v5064_v37 = vmul.f32 0.032258064, %v5060_v6  ;;  %vm5077_vm1 = vcmp.eq.f32.partialorder %v5065_v5, inf  ;;  %v5080_v9 = vand.u32 2147483648, %v5065_v5 }
0x2327   :  { %vm5079_vm9 = vcmp.eq.f32.partialorder %v5065_v5, 0.0 }
0x2328   :  { %6646 = vrsqrt.f32 %v5064_v37  ;;  %vm5070_vm10 = vcmp.eq.f32.partialorder %v5064_v37, inf  ;;  %v5073_v11 = vand.u32 2147483648, %v5064_v37  ;;  %vm5072_vm11 = vcmp.eq.f32.partialorder %v5064_v37, 0.0 }
0x2333   :  { %v6645_v7 = vpop.eup %6644 }
0x2334   :  { %v5076_v8 = vmul.f32 %v6645_v7, %v5065_v5 }
0x2335   :  { %v6647_v51 = vpop.eup %6646 }
0x2336   :  { %v5078_v10 = vsel %vm5077_vm1, %v5065_v5, %v5076_v8  ;;  %v5069_v3 = vmul.f32 %v6647_v51, %v5064_v37 }
0x2337   :  { %v5081_v13 = vsel %vm5079_vm9, %v5080_v9, %v5078_v10 }
0x2338   :  { %v5083_v47 = vadd.f32 1e-06, %v5081_v13  ;;  %v5071_v12 = vsel %vm5070_vm10, %v5064_v37, %v5069_v3 }
0x2339   :  { %v5074_v14 = vsel %vm5072_vm11, %v5073_v11, %v5071_v12 }
0x233a   :  { %6648 = vrcp.f32 %v5083_v47  ;;  %v5082_v16 = vadd.f32 1e-06, %v5074_v14 }
0x233c   :  { %6650 = vrcp.f32 %v5082_v16 }
0x2347   :  { %v6649_v17 = vpop.eup %6648 }
0x2348   :  { %v5087_v40 = vmul.f32 %v6649_v17, %v5067_v15  ;;  %v5627_v15 = vld [vmem:[%s8168_s4 + $0xd] ss:$0 sm:$0xff] }
0x2349   :  { %v6651_v21 = vpop.eup %6650 }
0x234a   :  { %v5085_v43 = vmul.f32 %v6651_v21, %v5066_v18  ;;  %v5089_v46 = vadd.f32 %v6741_v45, %v5087_v40 }
0x234c   :  { %v5088_v44 = vadd.f32 %v6741_v45, %v5085_v43  ;;  %v5628_v43 = vld [vmem:[%s8168_s4 + $0xe] ss:$0 sm:$0xff]  ;;  %s6744_s4 = scalar_lea.vmem %s5416_s22, 32 }
0x234d   :  { %p6745_p0 = scmp.ne.s32.totalorder %s5416_s22, %s6744_s4  ;;  %p6750_p2 = scmp.lt.s32.totalorder %s6744_s4, %s6744_s4 }
0x234e   :  { %6500 = vmatprep.mubr.msk.f32.mxu1 %vm584_vm5, %v5088_v44 }
0x234f   :  { %6501 = vmatmul.mubr.msk.f32.vlgmr.msra.gmra.mxu1 %vm584_vm5, %v5089_v46  ;;  %p6751_p3 = por %p6750_p2, %p6749_p1 }
0x2350   :  { %6539 = vmatpush3.msra.mxu1 %v5317_v54 }
0x2351   :  { %6540 = vmatprep.subr.mxu1 %v5316_v0  ;;  %p6752_p4 = pnand %p6751_p3, %p6745_p0 }
0x2352   :  { %6541 = vmatpush3.msra.mxu1 %v5316_v0 }
0x2353   :  { %6542 = vmatprep.subr.mxu1 %v5315_v52 }
0x2354   :  { %6543 = vmatpush3.msra.mxu1 %v5315_v52 }
0x2355   :  { %6544 = vmatprep.subr.mxu1 %v5314_v35 }
0x2356   :  { %6545 = vmatpush3.msra.mxu1 %v5314_v35 }
0x240f   :  { %v6502_v20 = vpop.f32.mrf.mxu1 }
0x2410   :  { %v5168_v22 = vadd.f32 %v6742_v48, %v6502_v20 }
0x2411   :  { %v5162_v49 = vpop.f32.mrf.mxu1 }
0x2412   :  { %v5174_v1 = vmul.f32 0.70710677, %v5168_v22  ;;  %v5163_v42 = vadd.f32 %v6742_v48, %v5162_v49  ;;  %v5172_v57 = vmul.f32 0.5, %v5168_v22  ;;  %v5629_v48 = vld [vmem:[%s8177_s13] ss:$0 sm:$0xff] }
0x2414   :  { %6652 = verf.f32 %v5174_v1  ;;  %v5173_v55 = vmul.f32 0.70710677, %v5163_v42  ;;  %v5171_v59 = vmul.f32 0.5, %v5163_v42 }
0x2416   :  { %6654 = verf.f32 %v5173_v55 }
0x2421   :  { %v6653_v56 = vpop.eup %6652 }
0x2422   :  { %v5178_v58 = vadd.f32 1.0, %v6653_v56 }
0x2423   :  { %v6655_v23 = vpop.eup %6654 }
0x2424   :  { %v5177_v60 = vadd.f32 1.0, %v6655_v23  ;;  %v5180_v61 = vmul.f32 %v5178_v58, %v5172_v57 }
0x2426   :  { %v5179_v50 = vmul.f32 %v5177_v60, %v5171_v59 }
0x2428   :  { %6535 = vmatprep.mubr.f32.mxu0 %v5179_v50 }
0x2429   :  { %6536 = vmatmul.mubr.f32.vlgmr.msra.gmra.mxu0 %v5180_v61 }
0x24e9   :  { %v6537_v63 = vpop.f32.mrf.mxu0 }
0x24ea   :  { %v5257_v2 = vadd.f32 %v6537_v63, %v8105_v30 }
0x24eb   :  { %v5247_v24 = vpop.f32.mrf.mxu0 }
0x24ec   :  { %v5256_v25 = vadd.f32 %v5247_v24, %v8108_v32  ;;  %v5259_v27 = vadd.f32 %v6743_v26, %v5257_v2 }
0x24ee   :  { %v5265_v28 = vsel %vm588_vm6, %v5259_v27, 0.0  ;;  %v5258_v29 = vadd.f32 %v6743_v26, %v5256_v25 }
0x24ef   :  { %5266 = vadd.xlane.f32.xlu1 %v5265_v28 }
0x24f0   :  { %v5262_v31 = vsel %vm584_vm5, %v5258_v29, 0.0 }
0x24f1   :  { %5263 = vadd.xlane.f32.xlu0 %v5262_v31 }
0x2578   :  { %v5267_v33 = vpop.xlane.xlu1 %5266 }
0x2579   :  { %v5269_v34 = vmul.f32 0.03125, %v5267_v33 }
0x257a   :  { %v5264_v36 = vpop.xlane.xlu0 %5263 }
0x257b   :  { %v5271_v39 = vsub.f32 %v5259_v27, %v5269_v34  ;;  %v5268_v30 = vmul.f32 0.03125, %v5264_v36 }
0x257d   :  { %v5270_v62 = vsub.f32 %v5258_v29, %v5268_v30  ;;  %v5273_v4 = vmul.f32 %v5271_v39, %v5271_v39 }
0x257f   :  { %v5277_v32 = vsel %vm588_vm6, %v5273_v4, 0.0  ;;  %v5272_v38 = vmul.f32 %v5270_v62, %v5270_v62 }
0x2580   :  { %5278 = vadd.xlane.f32.xlu1 %v5277_v32 }
0x2581   :  { %v5274_v41 = vsel %vm584_vm5, %v5272_v38, 0.0 }
0x2582   :  { %5275 = vadd.xlane.f32.xlu0 %v5274_v41 }
0x2609   :  { %v5279_v53 = vpop.xlane.xlu1 %5278 }
0x260a   :  { %v5281_v5 = vmul.f32 0.03125, %v5279_v53 }
0x260b   :  { %v5276_v6 = vpop.xlane.xlu0 %5275 }
0x260c   :  { %v5283_v37 = vadd.f32 1e-05, %v5281_v5  ;;  %v5280_v7 = vmul.f32 0.03125, %v5276_v6 }
0x260e   :  { %6656 = vrsqrt.f32 %v5283_v37  ;;  %v5282_v8 = vadd.f32 1e-05, %v5280_v7  ;;  %vm5293_vm6 = vcmp.eq.f32.partialorder %v5283_v37, inf  ;;  %v5296_v10 = vand.u32 2147483648, %v5283_v37 }
0x260f   :  { %vm5295_vm12 = vcmp.eq.f32.partialorder %v5283_v37, 0.0 }
0x2610   :  { %6658 = vrsqrt.f32 %v5282_v8  ;;  %vm5286_vm13 = vcmp.eq.f32.partialorder %v5282_v8, inf  ;;  %v5289_v12 = vand.u32 2147483648, %v5282_v8  ;;  %vm5288_vm14 = vcmp.eq.f32.partialorder %v5282_v8, 0.0 }
0x261b   :  { %v6657_v9 = vpop.eup %6656 }
0x261c   :  { %v5292_v51 = vmul.f32 %v6657_v9, %v5283_v37 }
0x261d   :  { %v6659_v13 = vpop.eup %6658 }
0x261e   :  { %v5294_v3 = vsel %vm5293_vm6, %v5283_v37, %v5292_v51  ;;  %v5285_v11 = vmul.f32 %v6659_v13, %v5282_v8 }
0x261f   :  { %v5297_v47 = vsel %vm5295_vm12, %v5296_v10, %v5294_v3 }
0x2620   :  { %6660 = vrcp.f32 %v5297_v47  ;;  %v5287_v14 = vsel %vm5286_vm13, %v5282_v8, %v5285_v11 }
0x2621   :  { %v5290_v16 = vsel %vm5288_vm14, %v5289_v12, %v5287_v14 }
0x2622   :  { %6662 = vrcp.f32 %v5290_v16 }
0x262d   :  { %v6661_v17 = vpop.eup %6660 }
0x262e   :  { %v5301_v19 = vmul.f32 %v6661_v17, %v5271_v39 }
0x262f   :  { %v6663_v18 = vpop.eup %6662 }
0x2630   :  { %v5299_v21 = vmul.f32 %v6663_v18, %v5270_v62  ;;  %v5307_v40 = vmul.f32 %v5627_v15, %v5301_v19 }
0x2632   :  { %v5306_v45 = vmul.f32 %v5627_v15, %v5299_v21  ;;  %v5313_v46 = vadd.f32 %v5628_v43, %v5307_v40 }
0x2634   :  { %v5312_v44 = vadd.f32 %v5628_v43, %v5306_v45 }
0x2636   :  { %6546 = vmatprep.mubr.msk.f32.mxu1 %vm584_vm5, %v5312_v44 }
0x2637   :  { %6547 = vmatmul.mubr.msk.f32.vlgmr.msra.gmra.mxu1 %vm584_vm5, %v5313_v46 }
0x26f7   :  { %v6548_v20 = vpop.f32.mrf.mxu1 }
0x26f9   :  { %v5397_v22 = vpop.f32.mrf.mxu1 }
0x26fa   :  { %v5398_v49 = vadd.f32 %v5629_v48, %v5397_v22 }
0x26fc   :  { %5406 = vst.msk [vmem:[#allocation3] sm:$0x1] %vm5405_vm15, %v5398_v49 }
0x26fd   :  { %5408 = vst.msk [vmem:[#allocation3 - $0x4] sm:$0x20] %vm5407_vm0, %v5398_v49 }
0x26fe   :  { %6755 = shalt.err (!%p6752_p4)
}
0x26ff   :  { %5418 = dma.vmem_to_hbm [thread:$0]  %s5416_s22, 32, %s8178_s14, [#allocation4]  }
0x2700   :  { %6764 = dma.done.wait [#allocation4], 32  }
0x2701   :  { %6765 = vsyncadd [#allocation4], 4294967264 }
0x2702   :  { %5422 = vsyncpa [#allocation4], 1 }

</bundles_post_ra>
